<compile_context>
chip_gen: v5e
topology: v5e:2x2
jax: 0.10.0
libtpu: 0.0.40
codegen_flags: <defaults>
</compile_context>

<pallas_src>
import math

import jax
import jax.numpy as jnp
from jax.experimental import pallas as pl
from jax.experimental.pallas import tpu as pltpu

# ----------------------------- configuration ------------------------------
VOCAB = 64
D_MODEL = 32
N_HEAD = 2
D_HEAD = D_MODEL // N_HEAD
N_LAYER = 2
D_FFN = 4 * D_MODEL            # 128 -> lane-dense MLP
MAX_T = 128                    # fixed KV-cache / position budget (lane-dense scores)
LOGITS_PAD = 128               # lane-dense logits slab (>= VOCAB, multiple of 128)
LN_EPS = 1e-5
ATTN_SCALE = 1.0 / math.sqrt(D_HEAD)   # folded into the Q weights at init


def _layernorm(x, g, b):
    mean = jnp.mean(x, axis=-1, keepdims=True)
    var = jnp.mean((x - mean) ** 2, axis=-1, keepdims=True)
    return (x - mean) * jax.lax.rsqrt(var + LN_EPS) * g + b


def _gelu(x):
    # GPT-2 tanh-approx GELU (f32 elementwise; tanh goes to the EUP slot)
    return 0.5 * x * (1.0 + jnp.tanh(0.7978845608028654 * (x + 0.044715 * x * x * x)))


# ------------------------- fused whole-model kernel -------------------------
def _fused_decoder_kernel(
    h0_ref,                             # (1, S, D)           f32
    bias_ref,                           # (1, S, MAX_T)       f32 additive mask
    sel_ref,                            # (MAX_T, S)          bf16 scatter matrix
    newrow_ref,                         # (MAX_T, 1)          f32 (1.0 = row written)
    kc_in_ref, vc_in_ref,               # (1, L, H, MAX_T, Dh) f32 (aliased w/ outputs)
    ln1_g_ref, ln1_b_ref,               # (L, 1, D)           f32
    w_qkv_ref, b_qkv_ref,               # (L, 3H, D, Dh) bf16, (L, 3H, 1, Dh) f32
    w_proj_ref, b_proj_ref,             # (L, H, Dh, D)  bf16, (L, 1, D) f32
    ln2_g_ref, ln2_b_ref,               # (L, 1, D)           f32
    w_fc1_ref, b_fc1_ref,               # (L, D, F) bf16, (L, 1, F) f32
    w_fc2_ref, b_fc2_ref,               # (L, F, D) bf16, (L, 1, D) f32
    lnf_g_ref, lnf_b_ref,               # (1, D)              f32
    w_lm_ref,                           # (D, LOGITS_PAD)     bf16
    logits_ref,                         # out: (1, S, LOGITS_PAD) f32
    kc_out_ref, vc_out_ref,             # out: (1, L, H, MAX_T, Dh) f32
):
    S = h0_ref.shape[1]
    H = N_HEAD
    bf16 = jnp.bfloat16

    h = h0_ref[0, :, :]                                     # (S, D) f32 residual
    abias = bias_ref[0, :, :]                               # (S, MAX_T) additive mask
    sel_h = jnp.broadcast_to(sel_ref[...], (H, MAX_T, S))   # (H, MAX_T, S) bf16
    nr = newrow_ref[...] > 0.5                              # (MAX_T, 1) bool

    for l in range(N_LAYER):
        # ---------------- attention block ----------------
        x = _layernorm(h, ln1_g_ref[l], ln1_b_ref[l]).astype(bf16)      # (S, D)
        xg = jnp.broadcast_to(x, (3 * H, S, D_MODEL))                   # cheap vreg dup
        qkv = jnp.einsum("gsd,gdf->gsf", xg, w_qkv_ref[l],
                         preferred_element_type=jnp.float32) + b_qkv_ref[l]   # (3H,S,Dh)
        q, k_new, v_new = qkv[:H], qkv[H:2 * H], qkv[2 * H:]            # free leading splits

        # KV-cache update: one bf16 scatter-matmul per K / V for ALL heads,
        # merged slab written to the aliased output block.
        k_all = jnp.where(
            nr,
            jnp.einsum("hts,hsd->htd", sel_h, k_new.astype(bf16),
                       preferred_element_type=jnp.float32),
            kc_in_ref[0, l])
        v_all = jnp.where(
            nr,
            jnp.einsum("hts,hsd->htd", sel_h, v_new.astype(bf16),
                       preferred_element_type=jnp.float32),
            vc_in_ref[0, l])
        kc_out_ref[0, l] = k_all.astype(kc_out_ref.dtype)
        vc_out_ref[0, l] = v_all.astype(vc_out_ref.dtype)

        # scores / softmax / PV, batched over heads (scale pre-folded into W_q)
        s_ = jnp.einsum("hsd,htd->hst", q.astype(bf16), k_all.astype(bf16),
                        preferred_element_type=jnp.float32) + abias      # (H, S, T)
        m = jnp.max(s_, axis=-1, keepdims=True)
        p = jnp.exp(s_ - m)
        # approx reciprocal on EUP; use approx=False for strict parity tests
        probs = p * pl.reciprocal(jnp.sum(p, axis=-1, keepdims=True), approx=True)
        ctx = jnp.einsum("hst,htd->hsd", probs.astype(bf16), v_all.astype(bf16),
                         preferred_element_type=jnp.float32)             # (H, S, Dh)

        # head merge folded into the output projection (no concat / transpose)
        proj = jnp.einsum("hsd,hdf->hsf", ctx.astype(bf16), w_proj_ref[l],
                          preferred_element_type=jnp.float32)            # (H, S, D)
        h = h + jnp.sum(proj, axis=0) + b_proj_ref[l]

        # ---------------- MLP block ----------------
        x2 = _layernorm(h, ln2_g_ref[l], ln2_b_ref[l]).astype(bf16)
        ff = _gelu(jnp.dot(x2, w_fc1_ref[l],
                           preferred_element_type=jnp.float32) + b_fc1_ref[l])
        h = h + jnp.dot(ff.astype(bf16), w_fc2_ref[l],
                        preferred_element_type=jnp.float32) + b_fc2_ref[l]

    # ---------- final LN + tied, bias-free LM head (lane-dense output) ----------
    xf = _layernorm(h, lnf_g_ref[...], lnf_b_ref[...]).astype(bf16)
    logits_ref[0, :, :] = jnp.dot(xf, w_lm_ref[...],
                                  preferred_element_type=jnp.float32
                                  ).astype(logits_ref.dtype)


# ------------------------------- parameters --------------------------------
def init_params(key):
    keys = jax.random.split(key, 6)
    s = 0.02
    L, H, G = N_LAYER, N_HEAD, 3 * N_HEAD
    bf16 = jnp.bfloat16

    wte = s * jax.random.normal(keys[0], (VOCAB, D_MODEL), jnp.float32)
    # tied LM head, pre-transposed once, padded to a lane-dense 128-wide slab, bf16
    w_lm = jnp.zeros((D_MODEL, LOGITS_PAD), jnp.float32).at[:, :VOCAB].set(wte.T)

    # QKV weights pre-grouped head-major: groups [0:H]=Q, [H:2H]=K, [2H:3H]=V;
    # 1/sqrt(Dh) folded into the Q groups (zero runtime cost).
    w_qkv = s * jax.random.normal(keys[2], (L, G, D_MODEL, D_HEAD), jnp.float32)
    w_qkv = w_qkv.at[:, :H].multiply(ATTN_SCALE)

    return {
        "wte": wte,
        "wpe": s * jax.random.normal(keys[1], (MAX_T, D_MODEL), jnp.float32),
        "w_lm": w_lm.astype(bf16),
        "ln1_g": jnp.ones((L, 1, D_MODEL), jnp.float32),
        "ln1_b": jnp.zeros((L, 1, D_MODEL), jnp.float32),
        "w_qkv": w_qkv.astype(bf16),
        "b_qkv": jnp.zeros((L, G, 1, D_HEAD), jnp.float32),
        "w_proj": (s * jax.random.normal(keys[3], (L, H, D_HEAD, D_MODEL),
                                         jnp.float32)).astype(bf16),
        "b_proj": jnp.zeros((L, 1, D_MODEL), jnp.float32),
        "ln2_g": jnp.ones((L, 1, D_MODEL), jnp.float32),
        "ln2_b": jnp.zeros((L, 1, D_MODEL), jnp.float32),
        "w_fc1": (s * jax.random.normal(keys[4], (L, D_MODEL, D_FFN),
                                        jnp.float32)).astype(bf16),
        "b_fc1": jnp.zeros((L, 1, D_FFN), jnp.float32),
        "w_fc2": (s * jax.random.normal(keys[5], (L, D_FFN, D_MODEL),
                                        jnp.float32)).astype(bf16),
        "b_fc2": jnp.zeros((L, 1, D_MODEL), jnp.float32),
        "lnf_g": jnp.ones((1, D_MODEL), jnp.float32),
        "lnf_b": jnp.zeros((1, D_MODEL), jnp.float32),
    }


def _rep_spec(shape):
    """Whole-array VMEM block, same block for every grid step (weights)."""
    nd = len(shape)
    return pl.BlockSpec(tuple(shape), lambda b, _nd=nd: (0,) * _nd)


# --------------------------------- forward ---------------------------------
def net_forward(params, input_ids, k_cache, v_cache, mask, past_len):
    """Mirrors Net.forward: returns (logits, new_k_cache, new_v_cache).

    k_cache / v_cache: persistent [B, L, H, MAX_T, Dh] slabs, valid on
    [0, past_len); updated in place (aliased) by the kernel.
    mask: [B, MAX_T], 1 = attend.  NOTE: caller must ensure past_len+S <= MAX_T.
    """
    B, S = input_ids.shape
    past_len = jnp.asarray(past_len, jnp.int32)

    # embeddings (cheap gather glue around the single fused kernel)
    pos = jax.lax.dynamic_slice_in_dim(params["wpe"], past_len, S, axis=0)     # (S, D)
    h0 = jnp.take(params["wte"], input_ids, axis=0) + pos[None, :, :]          # (B, S, D)

    # precomputed additive attention bias (no per-grid-step iota/select in-kernel)
    qpos = past_len + jnp.arange(S, dtype=jnp.int32)[:, None]                  # (S, 1)
    kpos = jnp.arange(MAX_T, dtype=jnp.int32)[None, :]                         # (1, MAX_T)
    keep = jnp.logical_and((kpos <= qpos)[None], mask[:, None, :] > 0.5)       # (B, S, MAX_T)
    attn_bias = jnp.where(keep, 0.0, -1e30).astype(jnp.float32)

    # batch-independent scatter helpers for the KV-cache update
    tpos = jnp.arange(MAX_T, dtype=jnp.int32)[:, None]                         # (MAX_T, 1)
    sel = (tpos == (past_len + jnp.arange(S, dtype=jnp.int32))[None, :]
           ).astype(jnp.bfloat16)                                              # (MAX_T, S)
    new_rows = jnp.logical_and(tpos >= past_len,
                               tpos < past_len + S).astype(jnp.float32)        # (MAX_T, 1)

    weights = [
        params["ln1_g"], params["ln1_b"],
        params["w_qkv"], params["b_qkv"],
        params["w_proj"], params["b_proj"],
        params["ln2_g"], params["ln2_b"],
        params["w_fc1"], params["b_fc1"],
        params["w_fc2"], params["b_fc2"],
        params["lnf_g"], params["lnf_b"],
        params["w_lm"],
    ]

    cache_block = (1, N_LAYER, N_HEAD, MAX_T, D_HEAD)
    in_specs = [
        pl.BlockSpec((1, S, D_MODEL), lambda b: (b, 0, 0)),             # h0
        pl.BlockSpec((1, S, MAX_T), lambda b: (b, 0, 0)),               # additive mask bias
        pl.BlockSpec((MAX_T, S), lambda b: (0, 0)),                     # scatter matrix
        pl.BlockSpec((MAX_T, 1), lambda b: (0, 0)),                     # new-row mask
        pl.BlockSpec(cache_block, lambda b: (b, 0, 0, 0, 0)),           # k cache (aliased)
        pl.BlockSpec(cache_block, lambda b: (b, 0, 0, 0, 0)),           # v cache (aliased)
    ] + [_rep_spec(w.shape) for w in weights]

    out_shape = (
        jax.ShapeDtypeStruct((B, S, LOGITS_PAD), jnp.float32),
        jax.ShapeDtypeStruct(k_cache.shape, k_cache.dtype),
        jax.ShapeDtypeStruct(v_cache.shape, v_cache.dtype),
    )
    out_specs = (
        pl.BlockSpec((1, S, LOGITS_PAD), lambda b: (b, 0, 0)),
        pl.BlockSpec(cache_block, lambda b: (b, 0, 0, 0, 0)),
        pl.BlockSpec(cache_block, lambda b: (b, 0, 0, 0, 0)),
    )

    logits_pad, k_out, v_out = pl.pallas_call(
        _fused_decoder_kernel,
        grid=(B,),
        in_specs=in_specs,
        out_specs=out_specs,
        out_shape=out_shape,
        input_output_aliases={4: 1, 5: 2},     # in-place KV-cache update (P8)
        compiler_params=pltpu.CompilerParams(
            # TODO(synk): verify the batch split on v7x; force CORE_PARALLEL or
            # an explicit core_map if both samples land on one TensorCore.
            dimension_semantics=("parallel",),
            vmem_limit_bytes=32 * 1024 * 1024,
        ),
    )(h0, attn_bias, sel, new_rows, k_cache, v_cache, *weights)

    return logits_pad[:, :, :VOCAB], k_out, v_out


def slabs_to_hf_tuple(k_cache, v_cache):
    """One-time API-boundary conversion to the HF-style past_key_values tuple."""
    return tuple((k_cache[:, l], v_cache[:, l]) for l in range(N_LAYER))


# ----------------------------------- main -----------------------------------
if __name__ == "__main__":
    key = jax.random.PRNGKey(0)
    k_param, k_ids, k_kc, k_vc = jax.random.split(key, 4)

    B, S, PAST = 2, 8, 4

    params = init_params(k_param)
    input_ids = jax.random.randint(k_ids, (B, S), 0, VOCAB, dtype=jnp.int32)

    # persistent slab KV caches: first PAST positions hold the "past"
    cache_shape = (B, N_LAYER, N_HEAD, MAX_T, D_HEAD)
    k_cache = jnp.zeros(cache_shape, jnp.float32).at[:, :, :, :PAST, :].set(
        0.02 * jax.random.normal(k_kc, (B, N_LAYER, N_HEAD, PAST, D_HEAD), jnp.float32))
    v_cache = jnp.zeros(cache_shape, jnp.float32).at[:, :, :, :PAST, :].set(
        0.02 * jax.random.normal(k_vc, (B, N_LAYER, N_HEAD, PAST, D_HEAD), jnp.float32))

    fwd = jax.jit(net_forward, donate_argnums=(2, 3))

    # decode step 1 (past_len = PAST)
    mask1 = jnp.broadcast_to(
        (jnp.arange(MAX_T)[None, :] < PAST + S).astype(jnp.float32), (B, MAX_T))
    logits1, k_cache, v_cache = fwd(params, input_ids, k_cache, v_cache,
                                    mask1, jnp.int32(PAST))

    # decode step 2: same compiled kernel, cache reused in place
    past2 = PAST + S
    ids2 = jax.random.randint(jax.random.PRNGKey(1), (B, S), 0, VOCAB, dtype=jnp.int32)
    mask2 = jnp.broadcast_to(
        (jnp.arange(MAX_T)[None, :] < past2 + S).astype(jnp.float32), (B, MAX_T))
    logits2, k_cache, v_cache = fwd(params, ids2, k_cache, v_cache,
                                    mask2, jnp.int32(past2))

    jax.block_until_ready((logits1, logits2, k_cache, v_cache))

    assert logits1.shape == (B, S, VOCAB) and logits2.shape == (B, S, VOCAB)
    presents = slabs_to_hf_tuple(k_cache, v_cache)   # HF tuple, converted once
    assert presents[0][0].shape == (B, N_HEAD, MAX_T, D_HEAD)
    assert bool(jnp.isfinite(logits1).all()) and bool(jnp.isfinite(logits2).all())
    print("KERNEL_OK")
</pallas_src>

<mosaic_0001>
module attributes {stable_mosaic.version = 11 : i64} {
  func.func @_fused_decoder_kernel(%arg0: i32, %arg1: memref<1x8x32xf32, #tpu.memory_space<vmem>>, %arg2: memref<1x8x128xf32, #tpu.memory_space<vmem>>, %arg3: memref<128x8xbf16, #tpu.memory_space<vmem>>, %arg4: memref<128x1xf32, #tpu.memory_space<vmem>>, %arg5: memref<1x2x2x128x16xf32, #tpu.memory_space<vmem>>, %arg6: memref<1x2x2x128x16xf32, #tpu.memory_space<vmem>>, %arg7: memref<2x1x32xf32, #tpu.memory_space<vmem>>, %arg8: memref<2x1x32xf32, #tpu.memory_space<vmem>>, %arg9: memref<2x6x32x16xbf16, #tpu.memory_space<vmem>>, %arg10: memref<2x6x1x16xf32, #tpu.memory_space<vmem>>, %arg11: memref<2x2x16x32xbf16, #tpu.memory_space<vmem>>, %arg12: memref<2x1x32xf32, #tpu.memory_space<vmem>>, %arg13: memref<2x1x32xf32, #tpu.memory_space<vmem>>, %arg14: memref<2x1x32xf32, #tpu.memory_space<vmem>>, %arg15: memref<2x32x128xbf16, #tpu.memory_space<vmem>>, %arg16: memref<2x1x128xf32, #tpu.memory_space<vmem>>, %arg17: memref<2x128x32xbf16, #tpu.memory_space<vmem>>, %arg18: memref<2x1x32xf32, #tpu.memory_space<vmem>>, %arg19: memref<1x32xf32, #tpu.memory_space<vmem>>, %arg20: memref<1x32xf32, #tpu.memory_space<vmem>>, %arg21: memref<32x128xbf16, #tpu.memory_space<vmem>>, %arg22: memref<1x8x128xf32, #tpu.memory_space<vmem>>, %arg23: memref<1x2x2x128x16xf32, #tpu.memory_space<vmem>>, %arg24: memref<1x2x2x128x16xf32, #tpu.memory_space<vmem>>) attributes {dimension_semantics = [#tpu.dimension_semantics<parallel>], iteration_bounds = array<i64: 2>, scalar_prefetch = 0 : i64, scratch_operands = 0 : i64, tpu.core_type = #tpu.core_type<tc>, window_params = [{transform_indices = @transform_0, window_bounds = array<i64: 1, 8, 32>}, {transform_indices = @transform_1, window_bounds = array<i64: 1, 8, 128>}, {pipeline_mode = #tpu.pipeline_mode<synchronous>, transform_indices = @transform_2, window_bounds = array<i64: 128, 8>}, {pipeline_mode = #tpu.pipeline_mode<synchronous>, transform_indices = @transform_3, window_bounds = array<i64: 128, 1>}, {transform_indices = @transform_4, window_bounds = array<i64: 1, 2, 2, 128, 16>}, {transform_indices = @transform_5, window_bounds = array<i64: 1, 2, 2, 128, 16>}, {pipeline_mode = #tpu.pipeline_mode<synchronous>, transform_indices = @transform_6, window_bounds = array<i64: 2, 1, 32>}, {pipeline_mode = #tpu.pipeline_mode<synchronous>, transform_indices = @transform_7, window_bounds = array<i64: 2, 1, 32>}, {pipeline_mode = #tpu.pipeline_mode<synchronous>, transform_indices = @transform_8, window_bounds = array<i64: 2, 6, 32, 16>}, {pipeline_mode = #tpu.pipeline_mode<synchronous>, transform_indices = @transform_9, window_bounds = array<i64: 2, 6, 1, 16>}, {pipeline_mode = #tpu.pipeline_mode<synchronous>, transform_indices = @transform_10, window_bounds = array<i64: 2, 2, 16, 32>}, {pipeline_mode = #tpu.pipeline_mode<synchronous>, transform_indices = @transform_11, window_bounds = array<i64: 2, 1, 32>}, {pipeline_mode = #tpu.pipeline_mode<synchronous>, transform_indices = @transform_12, window_bounds = array<i64: 2, 1, 32>}, {pipeline_mode = #tpu.pipeline_mode<synchronous>, transform_indices = @transform_13, window_bounds = array<i64: 2, 1, 32>}, {pipeline_mode = #tpu.pipeline_mode<synchronous>, transform_indices = @transform_14, window_bounds = array<i64: 2, 32, 128>}, {pipeline_mode = #tpu.pipeline_mode<synchronous>, transform_indices = @transform_15, window_bounds = array<i64: 2, 1, 128>}, {pipeline_mode = #tpu.pipeline_mode<synchronous>, transform_indices = @transform_16, window_bounds = array<i64: 2, 128, 32>}, {pipeline_mode = #tpu.pipeline_mode<synchronous>, transform_indices = @transform_17, window_bounds = array<i64: 2, 1, 32>}, {pipeline_mode = #tpu.pipeline_mode<synchronous>, transform_indices = @transform_18, window_bounds = array<i64: 1, 32>}, {pipeline_mode = #tpu.pipeline_mode<synchronous>, transform_indices = @transform_19, window_bounds = array<i64: 1, 32>}, {pipeline_mode = #tpu.pipeline_mode<synchronous>, transform_indices = @transform_20, window_bounds = array<i64: 32, 128>}, {transform_indices = @transform_21, window_bounds = array<i64: 1, 8, 128>}, {transform_indices = @transform_22, window_bounds = array<i64: 1, 2, 2, 128, 16>}, {transform_indices = @transform_23, window_bounds = array<i64: 1, 2, 2, 128, 16>}]} {
    %c0 = arith.constant 0 : index
    %c0_0 = arith.constant 0 : index
    %c0_1 = arith.constant 0 : index
    %0 = vector.load %arg1[%c0, %c0_0, %c0_1] : memref<1x8x32xf32, #tpu.memory_space<vmem>>, vector<1x8x32xf32>
    %1 = vector.shape_cast %0 : vector<1x8x32xf32> to vector<8x32xf32>
    %c0_2 = arith.constant 0 : index
    %c0_3 = arith.constant 0 : index
    %c0_4 = arith.constant 0 : index
    %2 = vector.load %arg2[%c0_2, %c0_3, %c0_4] : memref<1x8x128xf32, #tpu.memory_space<vmem>>, vector<1x8x128xf32>
    %3 = vector.shape_cast %2 : vector<1x8x128xf32> to vector<8x128xf32>
    %c0_5 = arith.constant 0 : index
    %c0_6 = arith.constant 0 : index
    %4 = vector.load %arg3[%c0_5, %c0_6] : memref<128x8xbf16, #tpu.memory_space<vmem>>, vector<128x8xbf16>
    %5 = vector.shape_cast %4 : vector<128x8xbf16> to vector<1x128x8xbf16>
    %6 = vector.broadcast %5 : vector<1x128x8xbf16> to vector<2x128x8xbf16>
    %c0_7 = arith.constant 0 : index
    %c0_8 = arith.constant 0 : index
    %7 = vector.load %arg4[%c0_7, %c0_8] : memref<128x1xf32, #tpu.memory_space<vmem>>, vector<128x1xf32>
    %cst = arith.constant 5.000000e-01 : f32
    %8 = vector.broadcast %cst : f32 to vector<128x1xf32>
    %9 = arith.cmpf ogt, %7, %8 : vector<128x1xf32>
    %c0_9 = arith.constant 0 : index
    %c0_10 = arith.constant 0 : index
    %c0_11 = arith.constant 0 : index
    %10 = vector.load %arg7[%c0_9, %c0_10, %c0_11] : memref<2x1x32xf32, #tpu.memory_space<vmem>>, vector<1x1x32xf32>
    %11 = vector.shape_cast %10 : vector<1x1x32xf32> to vector<1x32xf32>
    %c0_12 = arith.constant 0 : index
    %c0_13 = arith.constant 0 : index
    %c0_14 = arith.constant 0 : index
    %12 = vector.load %arg8[%c0_12, %c0_13, %c0_14] : memref<2x1x32xf32, #tpu.memory_space<vmem>>, vector<1x1x32xf32>
    %13 = vector.shape_cast %12 : vector<1x1x32xf32> to vector<1x32xf32>
    %cst_15 = arith.constant dense<0.000000e+00> : vector<8xf32>
    %14 = vector.multi_reduction <add>, %1, %cst_15 [1] : vector<8x32xf32> to vector<8xf32>
    %15 = vector.shape_cast %14 : vector<8xf32> to vector<8x1xf32>
    %cst_16 = arith.constant 3.200000e+01 : f32
    %16 = vector.broadcast %cst_16 : f32 to vector<8x1xf32>
    %17 = arith.divf %15, %16 : vector<8x1xf32>
    %18 = vector.broadcast %17 : vector<8x1xf32> to vector<8x32xf32>
    %19 = arith.subf %1, %18 : vector<8x32xf32>
    %20 = arith.mulf %19, %19 : vector<8x32xf32>
    %cst_17 = arith.constant dense<0.000000e+00> : vector<8xf32>
    %21 = vector.multi_reduction <add>, %20, %cst_17 [1] : vector<8x32xf32> to vector<8xf32>
    %22 = vector.shape_cast %21 : vector<8xf32> to vector<8x1xf32>
    %cst_18 = arith.constant 3.200000e+01 : f32
    %23 = vector.broadcast %cst_18 : f32 to vector<8x1xf32>
    %24 = arith.divf %22, %23 : vector<8x1xf32>
    %25 = vector.broadcast %17 : vector<8x1xf32> to vector<8x32xf32>
    %26 = arith.subf %1, %25 : vector<8x32xf32>
    %cst_19 = arith.constant 9.99999974E-6 : f32
    %27 = vector.broadcast %cst_19 : f32 to vector<8x1xf32>
    %28 = arith.addf %24, %27 : vector<8x1xf32>
    %29 = math.rsqrt %28 : vector<8x1xf32>
    %30 = vector.broadcast %29 : vector<8x1xf32> to vector<8x32xf32>
    %31 = arith.mulf %26, %30 : vector<8x32xf32>
    %32 = vector.broadcast %11 : vector<1x32xf32> to vector<8x32xf32>
    %33 = arith.mulf %31, %32 : vector<8x32xf32>
    %34 = vector.broadcast %13 : vector<1x32xf32> to vector<8x32xf32>
    %35 = arith.addf %33, %34 : vector<8x32xf32>
    %36 = arith.truncf %35 : vector<8x32xf32> to vector<8x32xbf16>
    %37 = vector.shape_cast %36 : vector<8x32xbf16> to vector<1x8x32xbf16>
    %38 = vector.broadcast %37 : vector<1x8x32xbf16> to vector<6x8x32xbf16>
    %c0_20 = arith.constant 0 : index
    %c0_21 = arith.constant 0 : index
    %c0_22 = arith.constant 0 : index
    %c0_23 = arith.constant 0 : index
    %39 = vector.load %arg9[%c0_20, %c0_21, %c0_22, %c0_23] : memref<2x6x32x16xbf16, #tpu.memory_space<vmem>>, vector<1x6x32x16xbf16>
    %40 = vector.shape_cast %39 : vector<1x6x32x16xbf16> to vector<6x32x16xbf16>
    "tpu.trace_start"() <{level = 10 : i32, message = "gsd,gdf->gsf"}> : () -> ()
    %cst_24 = arith.constant dense<0.000000e+00> : vector<6x8x16xf32>
    %41 = tpu.matmul %38, %40, %cst_24 {dimension_numbers = #tpu.dot_dimension_numbers<[2], [1], [1], [2], [0, 0, 0, 1, 1, 2], [0], [0]>} : vector<6x8x32xbf16>, vector<6x32x16xbf16>, vector<6x8x16xf32> -> vector<6x8x16xf32>
    "tpu.trace_stop"() : () -> ()
    %c0_25 = arith.constant 0 : index
    %c0_26 = arith.constant 0 : index
    %c0_27 = arith.constant 0 : index
    %c0_28 = arith.constant 0 : index
    %42 = vector.load %arg10[%c0_25, %c0_26, %c0_27, %c0_28] : memref<2x6x1x16xf32, #tpu.memory_space<vmem>>, vector<1x6x1x16xf32>
    %43 = vector.shape_cast %42 : vector<1x6x1x16xf32> to vector<6x1x16xf32>
    %44 = vector.broadcast %43 : vector<6x1x16xf32> to vector<6x8x16xf32>
    %45 = arith.addf %41, %44 : vector<6x8x16xf32>
    %46 = vector.extract_strided_slice %45 {offsets = [0, 0, 0], sizes = [2, 8, 16], strides = [1, 1, 1]} : vector<6x8x16xf32> to vector<2x8x16xf32>
    %47 = vector.extract_strided_slice %45 {offsets = [2, 0, 0], sizes = [2, 8, 16], strides = [1, 1, 1]} : vector<6x8x16xf32> to vector<2x8x16xf32>
    %48 = vector.extract_strided_slice %45 {offsets = [4, 0, 0], sizes = [2, 8, 16], strides = [1, 1, 1]} : vector<6x8x16xf32> to vector<2x8x16xf32>
    %49 = arith.truncf %47 : vector<2x8x16xf32> to vector<2x8x16xbf16>
    "tpu.trace_start"() <{level = 10 : i32, message = "hts,hsd->htd"}> : () -> ()
    %cst_29 = arith.constant dense<0.000000e+00> : vector<2x128x16xf32>
    %50 = tpu.matmul %6, %49, %cst_29 {dimension_numbers = #tpu.dot_dimension_numbers<[2], [1], [1], [2], [0, 0, 0, 1, 1, 2], [0], [0]>} : vector<2x128x8xbf16>, vector<2x8x16xbf16>, vector<2x128x16xf32> -> vector<2x128x16xf32>
    "tpu.trace_stop"() : () -> ()
    %c0_30 = arith.constant 0 : index
    %c0_31 = arith.constant 0 : index
    %c0_32 = arith.constant 0 : index
    %c0_33 = arith.constant 0 : index
    %c0_34 = arith.constant 0 : index
    %51 = vector.load %arg5[%c0_30, %c0_31, %c0_32, %c0_33, %c0_34] : memref<1x2x2x128x16xf32, #tpu.memory_space<vmem>>, vector<1x1x2x128x16xf32>
    %52 = vector.shape_cast %51 : vector<1x1x2x128x16xf32> to vector<2x128x16xf32>
    %53 = vector.shape_cast %9 : vector<128x1xi1> to vector<1x128x1xi1>
    %54 = vector.broadcast %53 : vector<1x128x1xi1> to vector<2x128x16xi1>
    %55 = arith.select %54, %50, %52 : vector<2x128x16xi1>, vector<2x128x16xf32>
    %56 = arith.truncf %48 : vector<2x8x16xf32> to vector<2x8x16xbf16>
    "tpu.trace_start"() <{level = 10 : i32, message = "hts,hsd->htd"}> : () -> ()
    %cst_35 = arith.constant dense<0.000000e+00> : vector<2x128x16xf32>
    %57 = tpu.matmul %6, %56, %cst_35 {dimension_numbers = #tpu.dot_dimension_numbers<[2], [1], [1], [2], [0, 0, 0, 1, 1, 2], [0], [0]>} : vector<2x128x8xbf16>, vector<2x8x16xbf16>, vector<2x128x16xf32> -> vector<2x128x16xf32>
    "tpu.trace_stop"() : () -> ()
    %c0_36 = arith.constant 0 : index
    %c0_37 = arith.constant 0 : index
    %c0_38 = arith.constant 0 : index
    %c0_39 = arith.constant 0 : index
    %c0_40 = arith.constant 0 : index
    %58 = vector.load %arg6[%c0_36, %c0_37, %c0_38, %c0_39, %c0_40] : memref<1x2x2x128x16xf32, #tpu.memory_space<vmem>>, vector<1x1x2x128x16xf32>
    %59 = vector.shape_cast %58 : vector<1x1x2x128x16xf32> to vector<2x128x16xf32>
    %60 = vector.shape_cast %9 : vector<128x1xi1> to vector<1x128x1xi1>
    %61 = vector.broadcast %60 : vector<1x128x1xi1> to vector<2x128x16xi1>
    %62 = arith.select %61, %57, %59 : vector<2x128x16xi1>, vector<2x128x16xf32>
    %c0_41 = arith.constant 0 : index
    %c0_42 = arith.constant 0 : index
    %c0_43 = arith.constant 0 : index
    %c0_44 = arith.constant 0 : index
    %c0_45 = arith.constant 0 : index
    %63 = vector.load %arg23[%c0_41, %c0_42, %c0_43, %c0_44, %c0_45] : memref<1x2x2x128x16xf32, #tpu.memory_space<vmem>>, vector<1x1x2x128x16xf32>
    %64 = vector.shape_cast %63 : vector<1x1x2x128x16xf32> to vector<2x128x16xf32>
    %65 = vector.shape_cast %55 : vector<2x128x16xf32> to vector<1x1x2x128x16xf32>
    tpu.vector_store %arg23[%c0_41, %c0_42, %c0_43, %c0_44, %c0_45], %65 {strides = array<i32>} : memref<1x2x2x128x16xf32, #tpu.memory_space<vmem>>, vector<1x1x2x128x16xf32>,
    %c0_46 = arith.constant 0 : index
    %c0_47 = arith.constant 0 : index
    %c0_48 = arith.constant 0 : index
    %c0_49 = arith.constant 0 : index
    %c0_50 = arith.constant 0 : index
    %66 = vector.load %arg24[%c0_46, %c0_47, %c0_48, %c0_49, %c0_50] : memref<1x2x2x128x16xf32, #tpu.memory_space<vmem>>, vector<1x1x2x128x16xf32>
    %67 = vector.shape_cast %66 : vector<1x1x2x128x16xf32> to vector<2x128x16xf32>
    %68 = vector.shape_cast %62 : vector<2x128x16xf32> to vector<1x1x2x128x16xf32>
    tpu.vector_store %arg24[%c0_46, %c0_47, %c0_48, %c0_49, %c0_50], %68 {strides = array<i32>} : memref<1x2x2x128x16xf32, #tpu.memory_space<vmem>>, vector<1x1x2x128x16xf32>,
    %69 = arith.truncf %46 : vector<2x8x16xf32> to vector<2x8x16xbf16>
    %70 = arith.truncf %55 : vector<2x128x16xf32> to vector<2x128x16xbf16>
    "tpu.trace_start"() <{level = 10 : i32, message = "hsd,htd->hst"}> : () -> ()
    %cst_51 = arith.constant dense<0.000000e+00> : vector<2x8x128xf32>
    %71 = tpu.matmul %69, %70, %cst_51 {dimension_numbers = #tpu.dot_dimension_numbers<[2], [2], [1], [1], [0, 0, 0, 1, 1, 1], [0], [0]>} : vector<2x8x16xbf16>, vector<2x128x16xbf16>, vector<2x8x128xf32> -> vector<2x8x128xf32>
    "tpu.trace_stop"() : () -> ()
    %72 = vector.shape_cast %3 : vector<8x128xf32> to vector<1x8x128xf32>
    %73 = vector.broadcast %72 : vector<1x8x128xf32> to vector<2x8x128xf32>
    %74 = arith.addf %71, %73 : vector<2x8x128xf32>
    %cst_52 = arith.constant dense<0xFF800000> : vector<2x8xf32>
    %75 = vector.multi_reduction <maximumf>, %74, %cst_52 [2] : vector<2x8x128xf32> to vector<2x8xf32>
    %76 = vector.shape_cast %75 : vector<2x8xf32> to vector<2x8x1xf32>
    %77 = vector.broadcast %76 : vector<2x8x1xf32> to vector<2x8x128xf32>
    %78 = arith.subf %74, %77 : vector<2x8x128xf32>
    %79 = math.exp %78 : vector<2x8x128xf32>
    %cst_53 = arith.constant dense<0.000000e+00> : vector<2x8xf32>
    %80 = vector.multi_reduction <add>, %79, %cst_53 [2] : vector<2x8x128xf32> to vector<2x8xf32>
    %81 = vector.shape_cast %80 : vector<2x8xf32> to vector<2x8x1xf32>
    %82 = tpu.reciprocal %81 {approx = true} : vector<2x8x1xf32> -> vector<2x8x1xf32>
    %83 = vector.broadcast %82 : vector<2x8x1xf32> to vector<2x8x128xf32>
    %84 = arith.mulf %79, %83 : vector<2x8x128xf32>
    %85 = arith.truncf %84 : vector<2x8x128xf32> to vector<2x8x128xbf16>
    %86 = arith.truncf %62 : vector<2x128x16xf32> to vector<2x128x16xbf16>
    "tpu.trace_start"() <{level = 10 : i32, message = "hst,htd->hsd"}> : () -> ()
    %cst_54 = arith.constant dense<0.000000e+00> : vector<2x8x16xf32>
    %87 = tpu.matmul %85, %86, %cst_54 {dimension_numbers = #tpu.dot_dimension_numbers<[2], [1], [1], [2], [0, 0, 0, 1, 1, 2], [0], [0]>} : vector<2x8x128xbf16>, vector<2x128x16xbf16>, vector<2x8x16xf32> -> vector<2x8x16xf32>
    "tpu.trace_stop"() : () -> ()
    %88 = arith.truncf %87 : vector<2x8x16xf32> to vector<2x8x16xbf16>
    %c0_55 = arith.constant 0 : index
    %c0_56 = arith.constant 0 : index
    %c0_57 = arith.constant 0 : index
    %c0_58 = arith.constant 0 : index
    %89 = vector.load %arg11[%c0_55, %c0_56, %c0_57, %c0_58] : memref<2x2x16x32xbf16, #tpu.memory_space<vmem>>, vector<1x2x16x32xbf16>
    %90 = vector.shape_cast %89 : vector<1x2x16x32xbf16> to vector<2x16x32xbf16>
    "tpu.trace_start"() <{level = 10 : i32, message = "hsd,hdf->hsf"}> : () -> ()
    %cst_59 = arith.constant dense<0.000000e+00> : vector<2x8x32xf32>
    %91 = tpu.matmul %88, %90, %cst_59 {dimension_numbers = #tpu.dot_dimension_numbers<[2], [1], [1], [2], [0, 0, 0, 1, 1, 2], [0], [0]>} : vector<2x8x16xbf16>, vector<2x16x32xbf16>, vector<2x8x32xf32> -> vector<2x8x32xf32>
    "tpu.trace_stop"() : () -> ()
    %cst_60 = arith.constant dense<0.000000e+00> : vector<8x32xf32>
    %92 = vector.multi_reduction <add>, %91, %cst_60 [0] : vector<2x8x32xf32> to vector<8x32xf32>
    %93 = arith.addf %1, %92 : vector<8x32xf32>
    %c0_61 = arith.constant 0 : index
    %c0_62 = arith.constant 0 : index
    %c0_63 = arith.constant 0 : index
    %94 = vector.load %arg12[%c0_61, %c0_62, %c0_63] : memref<2x1x32xf32, #tpu.memory_space<vmem>>, vector<1x1x32xf32>
    %95 = vector.shape_cast %94 : vector<1x1x32xf32> to vector<1x32xf32>
    %96 = vector.broadcast %95 : vector<1x32xf32> to vector<8x32xf32>
    %97 = arith.addf %93, %96 : vector<8x32xf32>
    %c0_64 = arith.constant 0 : index
    %c0_65 = arith.constant 0 : index
    %c0_66 = arith.constant 0 : index
    %98 = vector.load %arg13[%c0_64, %c0_65, %c0_66] : memref<2x1x32xf32, #tpu.memory_space<vmem>>, vector<1x1x32xf32>
    %99 = vector.shape_cast %98 : vector<1x1x32xf32> to vector<1x32xf32>
    %c0_67 = arith.constant 0 : index
    %c0_68 = arith.constant 0 : index
    %c0_69 = arith.constant 0 : index
    %100 = vector.load %arg14[%c0_67, %c0_68, %c0_69] : memref<2x1x32xf32, #tpu.memory_space<vmem>>, vector<1x1x32xf32>
    %101 = vector.shape_cast %100 : vector<1x1x32xf32> to vector<1x32xf32>
    %cst_70 = arith.constant dense<0.000000e+00> : vector<8xf32>
    %102 = vector.multi_reduction <add>, %97, %cst_70 [1] : vector<8x32xf32> to vector<8xf32>
    %103 = vector.shape_cast %102 : vector<8xf32> to vector<8x1xf32>
    %cst_71 = arith.constant 3.200000e+01 : f32
    %104 = vector.broadcast %cst_71 : f32 to vector<8x1xf32>
    %105 = arith.divf %103, %104 : vector<8x1xf32>
    %106 = vector.broadcast %105 : vector<8x1xf32> to vector<8x32xf32>
    %107 = arith.subf %97, %106 : vector<8x32xf32>
    %108 = arith.mulf %107, %107 : vector<8x32xf32>
    %cst_72 = arith.constant dense<0.000000e+00> : vector<8xf32>
    %109 = vector.multi_reduction <add>, %108, %cst_72 [1] : vector<8x32xf32> to vector<8xf32>
    %110 = vector.shape_cast %109 : vector<8xf32> to vector<8x1xf32>
    %cst_73 = arith.constant 3.200000e+01 : f32
    %111 = vector.broadcast %cst_73 : f32 to vector<8x1xf32>
    %112 = arith.divf %110, %111 : vector<8x1xf32>
    %113 = vector.broadcast %105 : vector<8x1xf32> to vector<8x32xf32>
    %114 = arith.subf %97, %113 : vector<8x32xf32>
    %cst_74 = arith.constant 9.99999974E-6 : f32
    %115 = vector.broadcast %cst_74 : f32 to vector<8x1xf32>
    %116 = arith.addf %112, %115 : vector<8x1xf32>
    %117 = math.rsqrt %116 : vector<8x1xf32>
    %118 = vector.broadcast %117 : vector<8x1xf32> to vector<8x32xf32>
    %119 = arith.mulf %114, %118 : vector<8x32xf32>
    %120 = vector.broadcast %99 : vector<1x32xf32> to vector<8x32xf32>
    %121 = arith.mulf %119, %120 : vector<8x32xf32>
    %122 = vector.broadcast %101 : vector<1x32xf32> to vector<8x32xf32>
    %123 = arith.addf %121, %122 : vector<8x32xf32>
    %124 = arith.truncf %123 : vector<8x32xf32> to vector<8x32xbf16>
    %c0_75 = arith.constant 0 : index
    %c0_76 = arith.constant 0 : index
    %c0_77 = arith.constant 0 : index
    %125 = vector.load %arg15[%c0_75, %c0_76, %c0_77] : memref<2x32x128xbf16, #tpu.memory_space<vmem>>, vector<1x32x128xbf16>
    %126 = vector.shape_cast %125 : vector<1x32x128xbf16> to vector<32x128xbf16>
    %cst_78 = arith.constant dense<0.000000e+00> : vector<8x128xf32>
    %127 = tpu.matmul %124, %126, %cst_78 {dimension_numbers = #tpu.dot_dimension_numbers<[1], [0], [0], [1], [0, 0, 1, 1], [], []>} : vector<8x32xbf16>, vector<32x128xbf16>, vector<8x128xf32> -> vector<8x128xf32>
    %c0_79 = arith.constant 0 : index
    %c0_80 = arith.constant 0 : index
    %c0_81 = arith.constant 0 : index
    %128 = vector.load %arg16[%c0_79, %c0_80, %c0_81] : memref<2x1x128xf32, #tpu.memory_space<vmem>>, vector<1x1x128xf32>
    %129 = vector.shape_cast %128 : vector<1x1x128xf32> to vector<1x128xf32>
    %130 = vector.broadcast %129 : vector<1x128xf32> to vector<8x128xf32>
    %131 = arith.addf %127, %130 : vector<8x128xf32>
    %cst_82 = arith.constant 5.000000e-01 : f32
    %132 = vector.broadcast %cst_82 : f32 to vector<8x128xf32>
    %133 = arith.mulf %132, %131 : vector<8x128xf32>
    %cst_83 = arith.constant 4.471500e-02 : f32
    %134 = vector.broadcast %cst_83 : f32 to vector<8x128xf32>
    %135 = arith.mulf %134, %131 : vector<8x128xf32>
    %136 = arith.mulf %135, %131 : vector<8x128xf32>
    %137 = arith.mulf %136, %131 : vector<8x128xf32>
    %138 = arith.addf %131, %137 : vector<8x128xf32>
    %cst_84 = arith.constant 0.797884583 : f32
    %139 = vector.broadcast %cst_84 : f32 to vector<8x128xf32>
    %140 = arith.mulf %139, %138 : vector<8x128xf32>
    %141 = math.tanh %140 : vector<8x128xf32>
    %cst_85 = arith.constant 1.000000e+00 : f32
    %142 = vector.broadcast %cst_85 : f32 to vector<8x128xf32>
    %143 = arith.addf %142, %141 : vector<8x128xf32>
    %144 = arith.mulf %133, %143 : vector<8x128xf32>
    %145 = arith.truncf %144 : vector<8x128xf32> to vector<8x128xbf16>
    %c0_86 = arith.constant 0 : index
    %c0_87 = arith.constant 0 : index
    %c0_88 = arith.constant 0 : index
    %146 = vector.load %arg17[%c0_86, %c0_87, %c0_88] : memref<2x128x32xbf16, #tpu.memory_space<vmem>>, vector<1x128x32xbf16>
    %147 = vector.shape_cast %146 : vector<1x128x32xbf16> to vector<128x32xbf16>
    %cst_89 = arith.constant dense<0.000000e+00> : vector<8x32xf32>
    %148 = tpu.matmul %145, %147, %cst_89 {dimension_numbers = #tpu.dot_dimension_numbers<[1], [0], [0], [1], [0, 0, 1, 1], [], []>} : vector<8x128xbf16>, vector<128x32xbf16>, vector<8x32xf32> -> vector<8x32xf32>
    %149 = arith.addf %97, %148 : vector<8x32xf32>
    %c0_90 = arith.constant 0 : index
    %c0_91 = arith.constant 0 : index
    %c0_92 = arith.constant 0 : index
    %150 = vector.load %arg18[%c0_90, %c0_91, %c0_92] : memref<2x1x32xf32, #tpu.memory_space<vmem>>, vector<1x1x32xf32>
    %151 = vector.shape_cast %150 : vector<1x1x32xf32> to vector<1x32xf32>
    %152 = vector.broadcast %151 : vector<1x32xf32> to vector<8x32xf32>
    %153 = arith.addf %149, %152 : vector<8x32xf32>
    %c1 = arith.constant 1 : index
    %c0_93 = arith.constant 0 : index
    %c0_94 = arith.constant 0 : index
    %154 = vector.load %arg7[%c1, %c0_93, %c0_94] : memref<2x1x32xf32, #tpu.memory_space<vmem>>, vector<1x1x32xf32>
    %155 = vector.shape_cast %154 : vector<1x1x32xf32> to vector<1x32xf32>
    %c1_95 = arith.constant 1 : index
    %c0_96 = arith.constant 0 : index
    %c0_97 = arith.constant 0 : index
    %156 = vector.load %arg8[%c1_95, %c0_96, %c0_97] : memref<2x1x32xf32, #tpu.memory_space<vmem>>, vector<1x1x32xf32>
    %157 = vector.shape_cast %156 : vector<1x1x32xf32> to vector<1x32xf32>
    %cst_98 = arith.constant dense<0.000000e+00> : vector<8xf32>
    %158 = vector.multi_reduction <add>, %153, %cst_98 [1] : vector<8x32xf32> to vector<8xf32>
    %159 = vector.shape_cast %158 : vector<8xf32> to vector<8x1xf32>
    %cst_99 = arith.constant 3.200000e+01 : f32
    %160 = vector.broadcast %cst_99 : f32 to vector<8x1xf32>
    %161 = arith.divf %159, %160 : vector<8x1xf32>
    %162 = vector.broadcast %161 : vector<8x1xf32> to vector<8x32xf32>
    %163 = arith.subf %153, %162 : vector<8x32xf32>
    %164 = arith.mulf %163, %163 : vector<8x32xf32>
    %cst_100 = arith.constant dense<0.000000e+00> : vector<8xf32>
    %165 = vector.multi_reduction <add>, %164, %cst_100 [1] : vector<8x32xf32> to vector<8xf32>
    %166 = vector.shape_cast %165 : vector<8xf32> to vector<8x1xf32>
    %cst_101 = arith.constant 3.200000e+01 : f32
    %167 = vector.broadcast %cst_101 : f32 to vector<8x1xf32>
    %168 = arith.divf %166, %167 : vector<8x1xf32>
    %169 = vector.broadcast %161 : vector<8x1xf32> to vector<8x32xf32>
    %170 = arith.subf %153, %169 : vector<8x32xf32>
    %cst_102 = arith.constant 9.99999974E-6 : f32
    %171 = vector.broadcast %cst_102 : f32 to vector<8x1xf32>
    %172 = arith.addf %168, %171 : vector<8x1xf32>
    %173 = math.rsqrt %172 : vector<8x1xf32>
    %174 = vector.broadcast %173 : vector<8x1xf32> to vector<8x32xf32>
    %175 = arith.mulf %170, %174 : vector<8x32xf32>
    %176 = vector.broadcast %155 : vector<1x32xf32> to vector<8x32xf32>
    %177 = arith.mulf %175, %176 : vector<8x32xf32>
    %178 = vector.broadcast %157 : vector<1x32xf32> to vector<8x32xf32>
    %179 = arith.addf %177, %178 : vector<8x32xf32>
    %180 = arith.truncf %179 : vector<8x32xf32> to vector<8x32xbf16>
    %181 = vector.shape_cast %180 : vector<8x32xbf16> to vector<1x8x32xbf16>
    %182 = vector.broadcast %181 : vector<1x8x32xbf16> to vector<6x8x32xbf16>
    %c1_103 = arith.constant 1 : index
    %c0_104 = arith.constant 0 : index
    %c0_105 = arith.constant 0 : index
    %c0_106 = arith.constant 0 : index
    %183 = vector.load %arg9[%c1_103, %c0_104, %c0_105, %c0_106] : memref<2x6x32x16xbf16, #tpu.memory_space<vmem>>, vector<1x6x32x16xbf16>
    %184 = vector.shape_cast %183 : vector<1x6x32x16xbf16> to vector<6x32x16xbf16>
    "tpu.trace_start"() <{level = 10 : i32, message = "gsd,gdf->gsf"}> : () -> ()
    %cst_107 = arith.constant dense<0.000000e+00> : vector<6x8x16xf32>
    %185 = tpu.matmul %182, %184, %cst_107 {dimension_numbers = #tpu.dot_dimension_numbers<[2], [1], [1], [2], [0, 0, 0, 1, 1, 2], [0], [0]>} : vector<6x8x32xbf16>, vector<6x32x16xbf16>, vector<6x8x16xf32> -> vector<6x8x16xf32>
    "tpu.trace_stop"() : () -> ()
    %c1_108 = arith.constant 1 : index
    %c0_109 = arith.constant 0 : index
    %c0_110 = arith.constant 0 : index
    %c0_111 = arith.constant 0 : index
    %186 = vector.load %arg10[%c1_108, %c0_109, %c0_110, %c0_111] : memref<2x6x1x16xf32, #tpu.memory_space<vmem>>, vector<1x6x1x16xf32>
    %187 = vector.shape_cast %186 : vector<1x6x1x16xf32> to vector<6x1x16xf32>
    %188 = vector.broadcast %187 : vector<6x1x16xf32> to vector<6x8x16xf32>
    %189 = arith.addf %185, %188 : vector<6x8x16xf32>
    %190 = vector.extract_strided_slice %189 {offsets = [0, 0, 0], sizes = [2, 8, 16], strides = [1, 1, 1]} : vector<6x8x16xf32> to vector<2x8x16xf32>
    %191 = vector.extract_strided_slice %189 {offsets = [2, 0, 0], sizes = [2, 8, 16], strides = [1, 1, 1]} : vector<6x8x16xf32> to vector<2x8x16xf32>
    %192 = vector.extract_strided_slice %189 {offsets = [4, 0, 0], sizes = [2, 8, 16], strides = [1, 1, 1]} : vector<6x8x16xf32> to vector<2x8x16xf32>
    %193 = arith.truncf %191 : vector<2x8x16xf32> to vector<2x8x16xbf16>
    "tpu.trace_start"() <{level = 10 : i32, message = "hts,hsd->htd"}> : () -> ()
    %cst_112 = arith.constant dense<0.000000e+00> : vector<2x128x16xf32>
    %194 = tpu.matmul %6, %193, %cst_112 {dimension_numbers = #tpu.dot_dimension_numbers<[2], [1], [1], [2], [0, 0, 0, 1, 1, 2], [0], [0]>} : vector<2x128x8xbf16>, vector<2x8x16xbf16>, vector<2x128x16xf32> -> vector<2x128x16xf32>
    "tpu.trace_stop"() : () -> ()
    %c0_113 = arith.constant 0 : index
    %c1_114 = arith.constant 1 : index
    %c0_115 = arith.constant 0 : index
    %c0_116 = arith.constant 0 : index
    %c0_117 = arith.constant 0 : index
    %195 = vector.load %arg5[%c0_113, %c1_114, %c0_115, %c0_116, %c0_117] : memref<1x2x2x128x16xf32, #tpu.memory_space<vmem>>, vector<1x1x2x128x16xf32>
    %196 = vector.shape_cast %195 : vector<1x1x2x128x16xf32> to vector<2x128x16xf32>
    %197 = vector.shape_cast %9 : vector<128x1xi1> to vector<1x128x1xi1>
    %198 = vector.broadcast %197 : vector<1x128x1xi1> to vector<2x128x16xi1>
    %199 = arith.select %198, %194, %196 : vector<2x128x16xi1>, vector<2x128x16xf32>
    %200 = arith.truncf %192 : vector<2x8x16xf32> to vector<2x8x16xbf16>
    "tpu.trace_start"() <{level = 10 : i32, message = "hts,hsd->htd"}> : () -> ()
    %cst_118 = arith.constant dense<0.000000e+00> : vector<2x128x16xf32>
    %201 = tpu.matmul %6, %200, %cst_118 {dimension_numbers = #tpu.dot_dimension_numbers<[2], [1], [1], [2], [0, 0, 0, 1, 1, 2], [0], [0]>} : vector<2x128x8xbf16>, vector<2x8x16xbf16>, vector<2x128x16xf32> -> vector<2x128x16xf32>
    "tpu.trace_stop"() : () -> ()
    %c0_119 = arith.constant 0 : index
    %c1_120 = arith.constant 1 : index
    %c0_121 = arith.constant 0 : index
    %c0_122 = arith.constant 0 : index
    %c0_123 = arith.constant 0 : index
    %202 = vector.load %arg6[%c0_119, %c1_120, %c0_121, %c0_122, %c0_123] : memref<1x2x2x128x16xf32, #tpu.memory_space<vmem>>, vector<1x1x2x128x16xf32>
    %203 = vector.shape_cast %202 : vector<1x1x2x128x16xf32> to vector<2x128x16xf32>
    %204 = vector.shape_cast %9 : vector<128x1xi1> to vector<1x128x1xi1>
    %205 = vector.broadcast %204 : vector<1x128x1xi1> to vector<2x128x16xi1>
    %206 = arith.select %205, %201, %203 : vector<2x128x16xi1>, vector<2x128x16xf32>
    %c0_124 = arith.constant 0 : index
    %c1_125 = arith.constant 1 : index
    %c0_126 = arith.constant 0 : index
    %c0_127 = arith.constant 0 : index
    %c0_128 = arith.constant 0 : index
    %207 = vector.load %arg23[%c0_124, %c1_125, %c0_126, %c0_127, %c0_128] : memref<1x2x2x128x16xf32, #tpu.memory_space<vmem>>, vector<1x1x2x128x16xf32>
    %208 = vector.shape_cast %207 : vector<1x1x2x128x16xf32> to vector<2x128x16xf32>
    %209 = vector.shape_cast %199 : vector<2x128x16xf32> to vector<1x1x2x128x16xf32>
    tpu.vector_store %arg23[%c0_124, %c1_125, %c0_126, %c0_127, %c0_128], %209 {strides = array<i32>} : memref<1x2x2x128x16xf32, #tpu.memory_space<vmem>>, vector<1x1x2x128x16xf32>,
    %c0_129 = arith.constant 0 : index
    %c1_130 = arith.constant 1 : index
    %c0_131 = arith.constant 0 : index
    %c0_132 = arith.constant 0 : index
    %c0_133 = arith.constant 0 : index
    %210 = vector.load %arg24[%c0_129, %c1_130, %c0_131, %c0_132, %c0_133] : memref<1x2x2x128x16xf32, #tpu.memory_space<vmem>>, vector<1x1x2x128x16xf32>
    %211 = vector.shape_cast %210 : vector<1x1x2x128x16xf32> to vector<2x128x16xf32>
    %212 = vector.shape_cast %206 : vector<2x128x16xf32> to vector<1x1x2x128x16xf32>
    tpu.vector_store %arg24[%c0_129, %c1_130, %c0_131, %c0_132, %c0_133], %212 {strides = array<i32>} : memref<1x2x2x128x16xf32, #tpu.memory_space<vmem>>, vector<1x1x2x128x16xf32>,
    %213 = arith.truncf %190 : vector<2x8x16xf32> to vector<2x8x16xbf16>
    %214 = arith.truncf %199 : vector<2x128x16xf32> to vector<2x128x16xbf16>
    "tpu.trace_start"() <{level = 10 : i32, message = "hsd,htd->hst"}> : () -> ()
    %cst_134 = arith.constant dense<0.000000e+00> : vector<2x8x128xf32>
    %215 = tpu.matmul %213, %214, %cst_134 {dimension_numbers = #tpu.dot_dimension_numbers<[2], [2], [1], [1], [0, 0, 0, 1, 1, 1], [0], [0]>} : vector<2x8x16xbf16>, vector<2x128x16xbf16>, vector<2x8x128xf32> -> vector<2x8x128xf32>
    "tpu.trace_stop"() : () -> ()
    %216 = vector.shape_cast %3 : vector<8x128xf32> to vector<1x8x128xf32>
    %217 = vector.broadcast %216 : vector<1x8x128xf32> to vector<2x8x128xf32>
    %218 = arith.addf %215, %217 : vector<2x8x128xf32>
    %cst_135 = arith.constant dense<0xFF800000> : vector<2x8xf32>
    %219 = vector.multi_reduction <maximumf>, %218, %cst_135 [2] : vector<2x8x128xf32> to vector<2x8xf32>
    %220 = vector.shape_cast %219 : vector<2x8xf32> to vector<2x8x1xf32>
    %221 = vector.broadcast %220 : vector<2x8x1xf32> to vector<2x8x128xf32>
    %222 = arith.subf %218, %221 : vector<2x8x128xf32>
    %223 = math.exp %222 : vector<2x8x128xf32>
    %cst_136 = arith.constant dense<0.000000e+00> : vector<2x8xf32>
    %224 = vector.multi_reduction <add>, %223, %cst_136 [2] : vector<2x8x128xf32> to vector<2x8xf32>
    %225 = vector.shape_cast %224 : vector<2x8xf32> to vector<2x8x1xf32>
    %226 = tpu.reciprocal %225 {approx = true} : vector<2x8x1xf32> -> vector<2x8x1xf32>
    %227 = vector.broadcast %226 : vector<2x8x1xf32> to vector<2x8x128xf32>
    %228 = arith.mulf %223, %227 : vector<2x8x128xf32>
    %229 = arith.truncf %228 : vector<2x8x128xf32> to vector<2x8x128xbf16>
    %230 = arith.truncf %206 : vector<2x128x16xf32> to vector<2x128x16xbf16>
    "tpu.trace_start"() <{level = 10 : i32, message = "hst,htd->hsd"}> : () -> ()
    %cst_137 = arith.constant dense<0.000000e+00> : vector<2x8x16xf32>
    %231 = tpu.matmul %229, %230, %cst_137 {dimension_numbers = #tpu.dot_dimension_numbers<[2], [1], [1], [2], [0, 0, 0, 1, 1, 2], [0], [0]>} : vector<2x8x128xbf16>, vector<2x128x16xbf16>, vector<2x8x16xf32> -> vector<2x8x16xf32>
    "tpu.trace_stop"() : () -> ()
    %232 = arith.truncf %231 : vector<2x8x16xf32> to vector<2x8x16xbf16>
    %c1_138 = arith.constant 1 : index
    %c0_139 = arith.constant 0 : index
    %c0_140 = arith.constant 0 : index
    %c0_141 = arith.constant 0 : index
    %233 = vector.load %arg11[%c1_138, %c0_139, %c0_140, %c0_141] : memref<2x2x16x32xbf16, #tpu.memory_space<vmem>>, vector<1x2x16x32xbf16>
    %234 = vector.shape_cast %233 : vector<1x2x16x32xbf16> to vector<2x16x32xbf16>
    "tpu.trace_start"() <{level = 10 : i32, message = "hsd,hdf->hsf"}> : () -> ()
    %cst_142 = arith.constant dense<0.000000e+00> : vector<2x8x32xf32>
    %235 = tpu.matmul %232, %234, %cst_142 {dimension_numbers = #tpu.dot_dimension_numbers<[2], [1], [1], [2], [0, 0, 0, 1, 1, 2], [0], [0]>} : vector<2x8x16xbf16>, vector<2x16x32xbf16>, vector<2x8x32xf32> -> vector<2x8x32xf32>
    "tpu.trace_stop"() : () -> ()
    %cst_143 = arith.constant dense<0.000000e+00> : vector<8x32xf32>
    %236 = vector.multi_reduction <add>, %235, %cst_143 [0] : vector<2x8x32xf32> to vector<8x32xf32>
    %237 = arith.addf %153, %236 : vector<8x32xf32>
    %c1_144 = arith.constant 1 : index
    %c0_145 = arith.constant 0 : index
    %c0_146 = arith.constant 0 : index
    %238 = vector.load %arg12[%c1_144, %c0_145, %c0_146] : memref<2x1x32xf32, #tpu.memory_space<vmem>>, vector<1x1x32xf32>
    %239 = vector.shape_cast %238 : vector<1x1x32xf32> to vector<1x32xf32>
    %240 = vector.broadcast %239 : vector<1x32xf32> to vector<8x32xf32>
    %241 = arith.addf %237, %240 : vector<8x32xf32>
    %c1_147 = arith.constant 1 : index
    %c0_148 = arith.constant 0 : index
    %c0_149 = arith.constant 0 : index
    %242 = vector.load %arg13[%c1_147, %c0_148, %c0_149] : memref<2x1x32xf32, #tpu.memory_space<vmem>>, vector<1x1x32xf32>
    %243 = vector.shape_cast %242 : vector<1x1x32xf32> to vector<1x32xf32>
    %c1_150 = arith.constant 1 : index
    %c0_151 = arith.constant 0 : index
    %c0_152 = arith.constant 0 : index
    %244 = vector.load %arg14[%c1_150, %c0_151, %c0_152] : memref<2x1x32xf32, #tpu.memory_space<vmem>>, vector<1x1x32xf32>
    %245 = vector.shape_cast %244 : vector<1x1x32xf32> to vector<1x32xf32>
    %cst_153 = arith.constant dense<0.000000e+00> : vector<8xf32>
    %246 = vector.multi_reduction <add>, %241, %cst_153 [1] : vector<8x32xf32> to vector<8xf32>
    %247 = vector.shape_cast %246 : vector<8xf32> to vector<8x1xf32>
    %cst_154 = arith.constant 3.200000e+01 : f32
    %248 = vector.broadcast %cst_154 : f32 to vector<8x1xf32>
    %249 = arith.divf %247, %248 : vector<8x1xf32>
    %250 = vector.broadcast %249 : vector<8x1xf32> to vector<8x32xf32>
    %251 = arith.subf %241, %250 : vector<8x32xf32>
    %252 = arith.mulf %251, %251 : vector<8x32xf32>
    %cst_155 = arith.constant dense<0.000000e+00> : vector<8xf32>
    %253 = vector.multi_reduction <add>, %252, %cst_155 [1] : vector<8x32xf32> to vector<8xf32>
    %254 = vector.shape_cast %253 : vector<8xf32> to vector<8x1xf32>
    %cst_156 = arith.constant 3.200000e+01 : f32
    %255 = vector.broadcast %cst_156 : f32 to vector<8x1xf32>
    %256 = arith.divf %254, %255 : vector<8x1xf32>
    %257 = vector.broadcast %249 : vector<8x1xf32> to vector<8x32xf32>
    %258 = arith.subf %241, %257 : vector<8x32xf32>
    %cst_157 = arith.constant 9.99999974E-6 : f32
    %259 = vector.broadcast %cst_157 : f32 to vector<8x1xf32>
    %260 = arith.addf %256, %259 : vector<8x1xf32>
    %261 = math.rsqrt %260 : vector<8x1xf32>
    %262 = vector.broadcast %261 : vector<8x1xf32> to vector<8x32xf32>
    %263 = arith.mulf %258, %262 : vector<8x32xf32>
    %264 = vector.broadcast %243 : vector<1x32xf32> to vector<8x32xf32>
    %265 = arith.mulf %263, %264 : vector<8x32xf32>
    %266 = vector.broadcast %245 : vector<1x32xf32> to vector<8x32xf32>
    %267 = arith.addf %265, %266 : vector<8x32xf32>
    %268 = arith.truncf %267 : vector<8x32xf32> to vector<8x32xbf16>
    %c1_158 = arith.constant 1 : index
    %c0_159 = arith.constant 0 : index
    %c0_160 = arith.constant 0 : index
    %269 = vector.load %arg15[%c1_158, %c0_159, %c0_160] : memref<2x32x128xbf16, #tpu.memory_space<vmem>>, vector<1x32x128xbf16>
    %270 = vector.shape_cast %269 : vector<1x32x128xbf16> to vector<32x128xbf16>
    %cst_161 = arith.constant dense<0.000000e+00> : vector<8x128xf32>
    %271 = tpu.matmul %268, %270, %cst_161 {dimension_numbers = #tpu.dot_dimension_numbers<[1], [0], [0], [1], [0, 0, 1, 1], [], []>} : vector<8x32xbf16>, vector<32x128xbf16>, vector<8x128xf32> -> vector<8x128xf32>
    %c1_162 = arith.constant 1 : index
    %c0_163 = arith.constant 0 : index
    %c0_164 = arith.constant 0 : index
    %272 = vector.load %arg16[%c1_162, %c0_163, %c0_164] : memref<2x1x128xf32, #tpu.memory_space<vmem>>, vector<1x1x128xf32>
    %273 = vector.shape_cast %272 : vector<1x1x128xf32> to vector<1x128xf32>
    %274 = vector.broadcast %273 : vector<1x128xf32> to vector<8x128xf32>
    %275 = arith.addf %271, %274 : vector<8x128xf32>
    %cst_165 = arith.constant 5.000000e-01 : f32
    %276 = vector.broadcast %cst_165 : f32 to vector<8x128xf32>
    %277 = arith.mulf %276, %275 : vector<8x128xf32>
    %cst_166 = arith.constant 4.471500e-02 : f32
    %278 = vector.broadcast %cst_166 : f32 to vector<8x128xf32>
    %279 = arith.mulf %278, %275 : vector<8x128xf32>
    %280 = arith.mulf %279, %275 : vector<8x128xf32>
    %281 = arith.mulf %280, %275 : vector<8x128xf32>
    %282 = arith.addf %275, %281 : vector<8x128xf32>
    %cst_167 = arith.constant 0.797884583 : f32
    %283 = vector.broadcast %cst_167 : f32 to vector<8x128xf32>
    %284 = arith.mulf %283, %282 : vector<8x128xf32>
    %285 = math.tanh %284 : vector<8x128xf32>
    %cst_168 = arith.constant 1.000000e+00 : f32
    %286 = vector.broadcast %cst_168 : f32 to vector<8x128xf32>
    %287 = arith.addf %286, %285 : vector<8x128xf32>
    %288 = arith.mulf %277, %287 : vector<8x128xf32>
    %289 = arith.truncf %288 : vector<8x128xf32> to vector<8x128xbf16>
    %c1_169 = arith.constant 1 : index
    %c0_170 = arith.constant 0 : index
    %c0_171 = arith.constant 0 : index
    %290 = vector.load %arg17[%c1_169, %c0_170, %c0_171] : memref<2x128x32xbf16, #tpu.memory_space<vmem>>, vector<1x128x32xbf16>
    %291 = vector.shape_cast %290 : vector<1x128x32xbf16> to vector<128x32xbf16>
    %cst_172 = arith.constant dense<0.000000e+00> : vector<8x32xf32>
    %292 = tpu.matmul %289, %291, %cst_172 {dimension_numbers = #tpu.dot_dimension_numbers<[1], [0], [0], [1], [0, 0, 1, 1], [], []>} : vector<8x128xbf16>, vector<128x32xbf16>, vector<8x32xf32> -> vector<8x32xf32>
    %293 = arith.addf %241, %292 : vector<8x32xf32>
    %c1_173 = arith.constant 1 : index
    %c0_174 = arith.constant 0 : index
    %c0_175 = arith.constant 0 : index
    %294 = vector.load %arg18[%c1_173, %c0_174, %c0_175] : memref<2x1x32xf32, #tpu.memory_space<vmem>>, vector<1x1x32xf32>
    %295 = vector.shape_cast %294 : vector<1x1x32xf32> to vector<1x32xf32>
    %296 = vector.broadcast %295 : vector<1x32xf32> to vector<8x32xf32>
    %297 = arith.addf %293, %296 : vector<8x32xf32>
    %c0_176 = arith.constant 0 : index
    %c0_177 = arith.constant 0 : index
    %298 = vector.load %arg19[%c0_176, %c0_177] : memref<1x32xf32, #tpu.memory_space<vmem>>, vector<1x32xf32>
    %c0_178 = arith.constant 0 : index
    %c0_179 = arith.constant 0 : index
    %299 = vector.load %arg20[%c0_178, %c0_179] : memref<1x32xf32, #tpu.memory_space<vmem>>, vector<1x32xf32>
    %cst_180 = arith.constant dense<0.000000e+00> : vector<8xf32>
    %300 = vector.multi_reduction <add>, %297, %cst_180 [1] : vector<8x32xf32> to vector<8xf32>
    %301 = vector.shape_cast %300 : vector<8xf32> to vector<8x1xf32>
    %cst_181 = arith.constant 3.200000e+01 : f32
    %302 = vector.broadcast %cst_181 : f32 to vector<8x1xf32>
    %303 = arith.divf %301, %302 : vector<8x1xf32>
    %304 = vector.broadcast %303 : vector<8x1xf32> to vector<8x32xf32>
    %305 = arith.subf %297, %304 : vector<8x32xf32>
    %306 = arith.mulf %305, %305 : vector<8x32xf32>
    %cst_182 = arith.constant dense<0.000000e+00> : vector<8xf32>
    %307 = vector.multi_reduction <add>, %306, %cst_182 [1] : vector<8x32xf32> to vector<8xf32>
    %308 = vector.shape_cast %307 : vector<8xf32> to vector<8x1xf32>
    %cst_183 = arith.constant 3.200000e+01 : f32
    %309 = vector.broadcast %cst_183 : f32 to vector<8x1xf32>
    %310 = arith.divf %308, %309 : vector<8x1xf32>
    %311 = vector.broadcast %303 : vector<8x1xf32> to vector<8x32xf32>
    %312 = arith.subf %297, %311 : vector<8x32xf32>
    %cst_184 = arith.constant 9.99999974E-6 : f32
    %313 = vector.broadcast %cst_184 : f32 to vector<8x1xf32>
    %314 = arith.addf %310, %313 : vector<8x1xf32>
    %315 = math.rsqrt %314 : vector<8x1xf32>
    %316 = vector.broadcast %315 : vector<8x1xf32> to vector<8x32xf32>
    %317 = arith.mulf %312, %316 : vector<8x32xf32>
    %318 = vector.broadcast %298 : vector<1x32xf32> to vector<8x32xf32>
    %319 = arith.mulf %317, %318 : vector<8x32xf32>
    %320 = vector.broadcast %299 : vector<1x32xf32> to vector<8x32xf32>
    %321 = arith.addf %319, %320 : vector<8x32xf32>
    %322 = arith.truncf %321 : vector<8x32xf32> to vector<8x32xbf16>
    %c0_185 = arith.constant 0 : index
    %c0_186 = arith.constant 0 : index
    %323 = vector.load %arg21[%c0_185, %c0_186] : memref<32x128xbf16, #tpu.memory_space<vmem>>, vector<32x128xbf16>
    %cst_187 = arith.constant dense<0.000000e+00> : vector<8x128xf32>
    %324 = tpu.matmul %322, %323, %cst_187 {dimension_numbers = #tpu.dot_dimension_numbers<[1], [0], [0], [1], [0, 0, 1, 1], [], []>} : vector<8x32xbf16>, vector<32x128xbf16>, vector<8x128xf32> -> vector<8x128xf32>
    %c0_188 = arith.constant 0 : index
    %c0_189 = arith.constant 0 : index
    %c0_190 = arith.constant 0 : index
    %325 = vector.load %arg22[%c0_188, %c0_189, %c0_190] : memref<1x8x128xf32, #tpu.memory_space<vmem>>, vector<1x8x128xf32>
    %326 = vector.shape_cast %325 : vector<1x8x128xf32> to vector<8x128xf32>
    %327 = vector.shape_cast %324 : vector<8x128xf32> to vector<1x8x128xf32>
    tpu.vector_store %arg22[%c0_188, %c0_189, %c0_190], %327 {strides = array<i32>} : memref<1x8x128xf32, #tpu.memory_space<vmem>>, vector<1x8x128xf32>,
    return
  }
  func.func @transform_0(%arg0: i32) -> (i32, i32, i32) {
    %c0_i32 = arith.constant 0 : i32
    %c0_i32_0 = arith.constant 0 : i32
    %c0_i32_1 = arith.constant 0 : i32
    return %arg0, %c0_i32, %c0_i32_0 : i32, i32, i32
  }
  func.func @transform_1(%arg0: i32) -> (i32, i32, i32) {
    %c0_i32 = arith.constant 0 : i32
    %c0_i32_0 = arith.constant 0 : i32
    %c0_i32_1 = arith.constant 0 : i32
    return %arg0, %c0_i32, %c0_i32_0 : i32, i32, i32
  }
  func.func @transform_2(%arg0: i32) -> (i32, i32) {
    %c0_i32 = arith.constant 0 : i32
    %c0_i32_0 = arith.constant 0 : i32
    %c0_i32_1 = arith.constant 0 : i32
    return %c0_i32, %c0_i32_0 : i32, i32
  }
  func.func @transform_3(%arg0: i32) -> (i32, i32) {
    %c0_i32 = arith.constant 0 : i32
    %c0_i32_0 = arith.constant 0 : i32
    %c0_i32_1 = arith.constant 0 : i32
    return %c0_i32, %c0_i32_0 : i32, i32
  }
  func.func @transform_4(%arg0: i32) -> (i32, i32, i32, i32, i32) {
    %c0_i32 = arith.constant 0 : i32
    %c0_i32_0 = arith.constant 0 : i32
    %c0_i32_1 = arith.constant 0 : i32
    %c0_i32_2 = arith.constant 0 : i32
    %c0_i32_3 = arith.constant 0 : i32
    return %arg0, %c0_i32, %c0_i32_0, %c0_i32_1, %c0_i32_2 : i32, i32, i32, i32, i32
  }
  func.func @transform_5(%arg0: i32) -> (i32, i32, i32, i32, i32) {
    %c0_i32 = arith.constant 0 : i32
    %c0_i32_0 = arith.constant 0 : i32
    %c0_i32_1 = arith.constant 0 : i32
    %c0_i32_2 = arith.constant 0 : i32
    %c0_i32_3 = arith.constant 0 : i32
    return %arg0, %c0_i32, %c0_i32_0, %c0_i32_1, %c0_i32_2 : i32, i32, i32, i32, i32
  }
  func.func @transform_6(%arg0: i32) -> (i32, i32, i32) {
    %c0_i32 = arith.constant 0 : i32
    %c0_i32_0 = arith.constant 0 : i32
    %c0_i32_1 = arith.constant 0 : i32
    %c0_i32_2 = arith.constant 0 : i32
    return %c0_i32, %c0_i32_0, %c0_i32_1 : i32, i32, i32
  }
  func.func @transform_7(%arg0: i32) -> (i32, i32, i32) {
    %c0_i32 = arith.constant 0 : i32
    %c0_i32_0 = arith.constant 0 : i32
    %c0_i32_1 = arith.constant 0 : i32
    %c0_i32_2 = arith.constant 0 : i32
    return %c0_i32, %c0_i32_0, %c0_i32_1 : i32, i32, i32
  }
  func.func @transform_8(%arg0: i32) -> (i32, i32, i32, i32) {
    %c0_i32 = arith.constant 0 : i32
    %c0_i32_0 = arith.constant 0 : i32
    %c0_i32_1 = arith.constant 0 : i32
    %c0_i32_2 = arith.constant 0 : i32
    %c0_i32_3 = arith.constant 0 : i32
    return %c0_i32, %c0_i32_0, %c0_i32_1, %c0_i32_2 : i32, i32, i32, i32
  }
  func.func @transform_9(%arg0: i32) -> (i32, i32, i32, i32) {
    %c0_i32 = arith.constant 0 : i32
    %c0_i32_0 = arith.constant 0 : i32
    %c0_i32_1 = arith.constant 0 : i32
    %c0_i32_2 = arith.constant 0 : i32
    %c0_i32_3 = arith.constant 0 : i32
    return %c0_i32, %c0_i32_0, %c0_i32_1, %c0_i32_2 : i32, i32, i32, i32
  }
  func.func @transform_10(%arg0: i32) -> (i32, i32, i32, i32) {
    %c0_i32 = arith.constant 0 : i32
    %c0_i32_0 = arith.constant 0 : i32
    %c0_i32_1 = arith.constant 0 : i32
    %c0_i32_2 = arith.constant 0 : i32
    %c0_i32_3 = arith.constant 0 : i32
    return %c0_i32, %c0_i32_0, %c0_i32_1, %c0_i32_2 : i32, i32, i32, i32
  }
  func.func @transform_11(%arg0: i32) -> (i32, i32, i32) {
    %c0_i32 = arith.constant 0 : i32
    %c0_i32_0 = arith.constant 0 : i32
    %c0_i32_1 = arith.constant 0 : i32
    %c0_i32_2 = arith.constant 0 : i32
    return %c0_i32, %c0_i32_0, %c0_i32_1 : i32, i32, i32
  }
  func.func @transform_12(%arg0: i32) -> (i32, i32, i32) {
    %c0_i32 = arith.constant 0 : i32
    %c0_i32_0 = arith.constant 0 : i32
    %c0_i32_1 = arith.constant 0 : i32
    %c0_i32_2 = arith.constant 0 : i32
    return %c0_i32, %c0_i32_0, %c0_i32_1 : i32, i32, i32
  }
  func.func @transform_13(%arg0: i32) -> (i32, i32, i32) {
    %c0_i32 = arith.constant 0 : i32
    %c0_i32_0 = arith.constant 0 : i32
    %c0_i32_1 = arith.constant 0 : i32
    %c0_i32_2 = arith.constant 0 : i32
    return %c0_i32, %c0_i32_0, %c0_i32_1 : i32, i32, i32
  }
  func.func @transform_14(%arg0: i32) -> (i32, i32, i32) {
    %c0_i32 = arith.constant 0 : i32
    %c0_i32_0 = arith.constant 0 : i32
    %c0_i32_1 = arith.constant 0 : i32
    %c0_i32_2 = arith.constant 0 : i32
    return %c0_i32, %c0_i32_0, %c0_i32_1 : i32, i32, i32
  }
  func.func @transform_15(%arg0: i32) -> (i32, i32, i32) {
    %c0_i32 = arith.constant 0 : i32
    %c0_i32_0 = arith.constant 0 : i32
    %c0_i32_1 = arith.constant 0 : i32
    %c0_i32_2 = arith.constant 0 : i32
    return %c0_i32, %c0_i32_0, %c0_i32_1 : i32, i32, i32
  }
  func.func @transform_16(%arg0: i32) -> (i32, i32, i32) {
    %c0_i32 = arith.constant 0 : i32
    %c0_i32_0 = arith.constant 0 : i32
    %c0_i32_1 = arith.constant 0 : i32
    %c0_i32_2 = arith.constant 0 : i32
    return %c0_i32, %c0_i32_0, %c0_i32_1 : i32, i32, i32
  }
  func.func @transform_17(%arg0: i32) -> (i32, i32, i32) {
    %c0_i32 = arith.constant 0 : i32
    %c0_i32_0 = arith.constant 0 : i32
    %c0_i32_1 = arith.constant 0 : i32
    %c0_i32_2 = arith.constant 0 : i32
    return %c0_i32, %c0_i32_0, %c0_i32_1 : i32, i32, i32
  }
  func.func @transform_18(%arg0: i32) -> (i32, i32) {
    %c0_i32 = arith.constant 0 : i32
    %c0_i32_0 = arith.constant 0 : i32
    %c0_i32_1 = arith.constant 0 : i32
    return %c0_i32, %c0_i32_0 : i32, i32
  }
  func.func @transform_19(%arg0: i32) -> (i32, i32) {
    %c0_i32 = arith.constant 0 : i32
    %c0_i32_0 = arith.constant 0 : i32
    %c0_i32_1 = arith.constant 0 : i32
    return %c0_i32, %c0_i32_0 : i32, i32
  }
  func.func @transform_20(%arg0: i32) -> (i32, i32) {
    %c0_i32 = arith.constant 0 : i32
    %c0_i32_0 = arith.constant 0 : i32
    %c0_i32_1 = arith.constant 0 : i32
    return %c0_i32, %c0_i32_0 : i32, i32
  }
  func.func @transform_21(%arg0: i32) -> (i32, i32, i32) {
    %c0_i32 = arith.constant 0 : i32
    %c0_i32_0 = arith.constant 0 : i32
    %c0_i32_1 = arith.constant 0 : i32
    return %arg0, %c0_i32, %c0_i32_0 : i32, i32, i32
  }
  func.func @transform_22(%arg0: i32) -> (i32, i32, i32, i32, i32) {
    %c0_i32 = arith.constant 0 : i32
    %c0_i32_0 = arith.constant 0 : i32
    %c0_i32_1 = arith.constant 0 : i32
    %c0_i32_2 = arith.constant 0 : i32
    %c0_i32_3 = arith.constant 0 : i32
    return %arg0, %c0_i32, %c0_i32_0, %c0_i32_1, %c0_i32_2 : i32, i32, i32, i32, i32
  }
  func.func @transform_23(%arg0: i32) -> (i32, i32, i32, i32, i32) {
    %c0_i32 = arith.constant 0 : i32
    %c0_i32_0 = arith.constant 0 : i32
    %c0_i32_1 = arith.constant 0 : i32
    %c0_i32_2 = arith.constant 0 : i32
    %c0_i32_3 = arith.constant 0 : i32
    return %arg0, %c0_i32, %c0_i32_0, %c0_i32_1, %c0_i32_2 : i32, i32, i32, i32, i32
  }
}

</mosaic_0001>

<bundles_post_ra>
// kernel: net_forward.1
= control target key start
LH: loop header
LB: loop body
LE: loop exit
PB: predicated region body
PF: predicated region fallthrough
CT: control target
= control target key end

     0   :  { %s6810_s0 = inlined_call_operand.vmem [shape: f32[2,8,32], index: 0, kind: input, shape index: {}]   ;;  %s6811_s1 = inlined_call_operand.vmem [shape: f32[2,8,128], index: 1, kind: input, shape index: {}]   ;;  %s6812_s2 = inlined_call_operand.vmem [shape: bf16[128,8], index: 2, kind: input, shape index: {}]   ;;  %s6813_s3 = inlined_call_operand.vmem [shape: f32[128,1], index: 3, kind: input, shape index: {}]   ;;  %s6814_s4 = inlined_call_operand.vmem [shape: f32[2,2,2,128,16], index: 4, kind: input, shape index: {}, may-alias: {4,22}]   ;;  %s6815_s5 = inlined_call_operand.vmem [shape: f32[2,2,2,128,16], index: 5, kind: input, shape index: {}, may-alias: {5,23}]   ;;  %s6816_s6 = inlined_call_operand.vmem [shape: f32[2,1,32], index: 6, kind: input, shape index: {}]   ;;  %s6817_s7 = inlined_call_operand.vmem [shape: f32[2,1,32], index: 7, kind: input, shape index: {}]   ;;  %s6818_s8 = inlined_call_operand.vmem [shape: bf16[2,6,32,16], index: 8, kind: input, shape index: {}]   ;;  %s6819_s9 = inlined_call_operand.vmem [shape: f32[2,6,1,16], index: 9, kind: input, shape index: {}]   ;;  %s6820_s10 = inlined_call_operand.vmem [shape: bf16[2,2,16,32], index: 10, kind: input, shape index: {}]   ;;  %s6821_s11 = inlined_call_operand.vmem [shape: f32[2,1,32], index: 11, kind: input, shape index: {}]   ;;  %s6822_s12 = inlined_call_operand.vmem [shape: f32[2,1,32], index: 12, kind: input, shape index: {}]   ;;  %s6823_s13 = inlined_call_operand.vmem [shape: f32[2,1,32], index: 13, kind: input, shape index: {}]   ;;  %s6824_s14 = inlined_call_operand.vmem [shape: bf16[2,32,128], index: 14, kind: input, shape index: {}]   ;;  %s6825_s15 = inlined_call_operand.vmem [shape: f32[2,1,128], index: 15, kind: input, shape index: {}]   ;;  %s6826_s16 = inlined_call_operand.vmem [shape: bf16[2,128,32], index: 16, kind: input, shape index: {}]   ;;  %s6827_s17 = inlined_call_operand.vmem [shape: f32[2,1,32], index: 17, kind: input, shape index: {}]   ;;  %s6828_s18 = inlined_call_operand.vmem [shape: f32[1,32], index: 18, kind: input, shape index: {}]   ;;  %s6829_s19 = inlined_call_operand.vmem [shape: f32[1,32], index: 19, kind: input, shape index: {}]   ;;  %s6830_s20 = inlined_call_operand.vmem [shape: bf16[32,128], index: 20, kind: input, shape index: {}]   ;;  %s6831_s21 = inlined_call_operand.hbm [shape: f32[2,8,128], index: 21, kind: output, shape index: {0}]   ;;  %s6832_s22 = inlined_call_operand.vmem [shape: f32[2,2,2,128,16], index: 22, kind: output, shape index: {1}, may-alias: {4,22}]   ;;  %s6833_s23 = inlined_call_operand.vmem [shape: f32[2,2,2,128,16], index: 23, kind: output, shape index: {2}, may-alias: {5,23}]  }
   0x1   :  { %6905 = sst [smem:[#allocation65_spill]] %s6810_s0 }
   0x2   :  { %6906 = sst [smem:[#allocation66_spill]] %s6811_s1 }
   0x3   :  { %6907 = sst [smem:[#allocation67_spill]] %s6812_s2 }
   0x4   :  { %6908 = sst [smem:[#allocation68_spill]] %s6813_s3 }
   0x5   :  { %6909 = sst [smem:[#allocation69_spill]] %s6814_s4 }
   0x6   :  { %6910 = sst [smem:[#allocation70_spill]] %s6815_s5 }
   0x7   :  { %6911 = sst [smem:[#allocation71_spill]] %s6816_s6 }
   0x8   :  { %6912 = sst [smem:[#allocation72_spill]] %s6817_s7 }
   0x9   :  { %6913 = sst [smem:[#allocation73_spill]] %s6828_s18 }
   0xa   :  { %6914 = sst [smem:[#allocation74_spill]] %s6829_s19 }
   0xb   :  { %6915 = sst [smem:[#allocation75_spill]] %s6831_s21 }
   0xc   :  { %6916 = sst [smem:[#allocation76_spill]] %s6832_s22 }
   0xd   :  { %6917 = sst [smem:[#allocation77_spill]] %s6833_s23 }
   0xe   :  { %29 = vsyncpa [#allocation3], 0 }
   0xf   :  { %31 = vsyncpa [#allocation3 + $0x1], 0  ;;  %s4596_s4 = smov 0   ;;  %s4598_s30 = smov 0  }
  0x10   :  { %s4600_s24 = smov 0   ;;  %s4602_s25 = smov 0  }
  0x11 LB: > { %6918 = sst [smem:[#allocation5_spill]] %s4460_s4  ;;  %s4617_s5 = sadd.s32 4294967295, %s4472_s25   ;;  %s4472_s25 = sphi %s4602_s25, %s7235_s25   ;;  %s4468_s24 = sphi %s4600_s24, %s7237_s24   ;;  %s4464_s30 = sphi %s4598_s30, %s7239_s30   ;;  %s4460_s4 = sphi %s4596_s4, %s7238_s4  }
  0x12   : > { %6919 = sst [smem:[#allocation6_spill]] %s4468_s24  ;;  %s3707_s1 = sadd.s32 4294967294, %s4472_s25  }
  0x13   : > { %6920 = sst [smem:[#allocation7_spill]] %s4472_s25  ;;  %s4621_s26 = sadd.s32 1, %s4472_s25  }
  0x14   : > { %6921 = sst [smem:[#allocation8_spill]] %s4621_s26  ;;  %s505_s2 = sadd.s32 1, %s4468_s24 }
  0x15   : > { %s502_s6 = ssub.s32 %s4472_s25, %s4621_s26  ;;  %p515_p0 = scmp.ne.s32.totalorder %s4468_s24, %s4464_s30 }
  0x16   : > { %p503_p1 = scmp.eq.s32.totalorder %s502_s6, 0  ;;  %p516_p2 = scmp.eq.s32.totalorder %s4617_s5, 1 }
  0x17   : > { %p521_p3 = scmp.ne.s32.totalorder %s4464_s30, %s4460_s4  ;;  %p522_p4 = scmp.eq.s32.totalorder %s3707_s1, 1 }
  0x18   : > { %s4632_s27 = scalar_select %p503_p1, %s4468_s24, %s505_s2  }
  0x19   : > { %p4634_p5 = por %p516_p2, %p515_p0  ;;  %p4638_p6 = por %p522_p4, %p521_p3 }
  0x1a   : > { %6922 = sst [smem:[#allocation9_spill]] %s4632_s27  ;;  %p3710_p7 = scmp.ge.s32.totalorder %s4472_s25, 1 }
  0x1b   : > { %s6923_s7 = scalar_select %p4634_p5, 1, 0 }
  0x1c   : > { %s6925_s28 = scalar_select %p4638_p6, 1, 0 }
  0x1d   : > { %6924 = sst [smem:[#allocation10_spill]] %s6923_s7  ;;  %p673_p8 = scmp.lt.s32.totalorder %s4472_s25, 3 }
  0x1e   : > { %6926 = sst [smem:[#allocation11_spill]] %s6925_s28 }
  0x1f   : > { %p674_p9 = pnand %p3710_p7, %p673_p8 }
  0x21   : > { %677 = sbr.rel (%p674_p9) target bundleno = 4367 (0x110f), region = 104 }
  0x26   : > { %p760_p10 = scmp.lt.s32.totalorder %s4617_s5, 1  ;;  %vm6875_vm0 = vcmask 261120   ;;  %s6927_s2 = sld [smem:[#allocation65_spill]]  ;;  %v4474_v2 = vmov 32.0   ;;  %v4247_v14 = vld [vmem:[%s6818_s8 + $0x8] sm:$0xff]  ;;  %v4249_v15 = vld [vmem:[%s6818_s8 + $0x18] sm:$0xff] }
  0x27   : > { %4368 = vrcp.f32 %v4474_v2  ;;  %v4253_v16 = vld [vmem:[%s6818_s8 + $0x38] sm:$0xff]  ;;  %v4255_v17 = vld [vmem:[%s6818_s8 + $0x48] sm:$0xff]  ;;  %949 = vmatpush.bf16.msra.mxu2 %v4247_v14  ;;  %974 = vmatpush.bf16.msra.mxu1 %v4249_v15  ;;  %v4246_v18 = vld [vmem:[%s6818_s8] sm:$0xff]  ;;  %s6929_s26 = sld [smem:[#allocation71_spill]]  ;;  %v4475_v43 = vmov 0   ;;  %vm6874_vm13 = vcmask 1043456  }
  0x28   : > { %s4646_s29 = scalar_select %p760_p10, %s4617_s5, 1  ;;  %1024 = vmatpush.bf16.msra.mxu3 %v4253_v16  ;;  %1049 = vmatpush.bf16.msra.mxu0 %v4255_v17  ;;  %v4248_v19 = vld [vmem:[%s6818_s8 + $0x10] sm:$0xff]  ;;  %v4254_v21 = vld [vmem:[%s6818_s8 + $0x40] sm:$0xff]  ;;  %v4251_v23 = vld [vmem:[%s6818_s8 + $0x28] sm:$0xff]  ;;  %vm6867_vm14 = vcmask 64512  }
  0x29   : > { %v4252_v20 = vld [vmem:[%s6818_s8 + $0x30] sm:$0xff]  ;;  %v4257_v24 = vld [vmem:[%s6818_s8 + $0x58] sm:$0xff]  ;;  %v4250_v26 = vld [vmem:[%s6818_s8 + $0x20] sm:$0xff]  ;;  %s6930_s28 = sld [smem:[#allocation72_spill]]  ;;  %4337 = vset.pattern.permute.xlu1 %v4475_v43  ;;  %4338 = vset.pattern.permute.xlu2 %v4475_v43 }
  0x2a   : > { %s6838_s3 = sshll.u32 %s4646_s29, 3  ;;  %v4256_v27 = vld [vmem:[%s6818_s8 + $0x50] sm:$0xff]  ;;  %4339 = vset.pattern.permute.xlu0 %v4475_v43  ;;  %v4343_v51 = vld [vmem:[%s6819_s9 + $0x4] ss:$0 sm:$0xff]  ;;  %v4345_v62 = vld [vmem:[%s6819_s9 + $0x3] ss:$0 sm:$0xff] }
  0x2b   : > { %950 = vmatpush.bf16.msra.mxu2 %v4246_v18  ;;  %975 = vmatpush.bf16.msra.mxu1 %v4248_v19  ;;  %s6934_s21 = sld [smem:[#allocation67_spill]]  ;;  %v4346_v15 = vld [vmem:[%s6819_s9 + $0x5] ss:$0 sm:$0xff]  ;;  %s4875_s1 = sshll.u32 %s4646_s29, 9 }
  0x2c   : > { %s4654_s6 = scalar_lea.vmem %s6927_s2, %s6838_s3  ;;  %1025 = vmatpush.bf16.msra.mxu3 %v4252_v20  ;;  %1050 = vmatpush.bf16.msra.mxu0 %v4254_v21  ;;  %s6931_s3 = sld [smem:[#allocation68_spill]] }
  0x2d   : > { %v789_v0 = vld [vmem:[%s4654_s6] sm:$0xff]  ;;  %v4369_v3 = vpop.eup %4368  ;;  %s6938_s24 = sld [smem:[#allocation69_spill]] }
  0x2e   : > { %v842_v1 = vsel %vm6875_vm0, %v789_v0, 0.0  ;;  %v846_v4 = vmul.f32 32.0, %v4369_v3  ;;  %vm850_vm1 = vweird.f32 %v4369_v3  ;;  %v4340_v35 = vld [vmem:[%s6929_s26] ss:$0 sm:$0xff]  ;;  %s6945_s22 = sld [smem:[#allocation76_spill]] }
  0x2f   : > { %843 = vadd.xlane.f32.xlu0 %v842_v1  ;;  %999 = vmatpush.bf16.msrb.mxu2 %v4251_v23  ;;  %v4341_v37 = vld [vmem:[%s6930_s28] ss:$0 sm:$0xff]  ;;  %s6986_s23 = sld [smem:[#allocation77_spill]] }
  0x30   : > { %v847_v5 = vsub.f32 1.0, %v846_v4  ;;  %1074 = vmatpush.bf16.msrb.mxu1 %v4257_v24  ;;  %s7231_s2 = sld [smem:[#allocation75_spill]] }
  0x32   : > { %v848_v6 = vmul.f32 %v4369_v3, %v847_v5  ;;  %v821_v42 = vld [vmem:[%s6931_s3 + $0x70] sm:$0xff]  ;;  %v822_v45 = vld [vmem:[%s6931_s3 + $0x78] sm:$0xff]  ;;  %v819_v46 = vld [vmem:[%s6931_s3 + $0x60] sm:$0xff] }
  0x33   : > { %1000 = vmatpush.bf16.msrb.mxu2 %v4250_v26  ;;  %vm837_vm5 = vcmp.gt.f32.partialorder %v821_v42, 0.5  ;;  %vm838_vm6 = vcmp.gt.f32.partialorder %v822_v45, 0.5  ;;  %vm835_vm7 = vcmp.gt.f32.partialorder %v819_v46, 0.5  ;;  %v820_v49 = vld [vmem:[%s6931_s3 + $0x68] sm:$0xff]  ;;  %v818_v50 = vld [vmem:[%s6931_s3 + $0x58] sm:$0xff]  ;;  %v815_v56 = vld [vmem:[%s6931_s3 + $0x40] sm:$0xff]  ;;  %s4882_s27 = scalar_lea.vmem %s6938_s24, %s4875_s1 }
  0x34   : > { %v849_v7 = vadd.f32 %v4369_v3, %v848_v6  ;;  %1075 = vmatpush.bf16.msrb.mxu1 %v4256_v27  ;;  %v1299_v44 = vsel %vm837_vm5, 1, %v4475_v43  ;;  %v1300_v47 = vsel %vm838_vm6, 1, %v4475_v43  ;;  %v1297_v48 = vsel %vm835_vm7, 1, %v4475_v43  ;;  %v816_v55 = vld [vmem:[%s6931_s3 + $0x48] sm:$0xff]  ;;  %v817_v57 = vld [vmem:[%s6931_s3 + $0x50] sm:$0xff]  ;;  %s4975_s0 = scalar_lea.vmem %s6945_s22, %s4875_s1  ;;  %s6977_s24 = sld [smem:[#allocation70_spill]] }
  0x35   : > { %1344 = vperm.xlu1 %4337, %v1299_v44   ;;  %1338 = vperm.xlu2 %4338, %v1297_v48   ;;  %vm836_vm8 = vcmp.gt.f32.partialorder %v820_v49, 0.5  ;;  %vm834_vm9 = vcmp.gt.f32.partialorder %v818_v50, 0.5  ;;  %vm833_vm10 = vcmp.gt.f32.partialorder %v817_v57, 0.5  ;;  %vm832_vm11 = vcmp.gt.f32.partialorder %v816_v55, 0.5  ;;  %v812_v21 = vld [vmem:[%s6931_s3 + $0x28] sm:$0xff]  ;;  %v4241_v44 = vld [vmem:[%s6934_s21 + $0x18] sm:$0xff]  ;;  %s5268_s7 = scalar_lea.vmem %s6986_s23, %s4875_s1 }
  0x36   : > { %v4658_v8 = vsel %vm850_vm1, %v4369_v3, %v849_v7  ;;  %v1298_v52 = vsel %vm836_vm8, 1, %v4475_v43  ;;  %v1296_v53 = vsel %vm834_vm9, 1, %v4475_v43  ;;  %vm831_vm12 = vcmp.gt.f32.partialorder %v815_v56, 0.5  ;;  %v4238_v3 = vld [vmem:[%s6934_s21] sm:$0xff]  ;;  %v4243_v46 = vld [vmem:[%s6934_s21 + $0x28] sm:$0xff]  ;;  %v4244_v48 = vld [vmem:[%s6934_s21 + $0x30] sm:$0xff] }
  0x37   : > { %6928 = vst [vmem:[#allocation12_spill] sm:$0xff] %v4658_v8  ;;  %v1295_v60 = vsel %vm833_vm10, 1, %v4475_v43  ;;  %v1294_v63 = vsel %vm832_vm11, 1, %v4475_v43  ;;  %vm1567_vm9 = vcmask 130048   ;;  %s7049_s22 = sld [smem:[#allocation66_spill]] }
  0x3a   : > { %s5224_s4 = scalar_lea.vmem %s6977_s24, %s4875_s1  ;;  %s7048_s1 = sshll.u32 %s4646_s29, 3 }
  0x3d   : > { %1347 = vperm.xlu1 %4337, %v1300_v47   ;;  %1341 = vperm.xlu2 %4338, %v1298_v52   ;;  %s5721_s23 = scalar_lea.vmem %s7049_s22, %s7048_s1  ;;  %s7227_s22 = sld [smem:[#allocation73_spill]] }
  0x45   : > { %1335 = vperm.xlu1 %4337, %v1296_v53   ;;  %v4245_v53 = vld [vmem:[%s6934_s21 + $0x38] sm:$0xff] }
  0x4d   : > { %1329 = vperm.xlu1 %4337, %v1294_v63   ;;  %v1269_v63 = vld [vmem:[%s4882_s27 + $0x80] sm:$0xff] }
  0x8f   : > { %v4831_v45 = vpop.permute.xlu2 %1338 }
  0x97   : > { %v4838_v47 = vpop.permute.xlu2 %1341 }
  0x98   : > { %6935 = vst [vmem:[#allocation15_spill] sm:$0xff] %v4838_v47 }
  0xa2   : > { %v844_v9 = vpop.xlane.xlu0 %843 }
  0xa3   : > { %v852_v10 = vmul.f32 %v4658_v8, %v844_v9 }
  0xa5   : > { %v853_v11 = vsub.f32 %v789_v0, %v852_v10  ;;  %v1293_v0 = vsel %vm831_vm12, 1, %v4475_v43  ;;  %v814_v10 = vld [vmem:[%s6931_s3 + $0x38] sm:$0xff] }
  0xa6   : > { %1326 = vperm.xlu2 %4338, %v1293_v0   ;;  %vm830_vm15 = vcmp.gt.f32.partialorder %v814_v10, 0.5  ;;  %v1253_v0 = vld [vmem:[%s4882_s27] sm:$0xff]  ;;  %v4913_v10 = vld [vmem:[%s4882_s27 + $0xb0] sm:$0xff] }
  0xa7   : > { %v854_v12 = vmul.f32 %v853_v11, %v853_v11  ;;  %v1292_v16 = vsel %vm830_vm15, 1, %v4475_v43  ;;  %v4849_v50 = vpop.permute.xlu1 %1344 }
  0xa8   : > { %1323 = vperm.xlu1 %4337, %v1292_v16   ;;  %6936 = vst [vmem:[#allocation16_spill] sm:$0xff] %v4849_v50  ;;  %v4931_v16 = vld [vmem:[%s4882_s27 + $0xc8] sm:$0xff] }
  0xa9   : > { %v855_v13 = vsel %vm6875_vm0, %v854_v12, 0.0  ;;  %v808_v12 = vld [vmem:[%s6931_s3 + $0x8] sm:$0xff] }
  0xaa   : > { %856 = vadd.xlane.f32.xlu0 %v855_v13 }
  0xaf   : > { %v4855_v52 = vpop.permute.xlu1 %1347 }
  0xb0   : > { %6937 = vst [vmem:[#allocation17_spill] sm:$0xff] %v4855_v52 }
  0xb7   : > { %v4864_v56 = vpop.permute.xlu1 %1335 }
  0xbe   : > { %1332 = vperm.xlu0 %4339, %v1295_v60  }
 0x100   : > { %v4845_v49 = vpop.permute.xlu2 %1326 }
 0x11d   : > { %v857_v22 = vpop.xlane.xlu0 %856 }
 0x11e   : > { %v858_v25 = vmul.f32 %v857_v22, %v4658_v8  ;;  %v811_v22 = vld [vmem:[%s6931_s3 + $0x20] sm:$0xff] }
 0x120   : > { %v859_v28 = vadd.f32 1e-05, %v858_v25  ;;  %v4347_v25 = vld [vmem:[%s6819_s9 + $0x2] ss:$0 sm:$0xff] }
 0x122   : > { %4370 = vrsqrt.f32 %v859_v28  ;;  %vm866_vm3 = vweird.f32 %v859_v28 }
 0x128   : > { %v4371_v29 = vpop.eup %4370 }
 0x129   : > { %v861_v30 = vmul.f32 %v4371_v29, %v859_v28  ;;  %vm867_vm2 = vweird.f32 %v4371_v29 }
 0x12a   : > { %vm868_vm4 = vmor %vm866_vm3, %vm867_vm2  ;;  %vm824_vm2 = vcmp.gt.f32.partialorder %v808_v12, 0.5  ;;  %vm828_vm3 = vcmp.gt.f32.partialorder %v812_v21, 0.5  ;;  %v4919_v12 = vld [vmem:[%s4882_s27 + $0xb8] sm:$0xff]  ;;  %v4946_v21 = vld [vmem:[%s4882_s27 + $0x50] sm:$0xff] }
 0x12b   : > { %v862_v31 = vmul.f32 %v4371_v29, %v861_v30  ;;  %v1286_v14 = vsel %vm824_vm2, 1, %v4475_v43  ;;  %v1290_v27 = vsel %vm828_vm3, 1, %v4475_v43 }
 0x12c   : > { %1305 = vperm.xlu0 %4339, %v1286_v14   ;;  %1317 = vperm.xlu1 %4337, %v1290_v27   ;;  %v4925_v14 = vld [vmem:[%s4882_s27 + $0xc0] sm:$0xff]  ;;  %v4963_v27 = vld [vmem:[%s4882_s27 + $0xf0] sm:$0xff] }
 0x12d   : > { %v863_v32 = vmul.f32 0.5, %v862_v31 }
 0x12f   : > { %v864_v33 = vsub.f32 1.5, %v863_v32 }
 0x130   : > { %v4884_v60 = vpop.permute.xlu0 %1332 }
 0x131   : > { %v865_v34 = vmul.f32 %v4371_v29, %v864_v33  ;;  %6939 = vst [vmem:[#allocation18_spill] sm:$0xff] %v4884_v60 }
 0x133   : > { %v869_v36 = vsel %vm868_vm4, %v4371_v29, %v865_v34  ;;  %vm827_vm4 = vcmp.gt.f32.partialorder %v811_v22, 0.5  ;;  %v4239_v29 = vld [vmem:[%s6934_s21 + $0x8] sm:$0xff]  ;;  %v810_v34 = vld [vmem:[%s6931_s3 + $0x18] sm:$0xff]  ;;  %v4949_v22 = vld [vmem:[%s4882_s27 + $0xe0] sm:$0xff] }
 0x134   : > { %v870_v38 = vmul.f32 %v869_v36, %v853_v11  ;;  %v813_v11 = vld [vmem:[%s6931_s3 + $0x30] sm:$0xff]  ;;  %v1289_v30 = vsel %vm827_vm4, 1, %v4475_v43  ;;  %vm826_vm5 = vcmp.gt.f32.partialorder %v810_v34, 0.5  ;;  %vm1357_vm4 = vcmp.eq.s32.totalorder %v4845_v49, 1 }
 0x135   : > { %vm829_vm1 = vcmp.gt.f32.partialorder %v813_v11, 0.5  ;;  %v4916_v11 = vld [vmem:[%s4882_s27 + $0x28] sm:$0xff] }
 0x136   : > { %v874_v39 = vmul.f32 %v4340_v35, %v870_v38  ;;  %v1291_v18 = vsel %vm829_vm1, 1, %v4475_v43  ;;  %v809_v35 = vld [vmem:[%s6931_s3 + $0x10] sm:$0xff] }
 0x137   : > { %1320 = vperm.xlu2 %4338, %v1291_v18   ;;  %vm825_vm6 = vcmp.gt.f32.partialorder %v809_v35, 0.5  ;;  %v4937_v18 = vld [vmem:[%s4882_s27 + $0xd0] sm:$0xff] }
 0x138   : > { %v878_v40 = vadd.f32 %v4341_v37, %v874_v39  ;;  %v1288_v37 = vsel %vm826_vm5, 1, %v4475_v43  ;;  %v1287_v39 = vsel %vm825_vm6, 1, %v4475_v43  ;;  %vm6887_vm6 = vcmp.eq.s32.totalorder %v4884_v60, 1 }
 0x139   : > { %1311 = vperm.xlu1 %4337, %v1288_v37  }
 0x13a   : > { %v879_v41 = vpack.c.bf16 %v878_v40, %v878_v40  ;;  %v807_v40 = vld [vmem:[%s6931_s3] sm:$0xff]  ;;  %s4430_s3 = scalar_lea.hbm %s7231_s2, 16 }
 0x13b   : > { %vm823_vm7 = vcmp.gt.f32.partialorder %v807_v40, 0.5 }
 0x13c   : > { %3730 = vmatmul.msk.bf16.vlgmr.msra.gmra.mxu2 %vm6875_vm0, %v879_v41  ;;  %3739 = vmatmul.msk.bf16.vlgmr.msra.gmra.mxu1 %vm6875_vm0, %v879_v41  ;;  %v1285_v42 = vsel %vm823_vm7, 1, %v4475_v43  ;;  %v4242_v43 = vld [vmem:[%s6934_s21 + $0x20] sm:$0xff]  ;;  %vm6886_vm7 = vcmp.eq.s32.totalorder %v4864_v56, 1 }
 0x13d   : > { %3757 = vmatmul.msk.bf16.vlgmr.msra.gmra.mxu3 %vm6875_vm0, %v879_v41  ;;  %3766 = vmatmul.msk.bf16.vlgmr.msra.gmra.mxu0 %vm6875_vm0, %v879_v41 }
 0x13f   : > { %1314 = vperm.xlu2 %4338, %v1289_v30  }
 0x147   : > { %1308 = vperm.xlu2 %4338, %v1287_v39  }
 0x14c   : > { %3748 = vmatmul.msk.bf16.vlgmr.msrb.gmra.mxu2 %vm6875_vm0, %v879_v41  ;;  %3775 = vmatmul.msk.bf16.vlgmr.msrb.gmra.mxu1 %vm6875_vm0, %v879_v41  ;;  %v4240_v41 = vld [vmem:[%s6934_s21 + $0x10] sm:$0xff]  ;;  %vm6884_vm0 = vcmp.eq.s32.totalorder %v4838_v47, 1 }
 0x14f   : > { %1302 = vperm.xlu2 %4338, %v1285_v42  }
 0x19e   : > { %v4992_v37 = vpop.permute.xlu0 %1305 }
 0x19f   : > { %vm1350_vm10 = vcmp.eq.s32.totalorder %v4992_v37, 1 }
 0x1b9   : > { %v4737_v54 = vpop.f32.mrf.mxu1 }
 0x1ba   : > { %6932 = vst [vmem:[#allocation13_spill] sm:$0xff] %v4737_v54  ;;  %v1052_v58 = vpop.f32.mrf.mxu0 }
 0x1bb   : > { %v1053_v59 = vadd.f32 %v4343_v51, %v1052_v58  ;;  %v4853_v51 = vpop.permute.xlu2 %1320 }
 0x1bc   : > { %vm6876_vm2 = vcmp.eq.s32.totalorder %v4853_v51, 1 }
 0x1bd   : > { %v1397_v61 = vpack.c.bf16 %v1053_v59, %v1053_v59  ;;  %v4872_v59 = vpop.permute.xlu1 %1329 }
 0x1be   : > { %vm6888_vm5 = vcmp.eq.s32.totalorder %v4872_v59, 1 }
 0x1bf   : > { %v4754_v1 = vpop.f32.mrf.mxu2  ;;  %v1400_v2 = vsel %vm6874_vm13, %v1397_v61, 0 }
 0x1c0   : > { %6933 = vst [vmem:[#allocation14_spill] sm:$0xff] %v4754_v1  ;;  %v1027_v4 = vpop.f32.mrf.mxu3  ;;  %1409 = vmatpush.bf16.msrb.mxu0 %v1400_v2  ;;  %v1271_v2 = vld [vmem:[%s4882_s27 + $0x90] sm:$0xff] }
 0x1c1   : > { %v1028_v5 = vadd.f32 %v4345_v62, %v1027_v4  ;;  %v979_v6 = vpop.f32.mrf.mxu1  ;;  %v4898_v4 = vld [vmem:[%s4882_s27 + $0x10] sm:$0xff] }
 0x1c2   : > { %v1054_v7 = vpop.f32.mrf.mxu0  ;;  %v4904_v6 = vld [vmem:[%s4882_s27 + $0x18] sm:$0xff] }
 0x1c3   : > { %v1082_v9 = vpack.c.bf16 %v1028_v5, %v1028_v5  ;;  %3824 = vmatmul.msk.bf16.vlgmr.msrb.gmra.mxu0 %vm6867_vm14, %v4238_v3  ;;  %v4862_v55 = vpop.permute.xlu2 %1314  ;;  %v4901_v5 = vld [vmem:[%s4882_s27 + $0xa0] sm:$0xff]  ;;  %v4907_v7 = vld [vmem:[%s4882_s27 + $0xa8] sm:$0xff] }
 0x1c4   : > { %vm6878_vm15 = vcmp.eq.s32.totalorder %v4862_v55, 1 }
 0x1c5   : > { %v1202_v13 = vsel %vm6874_vm13, %v1082_v9, 0  ;;  %v4910_v9 = vld [vmem:[%s4882_s27 + $0x20] sm:$0xff]  ;;  %v4977_v30 = vpop.permute.xlu1 %1323 }
 0x1c6   : > { %1211 = vmatpush.bf16.msrb.mxu3 %v1202_v13  ;;  %v4922_v13 = vld [vmem:[%s4882_s27 + $0x30] sm:$0xff]  ;;  %vm1356_vm3 = vcmp.eq.s32.totalorder %v4977_v30, 1 }
 0x1c7   : > { %v954_v17 = vpop.f32.mrf.mxu2 }
 0x1c8   : > { %v1029_v19 = vpop.f32.mrf.mxu3  ;;  %v4934_v17 = vld [vmem:[%s4882_s27 + $0x40] sm:$0xff] }
 0x1c9   : > { %3816 = vmatmul.msk.bf16.vlgmr.msrb.gmra.mxu3 %vm6867_vm14, %v4238_v3  ;;  %v1077_v20 = vpop.f32.mrf.mxu1  ;;  %v4940_v19 = vld [vmem:[%s4882_s27 + $0x48] sm:$0xff] }
 0x1ca   : > { %v1078_v23 = vadd.f32 %v4346_v15, %v1077_v20  ;;  %v4928_v15 = vld [vmem:[%s4882_s27 + $0x38] sm:$0xff] }
 0x1cb   : > { %v4868_v57 = vpop.permute.xlu2 %1308  ;;  %v4943_v20 = vld [vmem:[%s4882_s27 + $0xd8] sm:$0xff] }
 0x1cc   : > { %v1398_v24 = vpack.c.bf16 %v1078_v23, %v1078_v23  ;;  %v4952_v23 = vld [vmem:[%s4882_s27 + $0x58] sm:$0xff]  ;;  %vm1351_vm11 = vcmp.eq.s32.totalorder %v4868_v57, 1 }
 0x1cd   : > { %6940 = vst [vmem:[#allocation19_spill] sm:$0xff] %v4952_v23  ;;  %v1510_v23 = vld [vmem:[%s5224_s4 + $0x38] sm:$0xff] }
 0x1ce   : > { %v1452_v26 = vsel %vm6874_vm13, %v1398_v24, 0  ;;  %v4955_v24 = vld [vmem:[%s4882_s27 + $0xe8] sm:$0xff] }
 0x1cf   : > { %v1002_v28 = vpop.f32.mrf.mxu2  ;;  %1461 = vmatpush.bf16.msra.mxu1 %v1452_v26  ;;  %6941 = vst [vmem:[#allocation20_spill] sm:$0xff] %v4955_v24  ;;  %v1270_v26 = vld [vmem:[%s4882_s27 + $0x88] sm:$0xff] }
 0x1d0   : > { %v1003_v31 = vadd.f32 %v4347_v25, %v1002_v28  ;;  %v4958_v25 = vld [vmem:[%s4882_s27 + $0x60] sm:$0xff]  ;;  %v4966_v28 = vld [vmem:[%s4882_s27 + $0x68] sm:$0xff] }
 0x1d1   : > { %v1079_v32 = vpop.f32.mrf.mxu1  ;;  %6942 = vst [vmem:[#allocation21_spill] sm:$0xff] %v4958_v25  ;;  %v1509_v25 = vld [vmem:[%s5224_s4 + $0x30] sm:$0xff] }
 0x1d2   : > { %v1081_v33 = vpack.c.bf16 %v1003_v31, %v1003_v31  ;;  %3832 = vmatmul.msk.bf16.vlgmr.msra.gmra.mxu1 %vm6867_vm14, %v4238_v3  ;;  %6943 = vst [vmem:[#allocation22_spill] sm:$0xff] %v4966_v28  ;;  %v4980_v31 = vld [vmem:[%s4882_s27 + $0x70] sm:$0xff]  ;;  %v4983_v32 = vld [vmem:[%s4882_s27 + $0x78] sm:$0xff]  ;;  %v5259_v28 = vld [vmem:[%s5224_s4 + $0xe0] sm:$0xff] }
 0x1d3   : > { %3825 = vmatmul.msk.bf16.gmra.mxu0 %vm6867_vm14, %v4239_v29  ;;  %v4886_v61 = vpop.permute.xlu2 %1302  ;;  %6946 = vst [vmem:[#allocation24_spill] sm:$0xff] %v4980_v31 }
 0x1d4   : > { %v1150_v36 = vsel %vm6874_vm13, %v1081_v33, 0  ;;  %vm1349_vm8 = vcmp.eq.s32.totalorder %v4886_v61, 1  ;;  %6947 = vst [vmem:[#allocation25_spill] sm:$0xff] %v4983_v32  ;;  %v1272_v33 = vld [vmem:[%s4882_s27 + $0x98] sm:$0xff]  ;;  %vm6883_vm13 = vcmp.eq.s32.totalorder %v4849_v50, 1 }
 0x1d5   : > { %1159 = vmatpush.bf16.msra.mxu2 %v1150_v36  ;;  %v5256_v32 = vld [vmem:[%s5224_s4 + $0xd8] sm:$0xff]  ;;  %6984 = vst [vmem:[#allocation61_spill] sm:$0xff] %v5259_v28  ;;  %v1505_v28 = vld [vmem:[%s5224_s4 + $0x10] sm:$0xff] }
 0x1d6   : > { %6983 = vst [vmem:[#allocation60_spill] sm:$0xff] %v5256_v32  ;;  %v1513_v32 = vld [vmem:[%s5224_s4 + $0x50] sm:$0xff] }
 0x1d7   : > { %v1004_v38 = vpop.f32.mrf.mxu2 }
 0x1d8   : > { %3808 = vmatmul.msk.bf16.vlgmr.msra.gmra.mxu2 %vm6867_vm14, %v4238_v3  ;;  %v4895_v3 = vld [vmem:[%s4882_s27 + $0x8] sm:$0xff] }
 0x1d9   : > { %3817 = vmatmul.msk.bf16.gmra.mxu3 %vm6867_vm14, %v4239_v29 }
 0x1e2   : > { %3833 = vmatmul.msk.bf16.gmra.mxu1 %vm6867_vm14, %v4239_v29 }
 0x1e3   : > { %3826 = vmatmul.msk.bf16.gmra.mxu0 %vm6867_vm14, %v4240_v41 }
 0x1e8   : > { %3809 = vmatmul.msk.bf16.gmra.mxu2 %vm6867_vm14, %v4239_v29  ;;  %v4969_v29 = vld [vmem:[%s4882_s27 + $0xf8] sm:$0xff] }
 0x1e9   : > { %3818 = vmatmul.msk.bf16.gmra.mxu3 %vm6867_vm14, %v4240_v41  ;;  %6944 = vst [vmem:[#allocation23_spill] sm:$0xff] %v4969_v29  ;;  %v1516_v29 = vld [vmem:[%s5224_s4 + $0x68] sm:$0xff] }
 0x1f2   : > { %3834 = vmatmul.msk.bf16.gmra.mxu1 %vm6867_vm14, %v4240_v41 }
 0x1f3   : > { %3827 = vmatmul.msk.bf16.gmra.mxu0 %vm6867_vm14, %v4241_v44 }
 0x1f8   : > { %3810 = vmatmul.msk.bf16.gmra.mxu2 %vm6867_vm14, %v4240_v41  ;;  %v4997_v41 = vpop.permute.xlu1 %1317 }
 0x1f9   : > { %3819 = vmatmul.msk.bf16.gmra.mxu3 %vm6867_vm14, %v4241_v44  ;;  %vm1354_vm1 = vcmp.eq.s32.totalorder %v4997_v41, 1 }
 0x202   : > { %3835 = vmatmul.msk.bf16.gmra.mxu1 %vm6867_vm14, %v4241_v44 }
 0x203   : > { %3828 = vmatmul.msk.bf16.gmra.mxu0 %vm6867_vm14, %v4242_v43 }
 0x208   : > { %3811 = vmatmul.msk.bf16.gmra.mxu2 %vm6867_vm14, %v4241_v44 }
 0x209   : > { %3820 = vmatmul.msk.bf16.gmra.mxu3 %vm6867_vm14, %v4242_v43 }
 0x212   : > { %3836 = vmatmul.msk.bf16.gmra.mxu1 %vm6867_vm14, %v4242_v43 }
 0x213   : > { %3829 = vmatmul.msk.bf16.gmra.mxu0 %vm6867_vm14, %v4243_v46 }
 0x218   : > { %3812 = vmatmul.msk.bf16.gmra.mxu2 %vm6867_vm14, %v4242_v43 }
 0x219   : > { %3821 = vmatmul.msk.bf16.gmra.mxu3 %vm6867_vm14, %v4243_v46 }
 0x222   : > { %3837 = vmatmul.msk.bf16.gmra.mxu1 %vm6867_vm14, %v4243_v46 }
 0x223   : > { %3830 = vmatmul.msk.bf16.gmra.mxu0 %vm6867_vm14, %v4244_v48 }
 0x228   : > { %3813 = vmatmul.msk.bf16.gmra.mxu2 %vm6867_vm14, %v4243_v46 }
 0x229   : > { %3822 = vmatmul.msk.bf16.gmra.mxu3 %vm6867_vm14, %v4244_v48 }
 0x232   : > { %3838 = vmatmul.msk.bf16.gmra.mxu1 %vm6867_vm14, %v4244_v48 }
 0x233   : > { %3831 = vmatmul.msk.bf16.gmra.mxu0 %vm6867_vm14, %v4245_v53 }
 0x238   : > { %3814 = vmatmul.msk.bf16.gmra.mxu2 %vm6867_vm14, %v4244_v48 }
 0x239   : > { %3823 = vmatmul.msk.bf16.gmra.mxu3 %vm6867_vm14, %v4245_v53 }
 0x240   : > { %v4870_v58 = vpop.f32.mrf.mxu0 }
 0x242   : > { %3839 = vmatmul.msk.bf16.gmra.mxu1 %vm6867_vm14, %v4245_v53 }
 0x248   : > { %v4888_v62 = vpop.f32.mrf.mxu0  ;;  %3815 = vmatmul.msk.bf16.gmra.mxu2 %vm6867_vm14, %v4245_v53  ;;  %vm6885_vm14 = vcmp.eq.s32.totalorder %v4831_v45, 1 }
 0x24c   : > { %v1213_v34 = vpop.f32.mrf.mxu3 }
 0x24d   : > { %v1381_v35 = vsel %vm1349_vm8, %v1213_v34, %v1269_v63 }
 0x24e   : > { %1584 = vst.msk [vmem:[%s4975_s0 + $0x80] sm:$0xff] %vm1567_vm9, %v1381_v35  ;;  %v1650_v39 = vpack.c.bf16 %v1381_v35, %v1381_v35 }
 0x24f   : > { %v4990_v36 = vpop.f32.mrf.mxu1 }
 0x250   : > { %v4994_v38 = vpop.f32.mrf.mxu0  ;;  %v5001_v43 = vunpack.c.l.b16 %v1650_v39 }
 0x252   : > { %6948 = vst [vmem:[#allocation26_spill] sm:$0xff] %v5001_v43 }
 0x254   : > { %v1215_v40 = vpop.f32.mrf.mxu3 }
 0x255   : > { %v1382_v42 = vsel %vm1350_vm10, %v1215_v40, %v1270_v26 }
 0x256   : > { %v1651_v44 = vpack.c.bf16 %v1382_v42, %v1382_v42  ;;  %1585 = vst.msk [vmem:[%s4975_s0 + $0x88] sm:$0xff] %vm1567_vm9, %v1382_v42  ;;  %v5024_v42 = vpop.permute.xlu1 %1311 }
 0x257   : > { %v5005_v46 = vpop.f32.mrf.mxu1  ;;  %vm1352_vm12 = vcmp.eq.s32.totalorder %v5024_v42, 1 }
 0x258   : > { %v5007_v48 = vpop.f32.mrf.mxu0  ;;  %v5009_v53 = vunpack.c.l.b16 %v1651_v44 }
 0x25a   : > { %6949 = vst [vmem:[#allocation27_spill] sm:$0xff] %v5009_v53 }
 0x25b   : > { %v1161_v34 = vpop.f32.mrf.mxu2 }
 0x25c   : > { %v1365_v26 = vsel %vm1349_vm8, %v1161_v34, %v1253_v0  ;;  %v1218_v35 = vpop.f32.mrf.mxu3 }
 0x25d   : > { %v1383_v39 = vsel %vm1351_vm11, %v1218_v35, %v1271_v2  ;;  %1568 = vst.msk [vmem:[%s4975_s0] sm:$0xff] %vm1567_vm9, %v1365_v26  ;;  %v1634_v0 = vpack.c.bf16 %v1365_v26, %v1365_v26 }
 0x25e   : > { %1586 = vst.msk [vmem:[%s4975_s0 + $0x90] sm:$0xff] %vm1567_vm9, %v1383_v39  ;;  %v1652_v63 = vpack.c.bf16 %v1383_v39, %v1383_v39 }
 0x25f   : > { %v5022_v40 = vpop.f32.mrf.mxu1  ;;  %v5040_v26 = vunpack.c.l.b16 %v1634_v0 }
 0x260   : > { %v5026_v44 = vpop.f32.mrf.mxu0  ;;  %v5036_v54 = vunpack.c.l.b16 %v1652_v63 }
 0x261   : > { %6951 = vst [vmem:[#allocation29_spill] sm:$0xff] %v5040_v26 }
 0x262   : > { %6950 = vst [vmem:[#allocation28_spill] sm:$0xff] %v5036_v54 }
 0x263   : > { %v1163_v34 = vpop.f32.mrf.mxu2 }
 0x264   : > { %v1366_v2 = vsel %vm1350_vm10, %v1163_v34, %v4895_v3  ;;  %v1220_v35 = vpop.f32.mrf.mxu3 }
 0x265   : > { %v1635_v8 = vpack.c.bf16 %v1366_v2, %v1366_v2  ;;  %v1384_v1 = vsel %vm1352_vm12, %v1220_v35, %v1272_v33  ;;  %1569 = vst.msk [vmem:[%s4975_s0 + $0x8] sm:$0xff] %vm1567_vm9, %v1366_v2 }
 0x266   : > { %v1653_v39 = vpack.c.bf16 %v1384_v1, %v1384_v1  ;;  %1587 = vst.msk [vmem:[%s4975_s0 + $0x98] sm:$0xff] %vm1567_vm9, %v1384_v1 }
 0x267   : > { %v5042_v43 = vunpack.c.l.b16 %v1635_v8  ;;  %v5044_v53 = vpop.f32.mrf.mxu1 }
 0x268   : > { %v5046_v3 = vpop.f32.mrf.mxu0  ;;  %v5048_v34 = vunpack.c.l.b16 %v1653_v39 }
 0x269   : > { %6952 = vst [vmem:[#allocation30_spill] sm:$0xff] %v5042_v43 }
 0x26a   : > { %6953 = vst [vmem:[#allocation31_spill] sm:$0xff] %v5048_v34 }
 0x26b   : > { %v1166_v2 = vpop.f32.mrf.mxu2 }
 0x26c   : > { %v1367_v8 = vsel %vm1351_vm11, %v1166_v2, %v4898_v4  ;;  %v1223_v1 = vpop.f32.mrf.mxu3 }
 0x26d   : > { %v1385_v0 = vsel %vm6878_vm15, %v1223_v1, %v4901_v5  ;;  %1570 = vst.msk [vmem:[%s4975_s0 + $0x10] sm:$0xff] %vm1567_vm9, %v1367_v8  ;;  %v1636_v63 = vpack.c.bf16 %v1367_v8, %v1367_v8 }
 0x26e   : > { %1588 = vst.msk [vmem:[%s4975_s0 + $0xa0] sm:$0xff] %vm1567_vm9, %v1385_v0  ;;  %v1654_v33 = vpack.c.bf16 %v1385_v0, %v1385_v0 }
 0x26f   : > { %v5065_v35 = vpop.f32.mrf.mxu1  ;;  %v5082_v8 = vunpack.c.l.b16 %v1636_v63 }
 0x270   : > { %v5067_v39 = vpop.f32.mrf.mxu0  ;;  %v5078_v43 = vunpack.c.l.b16 %v1654_v33 }
 0x271   : > { %6955 = vst [vmem:[#allocation33_spill] sm:$0xff] %v5082_v8 }
 0x272   : > { %6954 = vst [vmem:[#allocation32_spill] sm:$0xff] %v5078_v43 }
 0x273   : > { %v1168_v26 = vpop.f32.mrf.mxu2 }
 0x274   : > { %v1368_v4 = vsel %vm1352_vm12, %v1168_v26, %v4904_v6  ;;  %v1225_v2 = vpop.f32.mrf.mxu3 }
 0x275   : > { %v1637_v5 = vpack.c.bf16 %v1368_v4, %v1368_v4  ;;  %v1386_v1 = vsel %vm1354_vm1, %v1225_v2, %v4907_v7  ;;  %1571 = vst.msk [vmem:[%s4975_s0 + $0x18] sm:$0xff] %vm1567_vm9, %v1368_v4 }
 0x276   : > { %v1655_v54 = vpack.c.bf16 %v1386_v1, %v1386_v1  ;;  %1589 = vst.msk [vmem:[%s4975_s0 + $0xa8] sm:$0xff] %vm1567_vm9, %v1386_v1 }
 0x277   : > { %v5084_v0 = vunpack.c.l.b16 %v1637_v5  ;;  %v5086_v6 = vpop.f32.mrf.mxu1 }
 0x278   : > { %6957 = vst [vmem:[#allocation35_spill] sm:$0xff] %v5086_v6  ;;  %v5088_v26 = vunpack.c.l.b16 %v1655_v54  ;;  %v5090_v34 = vpop.f32.mrf.mxu0  ;;  %v5310_v6 = vld [vmem:[%s5224_s4 + $0xf8] sm:$0xff] }
 0x279   : > { %6956 = vst [vmem:[#allocation34_spill] sm:$0xff] %v5084_v0 }
 0x27a   : > { %6958 = vst [vmem:[#allocation36_spill] sm:$0xff] %v5088_v26 }
 0x27b   : > { %v1171_v4 = vpop.f32.mrf.mxu2 }
 0x27c   : > { %v1369_v63 = vsel %vm6878_vm15, %v1171_v4, %v4910_v9  ;;  %v1228_v2 = vpop.f32.mrf.mxu3 }
 0x27d   : > { %v1387_v54 = vsel %vm6876_vm2, %v1228_v2, %v4913_v10  ;;  %1572 = vst.msk [vmem:[%s4975_s0 + $0x20] sm:$0xff] %vm1567_vm9, %v1369_v63  ;;  %v1638_v33 = vpack.c.bf16 %v1369_v63, %v1369_v63 }
 0x27e   : > { %1590 = vst.msk [vmem:[%s4975_s0 + $0xb0] sm:$0xff] %vm1567_vm9, %v1387_v54  ;;  %v1656_v7 = vpack.c.bf16 %v1387_v54, %v1387_v54 }
 0x27f   : > { %v5107_v5 = vpop.f32.mrf.mxu1  ;;  %v5124_v63 = vunpack.c.l.b16 %v1638_v33 }
 0x280   : > { %6959 = vst [vmem:[#allocation37_spill] sm:$0xff] %v5107_v5  ;;  %v5109_v1 = vpop.f32.mrf.mxu0  ;;  %v5120_v0 = vunpack.c.l.b16 %v1656_v7  ;;  %v1519_v5 = vld [vmem:[%s5224_s4 + $0x80] sm:$0xff] }
 0x281   : > { %6961 = vst [vmem:[#allocation39_spill] sm:$0xff] %v5124_v63 }
 0x282   : > { %6960 = vst [vmem:[#allocation38_spill] sm:$0xff] %v5120_v0 }
 0x283   : > { %v1173_v8 = vpop.f32.mrf.mxu2 }
 0x284   : > { %v1370_v9 = vsel %vm1354_vm1, %v1173_v8, %v4916_v11  ;;  %v1230_v4 = vpop.f32.mrf.mxu3 }
 0x285   : > { %v1639_v10 = vpack.c.bf16 %v1370_v9, %v1370_v9  ;;  %v1388_v2 = vsel %vm1356_vm3, %v1230_v4, %v4919_v12  ;;  %1573 = vst.msk [vmem:[%s4975_s0 + $0x28] sm:$0xff] %vm1567_vm9, %v1370_v9 }
 0x286   : > { %v1657_v43 = vpack.c.bf16 %v1388_v2, %v1388_v2  ;;  %1591 = vst.msk [vmem:[%s4975_s0 + $0xb8] sm:$0xff] %vm1567_vm9, %v1388_v2 }
 0x287   : > { %v5126_v54 = vunpack.c.l.b16 %v1639_v10  ;;  %v5128_v11 = vpop.f32.mrf.mxu1 }
 0x288   : > { %6963 = vst [vmem:[#allocation41_spill] sm:$0xff] %v5128_v11  ;;  %v5130_v8 = vunpack.c.l.b16 %v1657_v43  ;;  %v5132_v26 = vpop.f32.mrf.mxu0 }
 0x289   : > { %6962 = vst [vmem:[#allocation40_spill] sm:$0xff] %v5126_v54 }
 0x28a   : > { %6964 = vst [vmem:[#allocation42_spill] sm:$0xff] %v5130_v8 }
 0x28b   : > { %v1176_v9 = vpop.f32.mrf.mxu2 }
 0x28c   : > { %v1371_v33 = vsel %vm6876_vm2, %v1176_v9, %v4922_v13  ;;  %v1233_v4 = vpop.f32.mrf.mxu3 }
 0x28d   : > { %v1389_v43 = vsel %vm1357_vm4, %v1233_v4, %v4925_v14  ;;  %1574 = vst.msk [vmem:[%s4975_s0 + $0x30] sm:$0xff] %vm1567_vm9, %v1371_v33  ;;  %v1640_v7 = vpack.c.bf16 %v1371_v33, %v1371_v33 }
 0x28e   : > { %1592 = vst.msk [vmem:[%s4975_s0 + $0xc0] sm:$0xff] %vm1567_vm9, %v1389_v43  ;;  %v1658_v12 = vpack.c.bf16 %v1389_v43, %v1389_v43 }
 0x28f   : > { %v5149_v10 = vpop.f32.mrf.mxu1  ;;  %v5166_v33 = vunpack.c.l.b16 %v1640_v7 }
 0x290   : > { %6965 = vst [vmem:[#allocation43_spill] sm:$0xff] %v5149_v10  ;;  %v5151_v2 = vpop.f32.mrf.mxu0  ;;  %v5162_v54 = vunpack.c.l.b16 %v1658_v12  ;;  %v1506_v10 = vld [vmem:[%s5224_s4 + $0x18] sm:$0xff] }
 0x291   : > { %6967 = vst [vmem:[#allocation45_spill] sm:$0xff] %v5166_v33 }
 0x292   : > { %6966 = vst [vmem:[#allocation44_spill] sm:$0xff] %v5162_v54 }
 0x293   : > { %v1178_v63 = vpop.f32.mrf.mxu2 }
 0x294   : > { %v1372_v13 = vsel %vm1356_vm3, %v1178_v63, %v4928_v15  ;;  %v1235_v9 = vpop.f32.mrf.mxu3 }
 0x295   : > { %v1641_v14 = vpack.c.bf16 %v1372_v13, %v1372_v13  ;;  %v1390_v4 = vsel %vm6888_vm5, %v1235_v9, %v4931_v16  ;;  %1575 = vst.msk [vmem:[%s4975_s0 + $0x38] sm:$0xff] %vm1567_vm9, %v1372_v13 }
 0x296   : > { %v1659_v0 = vpack.c.bf16 %v1390_v4, %v1390_v4  ;;  %1593 = vst.msk [vmem:[%s4975_s0 + $0xc8] sm:$0xff] %vm1567_vm9, %v1390_v4 }
 0x297   : > { %v5168_v43 = vunpack.c.l.b16 %v1641_v14  ;;  %v5170_v15 = vpop.f32.mrf.mxu1 }
 0x298   : > { %6969 = vst [vmem:[#allocation47_spill] sm:$0xff] %v5170_v15  ;;  %v5172_v63 = vunpack.c.l.b16 %v1659_v0  ;;  %v5174_v8 = vpop.f32.mrf.mxu0 }
 0x299   : > { %6968 = vst [vmem:[#allocation46_spill] sm:$0xff] %v5168_v43 }
 0x29a   : > { %6970 = vst [vmem:[#allocation48_spill] sm:$0xff] %v5172_v63  ;;  %v5253_v63 = vld [vmem:[%s5224_s4 + $0xd0] sm:$0xff] }
 0x29b   : > { %v1181_v13 = vpop.f32.mrf.mxu2  ;;  %6982 = vst [vmem:[#allocation59_spill] sm:$0xff] %v5253_v63  ;;  %v1515_v63 = vld [vmem:[%s5224_s4 + $0x60] sm:$0xff] }
 0x29c   : > { %v1373_v7 = vsel %vm1357_vm4, %v1181_v13, %v4934_v17  ;;  %v1238_v9 = vpop.f32.mrf.mxu3 }
 0x29d   : > { %v5187_v0 = vsel %vm6887_vm6, %v1238_v9, %v4937_v18  ;;  %1576 = vst.msk [vmem:[%s4975_s0 + $0x40] sm:$0xff] %vm1567_vm9, %v1373_v7  ;;  %v1642_v16 = vpack.c.bf16 %v1373_v7, %v1373_v7 }
 0x29e   : > { %6971 = vst [vmem:[#allocation49_spill] sm:$0xff] %v5187_v0 }
 0x29f   : > { %1594 = vst.msk [vmem:[%s4975_s0 + $0xd0] sm:$0xff] %vm1567_vm9, %v5187_v0  ;;  %v5194_v14 = vpop.f32.mrf.mxu1  ;;  %v5212_v33 = vunpack.c.l.b16 %v1642_v16  ;;  %v5231_v16 = vld [vmem:[%s5224_s4 + $0x90] sm:$0xff]  ;;  %v1511_v0 = vld [vmem:[%s5224_s4 + $0x40] sm:$0xff] }
 0x2a0   : > { %6972 = vst [vmem:[#allocation50_spill] sm:$0xff] %v5194_v14  ;;  %v5196_v4 = vpop.f32.mrf.mxu0  ;;  %v1514_v14 = vld [vmem:[%s5224_s4 + $0x58] sm:$0xff] }
 0x2a1   : > { %6974 = vst [vmem:[#allocation52_spill] sm:$0xff] %v5212_v33  ;;  %v5247_v33 = vld [vmem:[%s5224_s4 + $0xc0] sm:$0xff] }
 0x2a2   : > { %6980 = vst [vmem:[#allocation57_spill] sm:$0xff] %v5247_v33  ;;  %v1503_v33 = vld [vmem:[%s5224_s4] sm:$0xff] }
 0x2a3   : > { %v1183_v17 = vpop.f32.mrf.mxu2 }
 0x2a4   : > { %v1374_v13 = vsel %vm6888_vm5, %v1183_v17, %v4940_v19  ;;  %v1240_v18 = vpop.f32.mrf.mxu3  ;;  %v1508_v17 = vld [vmem:[%s5224_s4 + $0x28] sm:$0xff]  ;;  %v5244_v19 = vld [vmem:[%s5224_s4 + $0xb8] sm:$0xff] }
 0x2a5   : > { %v1643_v9 = vpack.c.bf16 %v1374_v13, %v1374_v13  ;;  %v5205_v12 = vsel %vm6886_vm7, %v1240_v18, %v4943_v20  ;;  %1577 = vst.msk [vmem:[%s4975_s0 + $0x48] sm:$0xff] %vm1567_vm9, %v1374_v13  ;;  %v1507_v20 = vld [vmem:[%s5224_s4 + $0x20] sm:$0xff]  ;;  %v5238_v18 = vld [vmem:[%s5224_s4 + $0xa8] sm:$0xff] }
 0x2a6   : > { %6973 = vst [vmem:[#allocation51_spill] sm:$0xff] %v5205_v12  ;;  %v5235_v13 = vld [vmem:[%s5224_s4 + $0xa0] sm:$0xff] }
 0x2a7   : > { %1595 = vst.msk [vmem:[%s4975_s0 + $0xd8] sm:$0xff] %vm1567_vm9, %v5205_v12  ;;  %v5214_v7 = vunpack.c.l.b16 %v1643_v9  ;;  %v5216_v43 = vpop.f32.mrf.mxu1  ;;  %v5241_v9 = vld [vmem:[%s5224_s4 + $0xb0] sm:$0xff]  ;;  %v5262_v12 = vld [vmem:[%s5224_s4 + $0xe8] sm:$0xff] }
 0x2a8   : > { %6976 = vst [vmem:[#allocation54_spill] sm:$0xff] %v5216_v43  ;;  %v5218_v54 = vpop.f32.mrf.mxu0  ;;  %v1512_v43 = vld [vmem:[%s5224_s4 + $0x48] sm:$0xff] }
 0x2a9   : > { %6975 = vst [vmem:[#allocation53_spill] sm:$0xff] %v5214_v7  ;;  %v5250_v7 = vld [vmem:[%s5224_s4 + $0xc8] sm:$0xff] }
 0x2aa   : > { %6978 = vst [vmem:[#allocation55_spill] sm:$0xff] %v5241_v9  ;;  %v5307_v9 = vld [vmem:[%s5224_s4 + $0xf0] sm:$0xff] }
 0x2ab   : > { %6979 = vst [vmem:[#allocation56_spill] sm:$0xff] %v5244_v19  ;;  %v1186_v31 = vpop.f32.mrf.mxu2  ;;  %v5296_v19 = vsel %vm1351_vm11, %v4994_v38, %v1505_v28  ;;  %v5321_v38 = vsel %vm1352_vm12, %v5007_v48, %v1506_v10  ;;  %v5340_v48 = vsel %vm6878_vm15, %v5026_v44, %v1507_v20  ;;  %v1547_v20 = vsel %vm6885_vm14, %v5196_v4, %v1515_v63 }
 0x2ac   : > { %6981 = vst [vmem:[#allocation58_spill] sm:$0xff] %v5250_v7  ;;  %v5281_v24 = vsel %vm6887_vm6, %v1186_v31, %v4946_v21  ;;  %v1243_v15 = vpop.f32.mrf.mxu3  ;;  %v1517_v7 = vld [vmem:[%s5224_s4 + $0x70] sm:$0xff]  ;;  %v1504_v21 = vld [vmem:[%s5224_s4 + $0x8] sm:$0xff]  ;;  %v5300_v31 = vld [vmem:[%s5224_s4 + $0x98] sm:$0xff]  ;;  %v1858_v63 = vpack.c.bf16 %v1547_v20, %v1547_v20 }
 0x2ad   : > { %6985 = vst [vmem:[#allocation62_spill] sm:$0xff] %v5262_v12  ;;  %v1518_v12 = vld [vmem:[%s5224_s4 + $0x78] sm:$0xff]  ;;  %v5291_v11 = vsel %vm6885_vm14, %v1243_v15, %v4949_v22  ;;  %v1520_v22 = vld [vmem:[%s5224_s4 + $0x88] sm:$0xff]  ;;  %v5326_v15 = vsel %vm1349_vm8, %v4870_v58, %v1503_v33  ;;  %v5348_v58 = vsel %vm1354_vm1, %v5046_v3, %v1508_v17  ;;  %v5367_v3 = vsel %vm6876_vm2, %v5067_v39, %v1509_v25 }
 0x2ae   : > { %6987 = vst [vmem:[#allocation63_spill] sm:$0xff] %v5281_v24  ;;  %v1548_v25 = vsel %vm6884_vm0, %v5218_v54, %v1516_v29  ;;  %vm6882_vm2 = vcmp.eq.s32.totalorder %v4855_v52, 1  ;;  %v1544_v39 = vsel %vm6888_vm5, %v5132_v26, %v1512_v43  ;;  %v1545_v54 = vsel %vm6887_vm6, %v5151_v2, %v1513_v32 }
 0x2af   : > { %1578 = vst.msk [vmem:[%s4975_s0 + $0x50] sm:$0xff] %vm1567_vm9, %v5281_v24  ;;  %v5316_v28 = vpop.f32.mrf.mxu1  ;;  %v5331_v24 = vsel %vm1350_vm10, %v4888_v62, %v1504_v21  ;;  %v1856_v32 = vpack.c.bf16 %v1545_v54, %v1545_v54 }
 0x2b0   : > { %1596 = vst.msk [vmem:[%s4975_s0 + $0xe0] sm:$0xff] %vm1567_vm9, %v5291_v11  ;;  %v1446_v10 = vpop.f32.mrf.mxu0 }
 0x2b1   : > { %6988 = vst [vmem:[#allocation64_spill] sm:$0xff] %v5331_v24  ;;  %v1549_v62 = vsel %vm6883_vm13, %v1446_v10, %v1517_v7  ;;  %v5377_v7 = vsel %vm1356_vm3, %v5090_v34, %v1510_v23  ;;  %v1543_v23 = vsel %vm1357_vm4, %v5109_v1, %v1511_v0  ;;  %v1546_v1 = vsel %vm6886_vm7, %v5174_v8, %v1514_v14 }
 0x2b2   : > { %1602 = vst.msk [vmem:[%s5268_s7 + $0x10] sm:$0xff] %vm1567_vm9, %v5296_v19  ;;  %v1860_v34 = vpack.c.bf16 %v1549_v62, %v1549_v62  ;;  %v1859_v0 = vpack.c.bf16 %v1548_v25, %v1548_v25  ;;  %v1857_v2 = vpack.c.bf16 %v1546_v1, %v1546_v1  ;;  %v1906_v14 = vunpack.c.l.b16 %v1858_v63 }
 0x2b3   : > { %1600 = vst.msk [vmem:[%s5268_s7] sm:$0xff] %vm1567_vm9, %v5326_v15  ;;  %v5359_v44 = vpop.f32.mrf.mxu2 }
 0x2b4   : > { %1601 = vst.msk [vmem:[%s5268_s7 + $0x8] sm:$0xff] %vm1567_vm9, %v5331_v24  ;;  %v5369_v33 = vpop.f32.mrf.mxu3  ;;  %v1908_v43 = vunpack.c.l.b16 %v1860_v34  ;;  %v1907_v21 = vunpack.c.l.b16 %v1859_v0  ;;  %v5428_v34 = vsel %vm1350_vm10, %v5005_v46, %v1520_v22  ;;  %v1854_v46 = vpack.c.bf16 %v1543_v23, %v1543_v23  ;;  %v6994_v0 = vld [vmem:[#allocation41_spill] sm:$0xff] }
 0x2b5   : > { %1603 = vst.msk [vmem:[%s5268_s7 + $0x18] sm:$0xff] %vm1567_vm9, %v5321_v38  ;;  %v1855_v22 = vpack.c.bf16 %v1544_v39, %v1544_v39 }
 0x2b6   : > { %1604 = vst.msk [vmem:[%s5268_s7 + $0x20] sm:$0xff] %vm1567_vm9, %v5340_v48 }
 0x2b7   : > { %1605 = vst.msk [vmem:[%s5268_s7 + $0x28] sm:$0xff] %vm1567_vm9, %v5348_v58  ;;  %v1495_v29 = vpop.f32.mrf.mxu1  ;;  %v1903_v63 = vunpack.c.l.b16 %v1855_v22  ;;  %v6999_v22 = vld [vmem:[#allocation58_spill] sm:$0xff] }
 0x2b8   : > { %1606 = vst.msk [vmem:[%s5268_s7 + $0x30] sm:$0xff] %vm1567_vm9, %v5367_v3  ;;  %v1448_v4 = vpop.f32.mrf.mxu0 }
 0x2b9   : > { %1607 = vst.msk [vmem:[%s5268_s7 + $0x38] sm:$0xff] %vm1567_vm9, %v5377_v7  ;;  %v1550_v26 = vsel %vm6882_vm2, %v1448_v4, %v1518_v12  ;;  %v5421_v12 = vsel %vm1349_vm8, %v4990_v36, %v1519_v5  ;;  %v5442_v36 = vsel %vm6878_vm15, %v5065_v35, %v5235_v13  ;;  %v1852_v35 = vpack.c.bf16 %v5367_v3, %v5367_v3 }
 0x2ba   : > { %1608 = vst.msk [vmem:[%s5268_s7 + $0x40] sm:$0xff] %vm1567_vm9, %v1543_v23  ;;  %v1861_v17 = vpack.c.bf16 %v1550_v26, %v1550_v26  ;;  %v1905_v13 = vunpack.c.l.b16 %v1857_v2  ;;  %v1916_v23 = vpack.c.b16 %v1907_v21, %v1906_v14  ;;  %v1853_v3 = vpack.c.bf16 %v5377_v7, %v5377_v7  ;;  %v6993_v7 = vld [vmem:[#allocation56_spill] sm:$0xff]  ;;  %v6997_v2 = vld [vmem:[#allocation61_spill] sm:$0xff]  ;;  %v6998_v21 = vld [vmem:[#allocation62_spill] sm:$0xff] }
 0x2bb   : > { %1609 = vst.msk [vmem:[%s5268_s7 + $0x48] sm:$0xff] %vm1567_vm9, %v1544_v39  ;;  %v5414_v8 = vpop.f32.mrf.mxu2  ;;  %v6990_v39 = vld [vmem:[#allocation55_spill] sm:$0xff]  ;;  %vm6992_vm15 = vcmp.eq.s32.totalorder %v4853_v51, 1  ;;  %v5498_v4 = vsel %vm1356_vm3, %v6994_v0, %v6993_v7  ;;  %v1563_v14 = vsel %vm6885_vm14, %v5316_v28, %v6997_v2 }
 0x2bc   : > { %1610 = vst.msk [vmem:[%s5268_s7 + $0x50] sm:$0xff] %vm1567_vm9, %v1545_v54  ;;  %v1909_v10 = vunpack.c.l.b16 %v1861_v17  ;;  %v1248_v24 = vpop.f32.mrf.mxu3  ;;  %v6991_v54 = vld [vmem:[#allocation37_spill] sm:$0xff] }
 0x2bd   : > { %1611 = vst.msk [vmem:[%s5268_s7 + $0x58] sm:$0xff] %vm1567_vm9, %v1546_v1  ;;  %v1902_v1 = vunpack.c.l.b16 %v1854_v46 }
 0x2be   : > { %1612 = vst.msk [vmem:[%s5268_s7 + $0x60] sm:$0xff] %vm1567_vm9, %v1547_v20  ;;  %v5436_v20 = vsel %vm1351_vm11, %v5022_v40, %v5231_v16  ;;  %v1917_v5 = vpack.c.b16 %v1909_v10, %v1908_v43  ;;  %v5455_v40 = vsel %vm1352_vm12, %v5044_v53, %v5300_v31  ;;  %v1904_v16 = vunpack.c.l.b16 %v1856_v32  ;;  %v6989_v53 = vld [vmem:[#allocation35_spill] sm:$0xff] }
 0x2bf   : > { %1613 = vst.msk [vmem:[%s5268_s7 + $0x68] sm:$0xff] %vm1567_vm9, %v1548_v25  ;;  %v1498_v25 = vpop.f32.mrf.mxu1  ;;  %v5473_v31 = vsel %vm1354_vm1, %v6989_v53, %v5238_v18  ;;  %v6996_v43 = vld [vmem:[#allocation43_spill] sm:$0xff]  ;;  %v1564_v10 = vsel %vm6884_vm0, %v1495_v29, %v6998_v21  ;;  %v7001_v53 = vld [vmem:[#allocation20_spill] sm:$0xff] }
 0x2c0   : > { %1614 = vst.msk [vmem:[%s5268_s7 + $0x70] sm:$0xff] %vm1567_vm9, %v1549_v62  ;;  %v5449_v62 = vsel %vm6883_vm13, %v1248_v24, %v4963_v27  ;;  %1926 = vmatpush.bf16.msra.mxu0 %v1917_v5  ;;  %v1850_v24 = vpack.c.bf16 %v5340_v48, %v5340_v48  ;;  %v1851_v27 = vpack.c.bf16 %v5348_v58, %v5348_v58 }
 0x2c1   : > { %1615 = vst.msk [vmem:[%s5268_s7 + $0x78] sm:$0xff] %vm1567_vm9, %v1550_v26  ;;  %v5484_v48 = vsel %vm6992_vm15, %v6991_v54, %v6990_v39  ;;  %v1664_v58 = vpack.c.bf16 %v5449_v62, %v5449_v62  ;;  %v1565_v18 = vsel %vm6883_vm13, %v1498_v25, %v5307_v9  ;;  %v6995_v26 = vld [vmem:[#allocation57_spill] sm:$0xff]  ;;  %v5509_v9 = vunpack.c.l.b16 %v1852_v35  ;;  %v7000_v25 = vld [vmem:[#allocation47_spill] sm:$0xff]  ;;  %v7004_v54 = vld [vmem:[#allocation50_spill] sm:$0xff] }
 0x2c2   : > { %1616 = vst.msk [vmem:[%s5268_s7 + $0x80] sm:$0xff] %vm1567_vm9, %v5421_v12  ;;  %v5504_v17 = vsel %vm1357_vm4, %v6996_v43, %v6995_v26  ;;  %v1915_v46 = vpack.c.b16 %v1905_v13, %v1904_v16  ;;  %v5525_v35 = vsel %vm6888_vm5, %v7000_v25, %v6999_v22  ;;  %v5531_v28 = vsel %vm6884_vm0, %v5369_v33, %v7001_v53  ;;  %v7002_v39 = vld [vmem:[#allocation23_spill] sm:$0xff]  ;;  %v7005_v26 = vld [vmem:[#allocation60_spill] sm:$0xff]  ;;  %v7006_v43 = vld [vmem:[#allocation54_spill] sm:$0xff] }
 0x2c3   : > { %1617 = vst.msk [vmem:[%s5268_s7 + $0x88] sm:$0xff] %vm1567_vm9, %v5428_v34  ;;  %v1193_v32 = vpop.f32.mrf.mxu2  ;;  %v1876_v29 = vpack.c.bf16 %v1565_v18, %v1565_v18  ;;  %v1901_v13 = vunpack.c.l.b16 %v1853_v3  ;;  %v1776_v0 = vunpack.c.l.b16 %v1664_v58  ;;  %v1562_v2 = vsel %vm6886_vm7, %v7006_v43, %v7005_v26 }
 0x2c4   : > { %1618 = vst.msk [vmem:[%s5268_s7 + $0x90] sm:$0xff] %vm1567_vm9, %v5436_v20  ;;  %v1250_v5 = vpop.f32.mrf.mxu3  ;;  %1927 = vmatpush.bf16.msra.mxu0 %v1916_v23  ;;  %v7003_v23 = vld [vmem:[#allocation59_spill] sm:$0xff]  ;;  %v1874_v3 = vpack.c.bf16 %v1563_v14, %v1563_v14  ;;  %v1875_v21 = vpack.c.bf16 %v1564_v10, %v1564_v10  ;;  %v1914_v22 = vpack.c.b16 %v1903_v63, %v1902_v1  ;;  %v1898_v1 = vunpack.c.l.b16 %v1850_v24 }
 0x2c5   : > { %1619 = vst.msk [vmem:[%s5268_s7 + $0x98] sm:$0xff] %vm1567_vm9, %v5455_v40  ;;  %v5536_v16 = vsel %vm6882_vm2, %v1250_v5, %v7002_v39  ;;  %v1561_v7 = vsel %vm6887_vm6, %v7004_v54, %v7003_v23  ;;  %v1662_v58 = vpack.c.bf16 %v5291_v11, %v5291_v11  ;;  %v1663_v25 = vpack.c.bf16 %v5531_v28, %v5531_v28  ;;  %v7007_v11 = vld [vmem:[#allocation49_spill] sm:$0xff] }
 0x2c6   : > { %1620 = vst.msk [vmem:[%s5268_s7 + $0xa0] sm:$0xff] %vm1567_vm9, %v5442_v36  ;;  %v1665_v33 = vpack.c.bf16 %v5536_v16, %v5536_v16  ;;  %v1969_v63 = vunpack.c.l.b16 %v1876_v29  ;;  %v1899_v54 = vunpack.c.l.b16 %v1851_v27  ;;  %v1660_v26 = vpack.c.bf16 %v7007_v11, %v7007_v11  ;;  %v7008_v27 = vld [vmem:[#allocation19_spill] sm:$0xff] }
 0x2c7   : > { %1621 = vst.msk [vmem:[%s5268_s7 + $0xa8] sm:$0xff] %vm1567_vm9, %v5473_v31  ;;  %v1500_v5 = vpop.f32.mrf.mxu1  ;;  %v1913_v24 = vpack.c.b16 %v1901_v13, %v5509_v9  ;;  %v1774_v29 = vunpack.c.l.b16 %v1662_v58  ;;  %v5580_v11 = vsel %vm6886_vm7, %v5359_v44, %v7008_v27  ;;  %v7010_v44 = vld [vmem:[#allocation51_spill] sm:$0xff]  ;;  %vm7050_vm15 = vcmask 261120  }
 0x2c8   : > { %1622 = vst.msk [vmem:[%s5268_s7 + $0xb0] sm:$0xff] %vm1567_vm9, %v5484_v48  ;;  %v1777_v53 = vunpack.c.l.b16 %v1665_v33  ;;  %v1566_v39 = vsel %vm6882_vm2, %v1500_v5, %v5310_v6  ;;  %1928 = vmatpush.bf16.msra.mxu0 %v1915_v46  ;;  %v1872_v33 = vpack.c.bf16 %v1561_v7, %v1561_v7  ;;  %v1967_v6 = vunpack.c.l.b16 %v1874_v3 }
 0x2c9   : > { %1623 = vst.msk [vmem:[%s5268_s7 + $0xb8] sm:$0xff] %vm1567_vm9, %v5498_v4  ;;  %v1877_v23 = vpack.c.bf16 %v1566_v39, %v1566_v39  ;;  %v1968_v46 = vunpack.c.l.b16 %v1875_v21  ;;  %v1873_v3 = vpack.c.bf16 %v1562_v2, %v1562_v2  ;;  %v7009_v21 = vld [vmem:[#allocation21_spill] sm:$0xff]  ;;  %v1661_v13 = vpack.c.bf16 %v7010_v44, %v7010_v44 }
 0x2ca   : > { %1624 = vst.msk [vmem:[%s5268_s7 + $0xc0] sm:$0xff] %vm1567_vm9, %v5504_v17  ;;  %v1785_v43 = vpack.c.b16 %v1777_v53, %v1776_v0  ;;  %v5589_v9 = vsel %vm6885_vm14, %v5414_v8, %v7009_v21  ;;  %v7012_v8 = vld [vmem:[#allocation24_spill] sm:$0xff] }
 0x2cb   : > { %1625 = vst.msk [vmem:[%s5268_s7 + $0xc8] sm:$0xff] %vm1567_vm9, %v5525_v35  ;;  %v1970_v5 = vunpack.c.l.b16 %v1877_v23  ;;  %v1196_v60 = vpop.f32.mrf.mxu2  ;;  %v1977_v53 = vpack.c.b16 %v1968_v46, %v1967_v6  ;;  %v1966_v23 = vunpack.c.l.b16 %v1873_v3  ;;  %v1869_v6 = vpack.c.bf16 %v5498_v4, %v5498_v4 }
 0x2cc   : > { %1626 = vst.msk [vmem:[%s5268_s7 + $0xd0] sm:$0xff] %vm1567_vm9, %v1561_v7  ;;  %v1775_v7 = vunpack.c.l.b16 %v1663_v25  ;;  %1929 = vmatpush.bf16.msra.mxu0 %v1914_v22  ;;  %v1811_v0 = vsel %vm1567_vm9, %v1785_v43, 0  ;;  %v7011_v22 = vld [vmem:[#allocation22_spill] sm:$0xff]  ;;  %v1912_v25 = vpack.c.b16 %v1899_v54, %v1898_v1  ;;  %v1965_v1 = vunpack.c.l.b16 %v1872_v33  ;;  %v7014_v33 = vld [vmem:[#allocation25_spill] sm:$0xff] }
 0x2cd   : > { %1627 = vst.msk [vmem:[%s5268_s7 + $0xd8] sm:$0xff] %vm1567_vm9, %v1562_v2  ;;  %1813 = vmatpush.bf16.xpose.msra.mxu3 %v1811_v0  ;;  %v1378_v58 = vsel %vm6884_vm0, %v1193_v32, %v7011_v22  ;;  %v1849_v2 = vpack.c.bf16 %v5321_v38, %v5321_v38  ;;  %v7013_v38 = vld [vmem:[#allocation64_spill] sm:$0xff]  ;;  %v1772_v46 = vunpack.c.l.b16 %v1660_v26  ;;  %v1866_v3 = vpack.c.bf16 %v5442_v36, %v5442_v36 }
 0x2ce   : > { %1628 = vst.msk [vmem:[%s5268_s7 + $0xe0] sm:$0xff] %vm1567_vm9, %v1563_v14  ;;  %v1978_v14 = vpack.c.b16 %v1970_v5, %v1969_v63  ;;  %v1784_v32 = vpack.c.b16 %v1775_v7, %v1774_v29  ;;  %v1847_v63 = vpack.c.bf16 %v7013_v38, %v7013_v38  ;;  %v1976_v0 = vpack.c.b16 %v1966_v23, %v1965_v1  ;;  %v7015_v1 = vld [vmem:[#allocation63_spill] sm:$0xff] }
 0x2cf   : > { %1629 = vst.msk [vmem:[%s5268_s7 + $0xe8] sm:$0xff] %vm1567_vm9, %v1564_v10  ;;  %v1848_v10 = vpack.c.bf16 %v5296_v19, %v5296_v19  ;;  %v1846_v19 = vpack.c.bf16 %v5326_v15, %v5326_v15  ;;  %v1868_v15 = vpack.c.bf16 %v5484_v48, %v5484_v48  ;;  %v1897_v43 = vunpack.c.l.b16 %v1849_v2 }
 0x2d0   : > { %1630 = vst.msk [vmem:[%s5268_s7 + $0xf0] sm:$0xff] %vm1567_vm9, %v1565_v18  ;;  %v1379_v18 = vsel %vm6883_vm13, %v1196_v60, %v7012_v8  ;;  %1987 = vmatpush.bf16.msrb.mxu1 %v1978_v14  ;;  %1930 = vmatpush.bf16.msra.mxu0 %v1913_v24  ;;  %v1870_v60 = vpack.c.bf16 %v5504_v17, %v5504_v17  ;;  %v1773_v17 = vunpack.c.l.b16 %v1661_v13  ;;  %v1808_v24 = vsel %vm1567_vm9, %v1784_v32, 0 }
 0x2d1   : > { %1631 = vst.msk [vmem:[%s5268_s7 + $0xf8] sm:$0xff] %vm1567_vm9, %v1566_v39  ;;  %v1871_v39 = vpack.c.bf16 %v5525_v35, %v5525_v35  ;;  %v1896_v54 = vunpack.c.l.b16 %v1848_v10  ;;  %v1648_v5 = vpack.c.bf16 %v1379_v18, %v1379_v18  ;;  %v1894_v29 = vunpack.c.l.b16 %v1846_v19 }
 0x2d2   : > { %1579 = vst.msk [vmem:[%s4975_s0 + $0x58] sm:$0xff] %vm1567_vm9, %v5580_v11  ;;  %v1895_v27 = vunpack.c.l.b16 %v1847_v63  ;;  %v1963_v4 = vunpack.c.l.b16 %v1870_v60  ;;  %v1647_v21 = vpack.c.bf16 %v1378_v58, %v1378_v58  ;;  %v1961_v13 = vunpack.c.l.b16 %v1868_v15 }
 0x2d3   : > { %1580 = vst.msk [vmem:[%s4975_s0 + $0x60] sm:$0xff] %vm1567_vm9, %v5589_v9  ;;  %v1198_v35 = vpop.f32.mrf.mxu2  ;;  %v1964_v26 = vunpack.c.l.b16 %v1871_v39  ;;  %v1696_v14 = vunpack.c.l.b16 %v1648_v5  ;;  %v1783_v10 = vpack.c.b16 %v1773_v17, %v1772_v46  ;;  %v1962_v2 = vunpack.c.l.b16 %v1869_v6  ;;  %v7017_v46 = vld [vmem:[#allocation44_spill] sm:$0xff] }
 0x2d4   : > { %1581 = vst.msk [vmem:[%s4975_s0 + $0x68] sm:$0xff] %vm1567_vm9, %v1378_v58  ;;  %1988 = vmatpush.bf16.msrb.mxu1 %v1977_v53  ;;  %v1380_v48 = vsel %vm6882_vm2, %v1198_v35, %v7014_v33  ;;  %1931 = vmatpush.bf16.msra.mxu0 %v1912_v25  ;;  %v1910_v22 = vpack.c.b16 %v1895_v27, %v1894_v29  ;;  %v1695_v25 = vunpack.c.l.b16 %v1647_v21  ;;  %v1959_v53 = vunpack.c.l.b16 %v1866_v3  ;;  %v7019_v27 = vld [vmem:[#allocation42_spill] sm:$0xff]  ;;  %vm7051_vm2 = vmmov %vm7050_vm15 }
 0x2d5   : > { %1582 = vst.msk [vmem:[%s4975_s0 + $0x70] sm:$0xff] %vm1567_vm9, %v1379_v18  ;;  %v1649_v7 = vpack.c.bf16 %v1380_v48, %v1380_v48  ;;  %1814 = vmatpush.bf16.xpose.msra.mxu3 %v1808_v24  ;;  %v1646_v8 = vpack.c.bf16 %v5589_v9, %v5589_v9  ;;  %v1864_v58 = vpack.c.bf16 %v5436_v20, %v5436_v20  ;;  %vm7052_vm13 = vmmov %vm7051_vm2  ;;  %vm7054_vm0 = vcmask 261120  }
 0x2d6   : > { %1597 = vst.msk [vmem:[%s4975_s0 + $0xe8] sm:$0xff] %vm1567_vm9, %v5531_v28  ;;  %v1911_v28 = vpack.c.b16 %v1897_v43, %v1896_v54  ;;  %v1974_v38 = vpack.c.b16 %v1962_v2, %v1961_v13  ;;  %v1865_v9 = vpack.c.bf16 %v5455_v40, %v5455_v40  ;;  %v1645_v63 = vpack.c.bf16 %v5580_v11, %v5580_v11  ;;  %v7016_v11 = vld [vmem:[#allocation48_spill] sm:$0xff] }
 0x2d7   : > { %1598 = vst.msk [vmem:[%s4975_s0 + $0xf0] sm:$0xff] %vm1567_vm9, %v5449_v62  ;;  %v1697_v44 = vunpack.c.l.b16 %v1649_v7  ;;  %v1867_v62 = vpack.c.bf16 %v5473_v31, %v5473_v31  ;;  %v1805_v31 = vsel %vm1567_vm9, %v1783_v10, 0  ;;  %v1694_v19 = vunpack.c.l.b16 %v1646_v8  ;;  %v7029_v10 = vld [vmem:[#allocation45_spill] sm:$0xff] }
 0x2d8   : > { %1583 = vst.msk [vmem:[%s4975_s0 + $0x78] sm:$0xff] %vm1567_vm9, %v1380_v48  ;;  %1989 = vmatpush.bf16.msrb.mxu1 %v1976_v0  ;;  %1932 = vmatpush.bf16.msra.mxu0 %v1911_v28  ;;  %v1957_v39 = vunpack.c.l.b16 %v1864_v58  ;;  %v1644_v20 = vpack.c.bf16 %v7015_v1, %v7015_v1  ;;  %v1958_v15 = vunpack.c.l.b16 %v1865_v9  ;;  %v1862_v54 = vpack.c.bf16 %v5421_v12, %v5421_v12  ;;  %v7022_v0 = vld [vmem:[#allocation53_spill] sm:$0xff]  ;;  %v7023_v28 = vld [vmem:[#allocation52_spill] sm:$0xff]  ;;  %v4342_v58 = vld [vmem:[%s6819_s9 + $0x1] ss:$0 sm:$0xff] }
 0x2d9   : > { %1599 = vst.msk [vmem:[%s4975_s0 + $0xf8] sm:$0xff] %vm1567_vm9, %v5536_v16  ;;  %v1705_v18 = vpack.c.b16 %v1697_v44, %v1696_v14  ;;  %v1975_v16 = vpack.c.b16 %v1964_v26, %v1963_v4  ;;  %v1960_v32 = vunpack.c.l.b16 %v1867_v62  ;;  %v1704_v60 = vpack.c.b16 %v1695_v25, %v1694_v19  ;;  %v7020_v4 = vld [vmem:[#allocation38_spill] sm:$0xff]  ;;  %v7025_v14 = vld [vmem:[#allocation36_spill] sm:$0xff]  ;;  %v6084_v52 = vld [vmem:[%s5224_s4 + $0x1d8] sm:$0xff] }
 0x2da   : > { %v1863_v43 = vpack.c.bf16 %v5428_v34, %v5428_v34  ;;  %v1693_v6 = vunpack.c.l.b16 %v1645_v63  ;;  %v7018_v17 = vpack.c.b16 %v7016_v11, %v7017_v46  ;;  %v1692_v35 = vunpack.c.l.b16 %v1644_v20  ;;  %v7026_v44 = vld [vmem:[#allocation32_spill] sm:$0xff]  ;;  %v7038_v9 = vld [vmem:[#allocation26_spill] sm:$0xff]  ;;  %v7045_v11 = vld [vmem:[#allocation29_spill] sm:$0xff]  ;;  %7111 = vst [vmem:[#allocation54_spill] sm:$0xff] %v6084_v52 }
 0x2db   : > { %v1731_v36 = vsel %vm1567_vm9, %v1705_v18, 0  ;;  %v1973_v23 = vpack.c.b16 %v1960_v32, %v1959_v53  ;;  %v1728_v40 = vsel %vm1567_vm9, %v1704_v60, 0  ;;  %v1972_v33 = vpack.c.b16 %v1958_v15, %v1957_v39  ;;  %v7031_v18 = vld [vmem:[#allocation31_spill] sm:$0xff]  ;;  %v7034_v53 = vld [vmem:[#allocation40_spill] sm:$0xff]  ;;  %v7040_v39 = vld [vmem:[#allocation13_spill] sm:$0xff] }
 0x2dc   : > { %1990 = vmatpush.bf16.msrb.mxu1 %v1975_v16  ;;  %1933 = vmatpush.bf16.msra.mxu0 %v1910_v22  ;;  %v1802_v5 = vsel %vm1567_vm9, %v7018_v17, 0  ;;  %v1955_v48 = vunpack.c.l.b16 %v1862_v54  ;;  %v1956_v24 = vunpack.c.l.b16 %v1863_v43  ;;  %v1703_v12 = vpack.c.b16 %v1693_v6, %v1692_v35  ;;  %v7028_v22 = vld [vmem:[#allocation46_spill] sm:$0xff]  ;;  %v7032_v16 = vld [vmem:[#allocation28_spill] sm:$0xff]  ;;  %v7042_v15 = vld [vmem:[#allocation33_spill] sm:$0xff] }
 0x2dd   : > { %1733 = vmatpush.bf16.xpose.msrb.mxu2 %v1731_v36  ;;  %1815 = vmatpush.bf16.xpose.msra.mxu3 %v1805_v31  ;;  %v7021_v26 = vpack.c.b16 %v7019_v27, %v7020_v4  ;;  %v7024_v3 = vpack.c.b16 %v7022_v0, %v7023_v28  ;;  %v7027_v62 = vpack.c.b16 %v7025_v14, %v7026_v44  ;;  %v7035_v31 = vld [vmem:[#allocation39_spill] sm:$0xff]  ;;  %v4344_v6 = vld [vmem:[%s6819_s9] ss:$0 sm:$0xff]  ;;  %v6093_v50 = vld [vmem:[%s5224_s4 + $0x158] sm:$0xff] }
 0x2de   : > { %v1971_v29 = vpack.c.b16 %v1956_v24, %v1955_v48  ;;  %v1725_v34 = vsel %vm1567_vm9, %v1703_v12, 0  ;;  %v7030_v2 = vpack.c.b16 %v7028_v22, %v7029_v10  ;;  %v7033_v25 = vpack.c.b16 %v7031_v18, %v7032_v16  ;;  %v790_v48 = vld [vmem:[%s5721_s23] sm:$0xff]  ;;  %7114 = vst [vmem:[#allocation21_spill] sm:$0xff] %v6093_v50  ;;  %v6110_v52 = vld [vmem:[%s5224_s4 + $0x168] sm:$0xff] }
 0x2df   : > { %v1799_v7 = vsel %vm1567_vm9, %v7021_v26, 0  ;;  %v1722_v21 = vsel %vm1567_vm9, %v7024_v3, 0  ;;  %v1796_v13 = vsel %vm1567_vm9, %v7027_v62, 0  ;;  %v7036_v32 = vpack.c.b16 %v7034_v53, %v7035_v31  ;;  %7118 = vst [vmem:[#allocation64_spill] sm:$0xff] %v6110_v52 }
 0x2e0   : > { %1991 = vmatpush.bf16.msrb.mxu1 %v1974_v38  ;;  %v1719_v8 = vsel %vm1567_vm9, %v7030_v2, 0  ;;  %v1793_v36 = vsel %vm1567_vm9, %v7033_v25, 0  ;;  %v7037_v38 = vld [vmem:[#allocation27_spill] sm:$0xff]  ;;  %v978_v1 = vadd.f32 %v4342_v58, %v7040_v39 }
 0x2e1   : > { %v1716_v19 = vsel %vm1567_vm9, %v7036_v32, 0  ;;  %v7039_v63 = vpack.c.b16 %v7037_v38, %v7038_v9  ;;  %v4259_v25 = vld [vmem:[%s6820_s10 + $0x8] sm:$0xff] }
 0x2e2   : > { %v1633_v20 = vpack.c.bf16 %v978_v1, %v978_v1 }
 0x2e3   : > { %v1790_v60 = vsel %vm1567_vm9, %v7039_v63, 0 }
 0x2e4   : > { %1992 = vmatpush.bf16.msrb.mxu1 %v1973_v23  ;;  %v7041_v23 = vld [vmem:[#allocation34_spill] sm:$0xff] }
 0x2e5   : > { %1734 = vmatpush.bf16.xpose.msrb.mxu2 %v1728_v40  ;;  %1816 = vmatpush.bf16.xpose.msra.mxu3 %v1802_v5  ;;  %v7043_v54 = vpack.c.b16 %v7041_v23, %v7042_v15  ;;  %v7044_v40 = vld [vmem:[#allocation30_spill] sm:$0xff] }
 0x2e6   : > { %v7046_v46 = vpack.c.b16 %v7044_v40, %v7045_v11  ;;  %v7047_v5 = vld [vmem:[#allocation14_spill] sm:$0xff] }
 0x2e7   : > { %v1713_v43 = vsel %vm1567_vm9, %v7043_v54, 0  ;;  %v953_v35 = vadd.f32 %v4344_v6, %v7047_v5  ;;  %v4348_v23 = vld [vmem:[%s6821_s11] ss:$0 sm:$0xff] }
 0x2e8   : > { %1993 = vmatpush.bf16.msrb.mxu1 %v1972_v33  ;;  %v1710_v17 = vsel %vm1567_vm9, %v7046_v46, 0  ;;  %v4400_v15 = vld [vmem:[%s4654_s6] sm:$0xff]  ;;  %v7053_v46 = vld [vmem:[#allocation12_spill] sm:$0xff]  ;;  %s4231_s6 = sshll.u32 %s4617_s5, 3 }
 0x2e9   : > { %v1632_v33 = vpack.c.bf16 %v953_v35, %v953_v35  ;;  %s3551_s1 = scalar_lea.hbm %s7231_s2, %s4231_s6 }
 0x2ea   : > { %s3555_s24 = sshll.u32 %s3551_s1, 4  ;;  %s3556_s24 = int_to_ptr.hbm [resolvable:$true] %s3555_s24 }
 0x2ec   : > { %1994 = vmatpush.bf16.msrb.mxu1 %v1971_v29 }
 0x2ed   : > { %1735 = vmatpush.bf16.xpose.msrb.mxu2 %v1725_v34  ;;  %1817 = vmatpush.bf16.xpose.msra.mxu3 %v1799_v7 }
 0x2f5   : > { %1736 = vmatpush.bf16.xpose.msrb.mxu2 %v1722_v21  ;;  %1818 = vmatpush.bf16.xpose.msra.mxu3 %v1796_v13 }
 0x2fd   : > { %1737 = vmatpush.bf16.xpose.msrb.mxu2 %v1719_v8  ;;  %1819 = vmatpush.bf16.xpose.msra.mxu3 %v1793_v36  ;;  %v4258_v36 = vld [vmem:[%s6820_s10] sm:$0xff] }
 0x305   : > { %1738 = vmatpush.bf16.xpose.msrb.mxu2 %v1716_v19  ;;  %1820 = vmatpush.bf16.xpose.msra.mxu3 %v1790_v60 }
 0x30c   : > { %3841 = vmatmul.msk.bf16.vlgmr.msra.gmra.mxu3 %vm1567_vm9, %v1633_v20 }
 0x30d   : > { %1739 = vmatpush.bf16.xpose.msrb.mxu2 %v1713_v43  ;;  %2044 = vmatpush.bf16.msrb.mxu3 %v4259_v25  ;;  %v4264_v25 = vld [vmem:[%s6826_s16 + $0x10] sm:$0xff] }
 0x315   : > { %1740 = vmatpush.bf16.xpose.msrb.mxu2 %v1710_v17 }
 0x31c   : > { %3840 = vmatmul.msk.bf16.vlgmr.msrb.gmra.mxu2 %vm1567_vm9, %v1632_v33 }
 0x31d   : > { %2022 = vmatpush.bf16.msra.mxu2 %v4258_v36  ;;  %v4263_v36 = vld [vmem:[%s6826_s16 + $0x8] sm:$0xff] }
 0x38f   : > { %v1822_v24 = vpop.f32.mrf.mxu3 }
 0x390   : > { %v1823_v12 = vadd.f32 %v1822_v24, %v790_v48  ;;  %v4260_v24 = vld [vmem:[%s6824_s14] sm:$0xff] }
 0x392   : > { %1828 = vmax.xlane.f32.xlu2 %v1823_v12 }
 0x397   : > { %v1824_v29 = vpop.f32.mrf.mxu3 }
 0x39f   : > { %v1742_v34 = vpop.f32.mrf.mxu2 }
 0x3a0   : > { %v1743_v27 = vadd.f32 %v1742_v34, %v790_v48  ;;  %v4261_v48 = vld [vmem:[%s6824_s14 + $0x8] sm:$0xff] }
 0x3a1   : > { %2121 = vmatpush.bf16.msrb.mxu0 %v4261_v48 }
 0x3a2   : > { %1826 = vmax.xlane.f32.xlu1 %v1743_v27 }
 0x3a5   : > { %2122 = vmatpush.bf16.msrb.mxu0 %v4260_v24 }
 0x3a7   : > { %v1744_v4 = vpop.f32.mrf.mxu2 }
 0x405   : > { %v1829_v26 = vpop.xlane.xlu2 %1828 }
 0x406   : > { %v1831_v7 = vsub.f32 %v1823_v12, %v1829_v26  ;;  %v4269_v12 = vld [vmem:[%s6826_s16 + $0x38] sm:$0xff] }
 0x407   : > { %2202 = vmatpush.bf16.msra.mxu1 %v4269_v12 }
 0x408   : > { %v1834_v0 = vmul.f32 1.442695, %v1831_v7 }
 0x40a   : > { %4372 = vpow2.f32 %v1834_v0 }
 0x410   : > { %v4373_v28 = vpop.eup %4372 }
 0x411   : > { %1838 = vadd.xlane.f32.xlu2 %v4373_v28 }
 0x415   : > { %v1827_v3 = vpop.xlane.xlu1 %1826 }
 0x416   : > { %v1830_v21 = vsub.f32 %v1743_v27, %v1827_v3  ;;  %v4268_v27 = vld [vmem:[%s6826_s16 + $0x30] sm:$0xff] }
 0x417   : > { %2203 = vmatpush.bf16.msra.mxu1 %v4268_v27  ;;  %v4275_v27 = vld [vmem:[%s6818_s8 + $0x88] sm:$0xff] }
 0x418   : > { %v1832_v14 = vmul.f32 1.442695, %v1830_v21 }
 0x41a   : > { %4374 = vpow2.f32 %v1832_v14  ;;  %v4349_v14 = vld [vmem:[%s6822_s12] ss:$0 sm:$0xff] }
 0x420   : > { %v4375_v44 = vpop.eup %4374 }
 0x421   : > { %1836 = vadd.xlane.f32.xlu0 %v4375_v44 }
 0x484   : > { %v1839_v62 = vpop.xlane.xlu2 %1838 }
 0x485   : > { %4376 = vrcp.f32 %v1839_v62 }
 0x48b   : > { %v4377_v13 = vpop.eup %4376 }
 0x48c   : > { %v1843_v22 = vmul.f32 %v4377_v13, %v4373_v28  ;;  %v4350_v13 = vld [vmem:[%s6823_s13] ss:$0 sm:$0xff] }
 0x48e   : > { %v1845_v10 = vpack.c.bf16 %v1843_v22, %v1843_v22 }
 0x490   : > { %1995 = vmatmul.bf16.vlgmr.msrb.gmra.mxu1 %v1845_v10 }
 0x494   : > { %v1837_v2 = vpop.xlane.xlu0 %1836 }
 0x495   : > { %4378 = vrcp.f32 %v1837_v2 }
 0x49b   : > { %v4379_v8 = vpop.eup %4378 }
 0x49c   : > { %v1842_v18 = vmul.f32 %v4379_v8, %v4375_v44  ;;  %v4267_v8 = vld [vmem:[%s6826_s16 + $0x28] sm:$0xff] }
 0x49d   : > { %2204 = vmatpush.bf16.msra.mxu1 %v4267_v8 }
 0x49e   : > { %v1844_v16 = vpack.c.bf16 %v1842_v18, %v1842_v18  ;;  %v4266_v18 = vld [vmem:[%s6826_s16 + $0x20] sm:$0xff] }
 0x4a0   : > { %1934 = vmatmul.bf16.vlgmr.msra.gmra.mxu0 %v1844_v16  ;;  %v4265_v16 = vld [vmem:[%s6826_s16 + $0x18] sm:$0xff] }
 0x4a1   : > { %2205 = vmatpush.bf16.msra.mxu1 %v4266_v18  ;;  %2377 = vmatpush.bf16.msra.mxu0 %v4275_v27 }
 0x4a5   : > { %2206 = vmatpush.bf16.msra.mxu1 %v4265_v16 }
 0x4a9   : > { %2207 = vmatpush.bf16.msra.mxu1 %v4264_v25 }
 0x4ad   : > { %2208 = vmatpush.bf16.msra.mxu1 %v4263_v36  ;;  %v4353_v36 = vld [vmem:[%s6929_s26 + $0x1] ss:$0 sm:$0xff] }
 0x50d   : > { %v1996_v58 = vpop.f32.mrf.mxu1 }
 0x50e   : > { %v2001_v53 = vpack.c.bf16 %v1996_v58, %v1996_v58  ;;  %v4262_v58 = vld [vmem:[%s6826_s16] sm:$0xff] }
 0x50f   : > { %2209 = vmatpush.bf16.msra.mxu1 %v4262_v58 }
 0x510   : > { %3851 = vmatmul.msk.bf16.vlgmr.msrb.gmra.mxu3 %vm1567_vm9, %v2001_v53  ;;  %v4351_v53 = vld [vmem:[%s6825_s15] ss:$0 sm:$0xff] }
 0x515   : > { %v1998_v31 = vpop.f32.mrf.mxu1 }
 0x51d   : > { %v1935_v32 = vpop.f32.mrf.mxu0 }
 0x51e   : > { %v2000_v19 = vpack.c.bf16 %v1935_v32, %v1935_v32 }
 0x520   : > { %3846 = vmatmul.msk.bf16.vlgmr.msra.gmra.mxu2 %vm1567_vm9, %v2000_v19 }
 0x525   : > { %v1937_v38 = vpop.f32.mrf.mxu0 }
 0x593   : > { %v2046_v9 = vpop.f32.mrf.mxu3 }
 0x594   : > { %v2051_v39 = vsel %vm7050_vm15, %v2046_v9, 0.0 }
 0x59b   : > { %v2048_v63 = vpop.f32.mrf.mxu3 }
 0x5a3   : > { %v2024_v60 = vpop.f32.mrf.mxu2 }
 0x5a4   : > { %v2050_v1 = vsel %vm7051_vm2, %v2024_v60, 0.0 }
 0x5a5   : > { %v2052_v20 = vadd.f32 %v2051_v39, %v2050_v1 }
 0x5a7   : > { %v2053_v54 = vadd.f32 %v4400_v15, %v2052_v20 }
 0x5a9   : > { %v5738_v43 = vadd.f32 %v4348_v23, %v2053_v54 }
 0x5ab   : > { %v2026_v6 = vpop.f32.mrf.mxu2  ;;  %v2061_v40 = vsel %vm7052_vm13, %v5738_v43, 0.0 }
 0x5ac   : > { %2062 = vadd.xlane.f32.xlu1 %v2061_v40  ;;  %v4352_v6 = vld [vmem:[%s6827_s17] ss:$0 sm:$0xff] }
 0x61f   : > { %v2063_v11 = vpop.xlane.xlu1 %2062 }
 0x620   : > { %v2064_v17 = vmul.f32 %v2063_v11, %v7053_v46 }
 0x622   : > { %v2065_v5 = vsub.f32 %v5738_v43, %v2064_v17 }
 0x624   : > { %v2066_v35 = vmul.f32 %v2065_v5, %v2065_v5 }
 0x626   : > { %v2067_v33 = vsel %vm7051_vm2, %v2066_v35, 0.0 }
 0x627   : > { %2068 = vadd.xlane.f32.xlu2 %v2067_v33 }
 0x69a   : > { %v2069_v29 = vpop.xlane.xlu2 %2068 }
 0x69b   : > { %v2070_v34 = vmul.f32 %v2069_v29, %v7053_v46 }
 0x69d   : > { %v2071_v4 = vadd.f32 1e-05, %v2070_v34  ;;  %v4273_v34 = vld [vmem:[%s6818_s8 + $0x78] sm:$0xff] }
 0x69e   : > { %2352 = vmatpush.bf16.msra.mxu3 %v4273_v34 }
 0x69f   : > { %4380 = vrsqrt.f32 %v2071_v4  ;;  %vm2078_vm15 = vweird.f32 %v2071_v4 }
 0x6a5   : > { %v4381_v26 = vpop.eup %4380 }
 0x6a6   : > { %v2073_v7 = vmul.f32 %v4381_v26, %v2071_v4  ;;  %vm2079_vm13 = vweird.f32 %v4381_v26  ;;  %v4270_v4 = vld [vmem:[%s6818_s8 + $0x60] sm:$0xff] }
 0x6a7   : > { %vm2080_vm2 = vmor %vm2078_vm15, %vm2079_vm13 }
 0x6a8   : > { %v2074_v0 = vmul.f32 %v4381_v26, %v2073_v7  ;;  %vm7056_vm13 = vmmov %vm7054_vm0 }
 0x6a9   : > { %vm7057_vm14 = vmmov %vm7056_vm13 }
 0x6aa   : > { %v2075_v28 = vmul.f32 0.5, %v2074_v0  ;;  %v4274_v0 = vld [vmem:[%s6818_s8 + $0x80] sm:$0xff]  ;;  %vm7058_vm7 = vmmov %vm7056_vm13 }
 0x6ab   : > { %2378 = vmatpush.bf16.msra.mxu0 %v4274_v0  ;;  %vm7059_vm6 = vmmov %vm7058_vm7  ;;  %v4402_v0 = vld [vmem:[%s6934_s21 + $0x8] sm:$0xff] }
 0x6ac   : > { %v2076_v3 = vsub.f32 1.5, %v2075_v28  ;;  %v4277_v28 = vld [vmem:[%s6818_s8 + $0x98] sm:$0xff]  ;;  %vm7060_vm5 = vmmov %vm7059_vm6 }
 0x6ae   : > { %v2077_v21 = vmul.f32 %v4381_v26, %v2076_v3 }
 0x6b0   : > { %v2081_v44 = vsel %vm2080_vm2, %v4381_v26, %v2077_v21  ;;  %v4272_v26 = vld [vmem:[%s6818_s8 + $0x70] sm:$0xff]  ;;  %v4279_v21 = vld [vmem:[%s6818_s8 + $0xa8] sm:$0xff] }
 0x6b1   : > { %v2082_v62 = vmul.f32 %v2081_v44, %v2065_v5  ;;  %2353 = vmatpush.bf16.msra.mxu3 %v4272_v26 }
 0x6b3   : > { %v2086_v22 = vmul.f32 %v4349_v14, %v2082_v62  ;;  %v4281_v14 = vld [vmem:[%s6818_s8 + $0xb8] sm:$0xff]  ;;  %v4276_v62 = vld [vmem:[%s6818_s8 + $0x90] sm:$0xff] }
 0x6b5   : > { %v2090_v10 = vadd.f32 %v4350_v13, %v2086_v22  ;;  %2427 = vmatpush.bf16.msrb.mxu3 %v4279_v21  ;;  %v4278_v13 = vld [vmem:[%s6818_s8 + $0xa0] sm:$0xff]  ;;  %v4280_v22 = vld [vmem:[%s6818_s8 + $0xb0] sm:$0xff] }
 0x6b7   : > { %v2091_v2 = vpack.c.bf16 %v2090_v10, %v2090_v10 }
 0x6b9   : > { %3860 = vmatmul.msk.bf16.vlgmr.msrb.gmra.mxu0 %vm7054_vm0, %v2091_v2  ;;  %2428 = vmatpush.bf16.msrb.mxu3 %v4278_v13  ;;  %v4405_v13 = vld [vmem:[%s6934_s21 + $0x20] sm:$0xff] }
 0x6ba   : > { %2452 = vmatpush.bf16.msrb.mxu0 %v4281_v14 }
 0x6be   : > { %2453 = vmatpush.bf16.msrb.mxu0 %v4280_v22  ;;  %v4406_v22 = vld [vmem:[%s6934_s21 + $0x28] sm:$0xff] }
 0x736   : > { %v2124_v31 = vpop.f32.mrf.mxu0 }
 0x737   : > { %v2125_v32 = vadd.f32 %v4351_v53, %v2124_v31  ;;  %v4354_v53 = vld [vmem:[%s6930_s28 + $0x1] ss:$0 sm:$0xff] }
 0x739   : > { %v2129_v19 = vmul.f32 0.044715, %v2125_v32  ;;  %v2128_v20 = vmul.f32 0.5, %v2125_v32 }
 0x73b   : > { %v2130_v38 = vmul.f32 %v2129_v19, %v2125_v32 }
 0x73d   : > { %v2131_v9 = vmul.f32 %v2130_v38, %v2125_v32 }
 0x73e   : > { %v2126_v63 = vpop.f32.mrf.mxu0 }
 0x73f   : > { %v2132_v60 = vadd.f32 %v2131_v9, %v2125_v32  ;;  %v4355_v9 = vld [vmem:[%s6819_s9 + $0x8] ss:$0 sm:$0xff] }
 0x741   : > { %v2133_v39 = vmul.f32 0.7978846, %v2132_v60 }
 0x743   : > { %4382 = vtanh.f32 %v2133_v39 }
 0x749   : > { %v4383_v1 = vpop.eup %4382 }
 0x74a   : > { %v2135_v23 = vadd.f32 1.0, %v4383_v1 }
 0x74c   : > { %v2136_v15 = vmul.f32 %v2135_v23, %v2128_v20 }
 0x74e   : > { %v2137_v54 = vpack.c.bf16 %v2136_v15, %v2136_v15 }
 0x750   : > { %2210 = vmatmul.bf16.vlgmr.msra.gmra.mxu1 %v2137_v54  ;;  %v4401_v54 = vld [vmem:[%s6934_s21] sm:$0xff] }
 0x7cd   : > { %v2211_v40 = vpop.f32.mrf.mxu1 }
 0x7ce   : > { %v2215_v11 = vadd.f32 %v2211_v40, %v5738_v43  ;;  %v4271_v43 = vld [vmem:[%s6818_s8 + $0x68] sm:$0xff] }
 0x7cf   : > { %2327 = vmatpush.bf16.msrb.mxu2 %v4271_v43 }
 0x7d0   : > { %v5790_v17 = vadd.f32 %v4352_v6, %v2215_v11  ;;  %v4358_v11 = vld [vmem:[%s6819_s9 + $0xb] ss:$0 sm:$0xff] }
 0x7d2   : > { %7055 = vst [vmem:[#allocation35_spill] sm:$0xff] %v5790_v17  ;;  %v2225_v5 = vsel %vm7054_vm0, %v5790_v17, 0.0 }
 0x7d3   : > { %2226 = vadd.xlane.f32.xlu0 %v2225_v5  ;;  %2328 = vmatpush.bf16.msrb.mxu2 %v4270_v4 }
 0x7d5   : > { %v2213_v35 = vpop.f32.mrf.mxu1 }
 0x7d7   : > { %2402 = vmatpush.bf16.msra.mxu2 %v4277_v28 }
 0x7db   : > { %2403 = vmatpush.bf16.msra.mxu2 %v4276_v62  ;;  %v4404_v62 = vld [vmem:[%s6934_s21 + $0x18] sm:$0xff] }
 0x846   : > { %v2227_v33 = vpop.xlane.xlu0 %2226 }
 0x847   : > { %v2228_v48 = vmul.f32 %v2227_v33, %v7053_v46  ;;  %v4359_v33 = vld [vmem:[%s6819_s9 + $0x9] ss:$0 sm:$0xff] }
 0x849   : > { %v2229_v24 = vsub.f32 %v5790_v17, %v2228_v48  ;;  %v4360_v48 = vld [vmem:[%s6819_s9 + $0xa] ss:$0 sm:$0xff] }
 0x84a   : > { %v6057_v17 = vld [vmem:[%s5224_s4 + $0x128] sm:$0xff] }
 0x84b   : > { %v2230_v12 = vmul.f32 %v2229_v24, %v2229_v24 }
 0x84d   : > { %v2231_v29 = vsel %vm7056_vm13, %v2230_v12, 0.0 }
 0x84e   : > { %2232 = vadd.xlane.f32.xlu1 %v2231_v29 }
 0x8c1   : > { %v2233_v7 = vpop.xlane.xlu1 %2232 }
 0x8c2   : > { %v2234_v3 = vmul.f32 %v2233_v7, %v7053_v46  ;;  %v6054_v46 = vld [vmem:[%s5224_s4 + $0x1b0] sm:$0xff] }
 0x8c4   : > { %v2235_v44 = vadd.f32 1e-05, %v2234_v3 }
 0x8c6   : > { %4384 = vrsqrt.f32 %v2235_v44  ;;  %vm2242_vm2 = vweird.f32 %v2235_v44 }
 0x8cc   : > { %v4385_v10 = vpop.eup %4384 }
 0x8cd   : > { %v2237_v2 = vmul.f32 %v4385_v10, %v2235_v44  ;;  %vm2243_vm15 = vweird.f32 %v4385_v10  ;;  %v4403_v44 = vld [vmem:[%s6934_s21 + $0x10] sm:$0xff] }
 0x8ce   : > { %vm2244_vm0 = vmor %vm2242_vm2, %vm2243_vm15  ;;  %vm7062_vm2 = vcmask 1043456  }
 0x8cf   : > { %v2238_v8 = vmul.f32 %v4385_v10, %v2237_v2  ;;  %vm7061_vm15 = vmmov %vm7060_vm5  ;;  %v4408_v2 = vld [vmem:[%s6934_s21 + $0x38] sm:$0xff] }
 0x8d1   : > { %v2239_v18 = vmul.f32 0.5, %v2238_v8  ;;  %v3995_v8 = vld [vmem:[%s4882_s27 + $0x100] sm:$0xff] }
 0x8d3   : > { %v2240_v16 = vsub.f32 1.5, %v2239_v18  ;;  %v3996_v18 = vld [vmem:[%s4882_s27 + $0x108] sm:$0xff] }
 0x8d5   : > { %v2241_v25 = vmul.f32 %v4385_v10, %v2240_v16  ;;  %v5922_v16 = vld [vmem:[%s4882_s27 + $0x110] sm:$0xff] }
 0x8d7   : > { %v2245_v58 = vsel %vm2244_vm0, %v4385_v10, %v2241_v25  ;;  %vm7069_vm0 = vmmov %vm7062_vm2  ;;  %v4407_v10 = vld [vmem:[%s6934_s21 + $0x30] sm:$0xff]  ;;  %v5925_v25 = vld [vmem:[%s4882_s27 + $0x118] sm:$0xff] }
 0x8d8   : > { %v2246_v31 = vmul.f32 %v2245_v58, %v2229_v24  ;;  %v5931_v58 = vld [vmem:[%s4882_s27 + $0x120] sm:$0xff] }
 0x8da   : > { %v2250_v32 = vmul.f32 %v4353_v36, %v2246_v31  ;;  %v5928_v36 = vld [vmem:[%s4882_s27 + $0x180] sm:$0xff]  ;;  %v5937_v31 = vld [vmem:[%s4882_s27 + $0x128] sm:$0xff] }
 0x8dc   : > { %v2254_v19 = vadd.f32 %v4354_v53, %v2250_v32  ;;  %v5934_v53 = vld [vmem:[%s4882_s27 + $0x188] sm:$0xff]  ;;  %v5940_v32 = vld [vmem:[%s4882_s27 + $0x190] sm:$0xff] }
 0x8de   : > { %v2255_v38 = vpack.c.bf16 %v2254_v19, %v2254_v19  ;;  %v5943_v19 = vld [vmem:[%s4882_s27 + $0x130] sm:$0xff] }
 0x8e0   : > { %3933 = vmatmul.msk.bf16.vlgmr.msrb.gmra.mxu2 %vm7056_vm13, %v2255_v38  ;;  %3942 = vmatmul.msk.bf16.vlgmr.msra.gmra.mxu3 %vm7057_vm14, %v2255_v38  ;;  %vm7065_vm14 = vcmask 64512   ;;  %vm7070_vm13 = vmmov %vm7069_vm0 }
 0x8e1   : > { %3951 = vmatmul.msk.bf16.vlgmr.msra.gmra.mxu0 %vm7058_vm7, %v2255_v38 }
 0x8f0   : > { %3960 = vmatmul.msk.bf16.vlgmr.msra.gmra.mxu2 %vm7059_vm6, %v2255_v38  ;;  %3969 = vmatmul.msk.bf16.vlgmr.msrb.gmra.mxu3 %vm7060_vm5, %v2255_v38  ;;  %vm7066_vm5 = vmmov %vm7062_vm2 }
 0x8f1   : > { %3978 = vmatmul.msk.bf16.vlgmr.msrb.gmra.mxu0 %vm7061_vm15, %v2255_v38  ;;  %vm7067_vm6 = vmmov %vm7065_vm14  ;;  %v5946_v38 = vld [vmem:[%s4882_s27 + $0x198] sm:$0xff] }
 0x8f2   : > { %vm7068_vm7 = vmmov %vm7067_vm6 }
 0x8f3   : > { %vm7071_vm15 = vmmov %vm7067_vm6 }
 0x95e   : > { %v2380_v63 = vpop.f32.mrf.mxu0 }
 0x95f   : > { %v2381_v60 = vadd.f32 %v4355_v9, %v2380_v63  ;;  %v5949_v9 = vld [vmem:[%s4882_s27 + $0x138] sm:$0xff]  ;;  %v5952_v63 = vld [vmem:[%s4882_s27 + $0x1a0] sm:$0xff] }
 0x961   : > { %v2459_v39 = vpack.c.bf16 %v2381_v60, %v2381_v60  ;;  %v5955_v60 = vld [vmem:[%s4882_s27 + $0x140] sm:$0xff] }
 0x963   : > { %v2462_v1 = vsel %vm7062_vm2, %v2459_v39, 0  ;;  %v5850_v20 = vpop.f32.mrf.mxu2  ;;  %v5852_v23 = vpop.f32.mrf.mxu3  ;;  %vm7072_vm2 = vmmov %vm7067_vm6  ;;  %v5958_v39 = vld [vmem:[%s4882_s27 + $0x1a8] sm:$0xff] }
 0x964   : > { %7063 = vst [vmem:[#allocation55_spill] sm:$0xff] %v5850_v20  ;;  %2471 = vmatpush.bf16.msrb.mxu1 %v2462_v1  ;;  %v5961_v1 = vld [vmem:[%s4882_s27 + $0x148] sm:$0xff]  ;;  %v6063_v20 = vld [vmem:[%s5224_s4 + $0x130] sm:$0xff] }
 0x965   : > { %7064 = vst [vmem:[#allocation37_spill] sm:$0xff] %v5852_v23  ;;  %v6060_v23 = vld [vmem:[%s5224_s4 + $0x1b8] sm:$0xff] }
 0x966   : > { %v2382_v15 = vpop.f32.mrf.mxu0 }
 0x967   : > { %3979 = vmatmul.msk.bf16.vlgmr.msrb.gmra.mxu1 %vm7065_vm14, %v4401_v54  ;;  %vm7073_vm14 = vmmov %vm7072_vm2  ;;  %v5964_v15 = vld [vmem:[%s4882_s27 + $0x1b0] sm:$0xff] }
 0x96b   : > { %v2332_v6 = vpop.f32.mrf.mxu2  ;;  %v2357_v40 = vpop.f32.mrf.mxu3 }
 0x96c   : > { %v5970_v6 = vld [vmem:[%s4882_s27 + $0x1b8] sm:$0xff] }
 0x96d   : > { %v5973_v40 = vld [vmem:[%s4882_s27 + $0x158] sm:$0xff] }
 0x96e   : > { %v2455_v5 = vpop.f32.mrf.mxu0 }
 0x96f   : > { %v2456_v35 = vadd.f32 %v4358_v11, %v2455_v5  ;;  %v5976_v11 = vld [vmem:[%s4882_s27 + $0x1c0] sm:$0xff] }
 0x970   : > { %v5979_v5 = vld [vmem:[%s4882_s27 + $0x160] sm:$0xff] }
 0x971   : > { %v2631_v24 = vpack.c.bf16 %v2456_v35, %v2456_v35  ;;  %v5982_v35 = vld [vmem:[%s4882_s27 + $0x1c8] sm:$0xff] }
 0x972   : > { %7095 = vst [vmem:[#allocation56_spill] sm:$0xff] %v5982_v35 }
 0x973   : > { %v2685_v12 = vsel %vm7066_vm5, %v2631_v24, 0  ;;  %v2405_v29 = vpop.f32.mrf.mxu2  ;;  %v2430_v43 = vpop.f32.mrf.mxu3  ;;  %vm7074_vm5 = vmmov %vm7072_vm2  ;;  %v5991_v24 = vld [vmem:[%s4882_s27 + $0x170] sm:$0xff] }
 0x974   : > { %v2406_v34 = vadd.f32 %v4359_v33, %v2405_v29  ;;  %v2431_v27 = vadd.f32 %v4360_v48, %v2430_v43  ;;  %2694 = vmatpush.bf16.msra.mxu0 %v2685_v12  ;;  %v5985_v33 = vld [vmem:[%s4882_s27 + $0x168] sm:$0xff]  ;;  %v5988_v48 = vld [vmem:[%s4882_s27 + $0x1d0] sm:$0xff]  ;;  %7098 = vst [vmem:[#allocation43_spill] sm:$0xff] %v5991_v24  ;;  %v5994_v29 = vld [vmem:[%s4882_s27 + $0x1d8] sm:$0xff] }
 0x975   : > { %7096 = vst [vmem:[#allocation41_spill] sm:$0xff] %v5985_v33  ;;  %v5997_v43 = vld [vmem:[%s4882_s27 + $0x178] sm:$0xff]  ;;  %v6096_v24 = vld [vmem:[%s5224_s4 + $0x1e8] sm:$0xff]  ;;  %v6104_v33 = vld [vmem:[%s5224_s4 + $0x160] sm:$0xff] }
 0x976   : > { %v2460_v4 = vpack.c.bf16 %v2406_v34, %v2406_v34  ;;  %v2630_v26 = vpack.c.bf16 %v2431_v27, %v2431_v27  ;;  %v2457_v7 = vpop.f32.mrf.mxu0  ;;  %7097 = vst [vmem:[#allocation57_spill] sm:$0xff] %v5988_v48  ;;  %v6000_v34 = vld [vmem:[%s4882_s27 + $0x1e0] sm:$0xff] }
 0x977   : > { %3980 = vmatmul.msk.bf16.gmra.mxu1 %vm7067_vm6, %v4402_v0  ;;  %4035 = vmatmul.msk.bf16.vlgmr.msra.gmra.mxu0 %vm7068_vm7, %v4401_v54  ;;  %vm7075_vm6 = vmmov %vm7072_vm2  ;;  %7099 = vst [vmem:[#allocation61_spill] sm:$0xff] %v5994_v29  ;;  %v6011_v7 = vld [vmem:[%s4882_s27 + $0x1f8] sm:$0xff]  ;;  %v6090_v29 = vld [vmem:[%s5224_s4 + $0x1e0] sm:$0xff] }
 0x978   : > { %v2514_v28 = vsel %vm7069_vm0, %v2460_v4, 0  ;;  %v2633_v3 = vsel %vm7070_vm13, %v2630_v26, 0  ;;  %vm7076_vm7 = vmmov %vm7072_vm2  ;;  %7100 = vst [vmem:[#allocation62_spill] sm:$0xff] %v5997_v43  ;;  %v6005_v4 = vld [vmem:[%s4882_s27 + $0x1e8] sm:$0xff]  ;;  %v6008_v26 = vld [vmem:[%s4882_s27 + $0x1f0] sm:$0xff] }
 0x979   : > { %2523 = vmatpush.bf16.msrb.mxu2 %v2514_v28  ;;  %2642 = vmatpush.bf16.msra.mxu3 %v2633_v3  ;;  %vm7077_vm0 = vmmov %vm7072_vm2  ;;  %7101 = vst [vmem:[#allocation58_spill] sm:$0xff] %v6000_v34  ;;  %v6081_v34 = vld [vmem:[%s5224_s4 + $0x148] sm:$0xff]  ;;  %v6087_v43 = vld [vmem:[%s5224_s4 + $0x150] sm:$0xff] }
 0x97a   : > { %vm7078_vm13 = vmmov %vm7077_vm0  ;;  %7102 = vst [vmem:[#allocation47_spill] sm:$0xff] %v6005_v4  ;;  %v6078_v4 = vld [vmem:[%s5224_s4 + $0x1d0] sm:$0xff] }
 0x97b   : > { %v2407_v21 = vpop.f32.mrf.mxu2  ;;  %v2432_v14 = vpop.f32.mrf.mxu3  ;;  %7103 = vst [vmem:[#allocation20_spill] sm:$0xff] %v6008_v26  ;;  %v6075_v26 = vld [vmem:[%s5224_s4 + $0x140] sm:$0xff] }
 0x97c   : > { %3987 = vmatmul.msk.bf16.vlgmr.msrb.gmra.mxu2 %vm7071_vm15, %v4401_v54  ;;  %4027 = vmatmul.msk.bf16.vlgmr.msra.gmra.mxu3 %vm7072_vm2, %v4401_v54  ;;  %vm7079_vm15 = vmmov %vm7077_vm0  ;;  %v5967_v54 = vld [vmem:[%s4882_s27 + $0x150] sm:$0xff]  ;;  %7104 = vst [vmem:[#allocation23_spill] sm:$0xff] %v6011_v7  ;;  %v6072_v7 = vld [vmem:[%s5224_s4 + $0x1c8] sm:$0xff]  ;;  %s4424_s27 = sshra.s32 %s3556_s24, 4  ;;  %s4425_s27 = int_to_ptr.hbm [resolvable:$true] %s4424_s27 }
 0x97d   : > { %vm7080_vm2 = vmmov %vm7077_vm0  ;;  %7110 = vst [vmem:[#allocation60_spill] sm:$0xff] %v6081_v34  ;;  %v6107_v34 = vld [vmem:[%s5224_s4 + $0x1f0] sm:$0xff]  ;;  %p4431_p0 = scmp.lt.s32.totalorder %s4425_s27, %s7231_s2 }
 0x97e   : > { %7112 = vst [vmem:[#allocation49_spill] sm:$0xff] %v6087_v43  ;;  %v6113_v43 = vld [vmem:[%s5224_s4 + $0x1f8] sm:$0xff] }
 0x97f   : > { %7113 = vst [vmem:[#allocation19_spill] sm:$0xff] %v6090_v29  ;;  %v6116_v29 = vld [vmem:[%s5224_s4 + $0x170] sm:$0xff] }
 0x980   : > { %7115 = vst [vmem:[#allocation51_spill] sm:$0xff] %v6096_v24  ;;  %v6121_v24 = vld [vmem:[%s5224_s4 + $0x178] sm:$0xff] }
 0x981   : > { %7116 = vst [vmem:[#allocation22_spill] sm:$0xff] %v6104_v33 }
 0x982   : > { %7117 = vst [vmem:[#allocation24_spill] sm:$0xff] %v6107_v34 }
 0x983   : > { %7119 = vst [vmem:[#allocation25_spill] sm:$0xff] %v6113_v43 }
 0x984   : > { %7120 = vst [vmem:[#allocation63_spill] sm:$0xff] %v6116_v29 }
 0x985   : > { %7121 = vst [vmem:[#allocation48_spill] sm:$0xff] %v6121_v24 }
 0x987   : > { %3981 = vmatmul.msk.bf16.gmra.mxu1 %vm7073_vm14, %v4403_v44  ;;  %4036 = vmatmul.msk.bf16.gmra.mxu0 %vm7074_vm5, %v4402_v0  ;;  %vm7081_vm14 = vmmov %vm7077_vm0 }
 0x988   : > { %vm7082_vm5 = vmmov %vm7077_vm0 }
 0x98c   : > { %3988 = vmatmul.msk.bf16.gmra.mxu2 %vm7075_vm6, %v4402_v0  ;;  %4028 = vmatmul.msk.bf16.gmra.mxu3 %vm7076_vm7, %v4402_v0  ;;  %vm7083_vm6 = vmmov %vm7077_vm0 }
 0x98d   : > { %vm7084_vm7 = vmmov %vm7077_vm0 }
 0x997   : > { %3982 = vmatmul.msk.bf16.gmra.mxu1 %vm7077_vm0, %v4404_v62  ;;  %4037 = vmatmul.msk.bf16.gmra.mxu0 %vm7078_vm13, %v4403_v44  ;;  %vm7085_vm13 = vmmov %vm7077_vm0 }
 0x99c   : > { %3989 = vmatmul.msk.bf16.gmra.mxu2 %vm7079_vm15, %v4403_v44  ;;  %4029 = vmatmul.msk.bf16.gmra.mxu3 %vm7080_vm2, %v4403_v44  ;;  %vm7086_vm15 = vmmov %vm7077_vm0 }
 0x99d   : > { %vm7087_vm2 = vmmov %vm7077_vm0 }
 0x9a7   : > { %3983 = vmatmul.msk.bf16.gmra.mxu1 %vm7081_vm14, %v4405_v13  ;;  %4038 = vmatmul.msk.bf16.gmra.mxu0 %vm7082_vm5, %v4404_v62  ;;  %vm7088_vm14 = vmmov %vm7077_vm0 }
 0x9a8   : > { %vm7089_vm5 = vmmov %vm7077_vm0 }
 0x9ac   : > { %3990 = vmatmul.msk.bf16.gmra.mxu2 %vm7083_vm6, %v4404_v62  ;;  %4030 = vmatmul.msk.bf16.gmra.mxu3 %vm7084_vm7, %v4404_v62  ;;  %vm7090_vm6 = vmmov %vm7077_vm0  ;;  %v6051_v62 = vld [vmem:[%s5224_s4 + $0x120] sm:$0xff] }
 0x9ad   : > { %vm7091_vm7 = vmmov %vm7077_vm0 }
 0x9b7   : > { %3984 = vmatmul.msk.bf16.gmra.mxu1 %vm7077_vm0, %v4406_v22  ;;  %4039 = vmatmul.msk.bf16.gmra.mxu0 %vm7085_vm13, %v4405_v13  ;;  %vm7092_vm13 = vmmov %vm7077_vm0 }
 0x9bc   : > { %3991 = vmatmul.msk.bf16.gmra.mxu2 %vm7086_vm15, %v4405_v13  ;;  %4031 = vmatmul.msk.bf16.gmra.mxu3 %vm7087_vm2, %v4405_v13  ;;  %vm7093_vm15 = vmmov %vm7077_vm0  ;;  %v4059_v13 = vld [vmem:[%s5224_s4 + $0x180] sm:$0xff] }
 0x9bd   : > { %vm7094_vm2 = vmmov %vm7077_vm0 }
 0x9c7   : > { %3985 = vmatmul.msk.bf16.gmra.mxu1 %vm7088_vm14, %v4407_v10  ;;  %4040 = vmatmul.msk.bf16.gmra.mxu0 %vm7089_vm5, %v4406_v22  ;;  %vm7105_vm14 = vmmov %vm7077_vm0 }
 0x9c8   : > { %vm7106_vm5 = vmmov %vm7077_vm0 }
 0x9cc   : > { %3992 = vmatmul.msk.bf16.gmra.mxu2 %vm7090_vm6, %v4406_v22  ;;  %4032 = vmatmul.msk.bf16.gmra.mxu3 %vm7091_vm7, %v4406_v22  ;;  %vm7107_vm6 = vmmov %vm7077_vm0  ;;  %vm7122_vm7 = vcmp.eq.s32.totalorder %v4862_v55, 1 }
 0x9d7   : > { %3986 = vmatmul.msk.bf16.gmra.mxu1 %vm7077_vm0, %v4408_v2  ;;  %4041 = vmatmul.msk.bf16.gmra.mxu0 %vm7092_vm13, %v4407_v10 }
 0x9dc   : > { %3993 = vmatmul.msk.bf16.gmra.mxu2 %vm7093_vm15, %v4407_v10  ;;  %4033 = vmatmul.msk.bf16.gmra.mxu3 %vm7094_vm2, %v4407_v10 }
 0x9e4   : > { %v2473_v12 = vpop.f32.mrf.mxu1 }
 0x9e5   : > { %v2598_v27 = vsel %vm1349_vm8, %v2473_v12, %v3995_v8  ;;  %v4043_v8 = vld [vmem:[%s5224_s4 + $0x100] sm:$0xff]  ;;  %v6033_v12 = vld [vmem:[%s5224_s4 + $0x108] sm:$0xff] }
 0x9e6   : > { %4075 = vst.msk [vmem:[%s4975_s0 + $0x100] sm:$0xff] %vm1567_vm9, %v2598_v27  ;;  %v2869_v0 = vpack.c.bf16 %v2598_v27, %v2598_v27  ;;  %v6036_v27 = vld [vmem:[%s5224_s4 + $0x198] sm:$0xff] }
 0x9e7   : > { %4042 = vmatmul.msk.bf16.gmra.mxu0 %vm7105_vm14, %v4408_v2 }
 0x9e8   : > { %v6022_v14 = vunpack.c.l.b16 %v2869_v0  ;;  %v6039_v0 = vld [vmem:[%s5224_s4 + $0x110] sm:$0xff] }
 0x9ea   : > { %7108 = vst [vmem:[#allocation59_spill] sm:$0xff] %v6022_v14  ;;  %v6066_v14 = vld [vmem:[%s5224_s4 + $0x1c0] sm:$0xff] }
 0x9ec   : > { %v2475_v28 = vpop.f32.mrf.mxu1  ;;  %3994 = vmatmul.msk.bf16.gmra.mxu2 %vm7106_vm5, %v4408_v2  ;;  %4034 = vmatmul.msk.bf16.gmra.mxu3 %vm7107_vm6, %v4408_v2  ;;  %v4060_v2 = vld [vmem:[%s5224_s4 + $0x188] sm:$0xff]  ;;  %vm7141_vm5 = vcmp.eq.s32.totalorder %v4831_v45, 1 }
 0x9ed   : > { %v2599_v3 = vsel %vm1350_vm10, %v2475_v28, %v3996_v18  ;;  %v4061_v18 = vld [vmem:[%s5224_s4 + $0x190] sm:$0xff]  ;;  %v6042_v28 = vld [vmem:[%s5224_s4 + $0x1a0] sm:$0xff] }
 0x9ee   : > { %v2870_v21 = vpack.c.bf16 %v2599_v3, %v2599_v3  ;;  %4076 = vst.msk [vmem:[%s4975_s0 + $0x108] sm:$0xff] %vm1567_vm9, %v2599_v3  ;;  %v6045_v3 = vld [vmem:[%s5224_s4 + $0x118] sm:$0xff] }
 0x9f0   : > { %v6024_v44 = vunpack.c.l.b16 %v2870_v21  ;;  %v6048_v21 = vld [vmem:[%s5224_s4 + $0x1a8] sm:$0xff] }
 0x9f2   : > { %7109 = vst [vmem:[#allocation50_spill] sm:$0xff] %v6024_v44  ;;  %v6069_v44 = vld [vmem:[%s5224_s4 + $0x138] sm:$0xff]  ;;  %s7228_s4 = sld [smem:[#allocation74_spill]] }
 0x9f4   : > { %v2478_v22 = vpop.f32.mrf.mxu1  ;;  %v2696_v10 = vpop.f32.mrf.mxu0 }
 0x9f5   : > { %v2600_v48 = vsel %vm1351_vm11, %v2478_v22, %v5922_v16  ;;  %v2785_v47 = vsel %vm1349_vm8, %v2696_v10, %v4059_v13 }
 0x9f6   : > { %4077 = vst.msk [vmem:[%s4975_s0 + $0x110] sm:$0xff] %vm1567_vm9, %v2600_v48  ;;  %v2871_v16 = vpack.c.bf16 %v2600_v48, %v2600_v48  ;;  %v3097_v13 = vpack.c.bf16 %v2785_v47, %v2785_v47 }
 0x9f7   : > { %4123 = vst.msk [vmem:[%s5268_s7 + $0x180] sm:$0xff] %vm1567_vm9, %v2785_v47 }
 0x9f8   : > { %v6132_v24 = vunpack.c.l.b16 %v2871_v16  ;;  %v6134_v33 = vunpack.c.l.b16 %v3097_v13 }
 0x9fc   : > { %v2480_v22 = vpop.f32.mrf.mxu1  ;;  %v2698_v10 = vpop.f32.mrf.mxu0 }
 0x9fd   : > { %v2601_v52 = vsel %vm1352_vm12, %v2480_v22, %v5925_v25  ;;  %v2786_v29 = vsel %vm1350_vm10, %v2698_v10, %v4060_v2  ;;  %v7156_v2 = vld [vmem:[#allocation43_spill] sm:$0xff] }
 0x9fe   : > { %v2872_v43 = vpack.c.bf16 %v2601_v52, %v2601_v52  ;;  %v3098_v34 = vpack.c.bf16 %v2786_v29, %v2786_v29  ;;  %4078 = vst.msk [vmem:[%s4975_s0 + $0x118] sm:$0xff] %vm1567_vm9, %v2601_v52 }
 0x9ff   : > { %v2525_v47 = vpop.f32.mrf.mxu2  ;;  %v2644_v48 = vpop.f32.mrf.mxu3  ;;  %4124 = vst.msk [vmem:[%s5268_s7 + $0x188] sm:$0xff] %vm1567_vm9, %v2786_v29 }
 0xa00   : > { %v6138_v50 = vunpack.c.l.b16 %v2872_v43  ;;  %v6140_v35 = vunpack.c.l.b16 %v3098_v34  ;;  %v2614_v25 = vsel %vm1349_vm8, %v2525_v47, %v5928_v36  ;;  %v2769_v52 = vsel %vm1349_vm8, %v2644_v48, %v4043_v8 }
 0xa01   : > { %4091 = vst.msk [vmem:[%s4975_s0 + $0x180] sm:$0xff] %vm1567_vm9, %v2614_v25  ;;  %v2885_v8 = vpack.c.bf16 %v2614_v25, %v2614_v25  ;;  %v3081_v16 = vpack.c.bf16 %v2769_v52, %v2769_v52  ;;  %vm7125_vm8 = vcmp.eq.s32.totalorder %v4853_v51, 1 }
 0xa02   : > { %4107 = vst.msk [vmem:[%s5268_s7 + $0x100] sm:$0xff] %vm1567_vm9, %v2769_v52  ;;  %vm7131_vm0 = vmmov %vm7125_vm8 }
 0xa03   : > { %v6174_v25 = vunpack.c.l.b16 %v3081_v16  ;;  %vm7135_vm13 = vmmov %vm7131_vm0 }
 0xa04   : > { %v2483_v43 = vpop.f32.mrf.mxu1  ;;  %v2701_v34 = vpop.f32.mrf.mxu0  ;;  %vm7136_vm15 = vmmov %vm7131_vm0 }
 0xa05   : > { %v2602_v36 = vsel %vm7122_vm7, %v2483_v43, %v5931_v58  ;;  %v2787_v61 = vsel %vm1351_vm11, %v2701_v34, %v4061_v18  ;;  %v6172_v18 = vunpack.c.l.b16 %v2885_v8 }
 0xa06   : > { %4079 = vst.msk [vmem:[%s4975_s0 + $0x120] sm:$0xff] %vm1567_vm9, %v2602_v36  ;;  %v2873_v52 = vpack.c.bf16 %v2602_v36, %v2602_v36  ;;  %v3099_v43 = vpack.c.bf16 %v2787_v61, %v2787_v61 }
 0xa07   : > { %v2527_v13 = vpop.f32.mrf.mxu2  ;;  %v2646_v22 = vpop.f32.mrf.mxu3  ;;  %4125 = vst.msk [vmem:[%s5268_s7 + $0x190] sm:$0xff] %vm1567_vm9, %v2787_v61 }
 0xa08   : > { %v2615_v10 = vsel %vm1350_vm10, %v2527_v13, %v5934_v53  ;;  %v2770_v47 = vsel %vm1350_vm10, %v2646_v22, %v6033_v12  ;;  %7123 = vst [vmem:[#allocation44_spill] sm:$0xff] %v6172_v18  ;;  %vm7126_vm10 = vmmov %vm7122_vm7 }
 0xa09   : > { %v2886_v58 = vpack.c.bf16 %v2615_v10, %v2615_v10  ;;  %v3082_v48 = vpack.c.bf16 %v2770_v47, %v2770_v47  ;;  %4092 = vst.msk [vmem:[%s4975_s0 + $0x188] sm:$0xff] %vm1567_vm9, %v2615_v10  ;;  %v6194_v10 = vunpack.c.l.b16 %v2873_v52 }
 0xa0a   : > { %4108 = vst.msk [vmem:[%s5268_s7 + $0x108] sm:$0xff] %vm1567_vm9, %v2770_v47  ;;  %v6196_v47 = vunpack.c.l.b16 %v3099_v43  ;;  %v7159_v43 = vld [vmem:[#allocation19_spill] sm:$0xff] }
 0xa0b   : > { %v6178_v34 = vunpack.c.l.b16 %v2886_v58  ;;  %v6180_v53 = vunpack.c.l.b16 %v3082_v48 }
 0xa0c   : > { %v2485_v37 = vpop.f32.mrf.mxu1  ;;  %v2703_v12 = vpop.f32.mrf.mxu0 }
 0xa0d   : > { %7124 = vst [vmem:[#allocation42_spill] sm:$0xff] %v6178_v34  ;;  %v2603_v13 = vsel %vm1354_vm1, %v2485_v37, %v5937_v31  ;;  %v2788_v8 = vsel %vm1352_vm12, %v2703_v12, %v6036_v27 }
 0xa0e   : > { %v2874_v16 = vpack.c.bf16 %v2603_v13, %v2603_v13  ;;  %v3100_v22 = vpack.c.bf16 %v2788_v8, %v2788_v8  ;;  %4080 = vst.msk [vmem:[%s4975_s0 + $0x128] sm:$0xff] %vm1567_vm9, %v2603_v13 }
 0xa0f   : > { %v2530_v31 = vpop.f32.mrf.mxu2  ;;  %v2649_v58 = vpop.f32.mrf.mxu3  ;;  %4126 = vst.msk [vmem:[%s5268_s7 + $0x198] sm:$0xff] %vm1567_vm9, %v2788_v8 }
 0xa10   : > { %v6200_v27 = vunpack.c.l.b16 %v2874_v16  ;;  %v6202_v48 = vunpack.c.l.b16 %v3100_v22  ;;  %v2616_v37 = vsel %vm1351_vm11, %v2530_v31, %v5940_v32  ;;  %v2771_v52 = vsel %vm1351_vm11, %v2649_v58, %v6039_v0  ;;  %vm7129_vm11 = vmmov %vm7122_vm7 }
 0xa11   : > { %4093 = vst.msk [vmem:[%s4975_s0 + $0x190] sm:$0xff] %vm1567_vm9, %v2616_v37  ;;  %v2887_v0 = vpack.c.bf16 %v2616_v37, %v2616_v37  ;;  %v3083_v16 = vpack.c.bf16 %v2771_v52, %v2771_v52 }
 0xa12   : > { %4109 = vst.msk [vmem:[%s5268_s7 + $0x110] sm:$0xff] %vm1567_vm9, %v2771_v52 }
 0xa13   : > { %v6238_v37 = vunpack.c.l.b16 %v3083_v16 }
 0xa14   : > { %v2488_v13 = vpop.f32.mrf.mxu1  ;;  %v2706_v8 = vpop.f32.mrf.mxu0 }
 0xa15   : > { %v2604_v32 = vsel %vm7125_vm8, %v2488_v13, %v5943_v19  ;;  %v2789_v57 = vsel %vm7126_vm10, %v2706_v8, %v6042_v28  ;;  %v6236_v28 = vunpack.c.l.b16 %v2887_v0 }
 0xa16   : > { %4081 = vst.msk [vmem:[%s4975_s0 + $0x130] sm:$0xff] %vm1567_vm9, %v2604_v32  ;;  %v2875_v52 = vpack.c.bf16 %v2604_v32, %v2604_v32  ;;  %v3101_v8 = vpack.c.bf16 %v2789_v57, %v2789_v57 }
 0xa17   : > { %v2532_v22 = vpop.f32.mrf.mxu2  ;;  %v2651_v31 = vpop.f32.mrf.mxu3  ;;  %4127 = vst.msk [vmem:[%s5268_s7 + $0x1a0] sm:$0xff] %vm1567_vm9, %v2789_v57 }
 0xa18   : > { %v2617_v58 = vsel %vm1352_vm12, %v2532_v22, %v5946_v38  ;;  %v2772_v19 = vsel %vm1352_vm12, %v2651_v31, %v6045_v3  ;;  %7127 = vst [vmem:[#allocation38_spill] sm:$0xff] %v6236_v28  ;;  %v6258_v31 = vunpack.c.l.b16 %v2875_v52  ;;  %vm7130_vm12 = vmmov %vm7122_vm7  ;;  %v7170_v28 = vld [vmem:[#allocation58_spill] sm:$0xff] }
 0xa19   : > { %v2888_v13 = vpack.c.bf16 %v2617_v58, %v2617_v58  ;;  %v3084_v61 = vpack.c.bf16 %v2772_v19, %v2772_v19  ;;  %4094 = vst.msk [vmem:[%s4975_s0 + $0x198] sm:$0xff] %vm1567_vm9, %v2617_v58  ;;  %v6260_v58 = vunpack.c.l.b16 %v3101_v8  ;;  %v7165_v8 = vld [vmem:[#allocation62_spill] sm:$0xff] }
 0xa1a   : > { %4110 = vst.msk [vmem:[%s5268_s7 + $0x118] sm:$0xff] %vm1567_vm9, %v2772_v19 }
 0xa1b   : > { %v6242_v36 = vunpack.c.l.b16 %v2888_v13  ;;  %v6244_v38 = vunpack.c.l.b16 %v3084_v61 }
 0xa1c   : > { %v2490_v42 = vpop.f32.mrf.mxu1  ;;  %v2708_v3 = vpop.f32.mrf.mxu0 }
 0xa1d   : > { %7128 = vst [vmem:[#allocation53_spill] sm:$0xff] %v6242_v36  ;;  %v2605_v22 = vsel %vm1356_vm3, %v2490_v42, %v5949_v9  ;;  %v2790_v0 = vsel %vm1354_vm1, %v2708_v3, %v6048_v21 }
 0xa1e   : > { %v2876_v61 = vpack.c.bf16 %v2605_v22, %v2605_v22  ;;  %v3102_v16 = vpack.c.bf16 %v2790_v0, %v2790_v0  ;;  %4082 = vst.msk [vmem:[%s4975_s0 + $0x138] sm:$0xff] %vm1567_vm9, %v2605_v22 }
 0xa1f   : > { %v2535_v9 = vpop.f32.mrf.mxu2  ;;  %v2654_v19 = vpop.f32.mrf.mxu3  ;;  %4128 = vst.msk [vmem:[%s5268_s7 + $0x1a8] sm:$0xff] %vm1567_vm9, %v2790_v0 }
 0xa20   : > { %v6264_v21 = vunpack.c.l.b16 %v2876_v61  ;;  %v6266_v13 = vunpack.c.l.b16 %v3102_v16  ;;  %v2618_v42 = vsel %vm7129_vm11, %v2535_v9, %v5952_v63  ;;  %v2773_v52 = vsel %vm7130_vm12, %v2654_v19, %v6051_v62 }
 0xa21   : > { %4095 = vst.msk [vmem:[%s4975_s0 + $0x1a0] sm:$0xff] %vm1567_vm9, %v2618_v42  ;;  %v2889_v62 = vpack.c.bf16 %v2618_v42, %v2618_v42  ;;  %v3085_v61 = vpack.c.bf16 %v2773_v52, %v2773_v52 }
 0xa22   : > { %4111 = vst.msk [vmem:[%s5268_s7 + $0x120] sm:$0xff] %vm1567_vm9, %v2773_v52 }
 0xa23   : > { %v6302_v42 = vunpack.c.l.b16 %v3085_v61 }
 0xa24   : > { %v2493_v22 = vpop.f32.mrf.mxu1  ;;  %v2711_v0 = vpop.f32.mrf.mxu0 }
 0xa25   : > { %v2606_v63 = vsel %vm1357_vm4, %v2493_v22, %v5955_v60  ;;  %v2791_v55 = vsel %vm7131_vm0, %v2711_v0, %v6054_v46  ;;  %v6300_v46 = vunpack.c.l.b16 %v2889_v62 }
 0xa26   : > { %4083 = vst.msk [vmem:[%s4975_s0 + $0x140] sm:$0xff] %vm1567_vm9, %v2606_v63  ;;  %v2877_v52 = vpack.c.bf16 %v2606_v63, %v2606_v63  ;;  %v3103_v0 = vpack.c.bf16 %v2791_v55, %v2791_v55  ;;  %v7152_v63 = vld [vmem:[#allocation57_spill] sm:$0xff] }
 0xa27   : > { %v2537_v16 = vpop.f32.mrf.mxu2  ;;  %v2656_v9 = vpop.f32.mrf.mxu3  ;;  %4129 = vst.msk [vmem:[%s5268_s7 + $0x1b0] sm:$0xff] %vm1567_vm9, %v2791_v55 }
 0xa28   : > { %v2619_v19 = vsel %vm1354_vm1, %v2537_v16, %v5958_v39  ;;  %v2774_v60 = vsel %vm1354_vm1, %v2656_v9, %v6057_v17  ;;  %7132 = vst [vmem:[#allocation52_spill] sm:$0xff] %v6300_v46  ;;  %vm7134_vm1 = vcmp.eq.s32.totalorder %v4872_v59, 1  ;;  %v6322_v9 = vunpack.c.l.b16 %v2877_v52 }
 0xa29   : > { %v2890_v22 = vpack.c.bf16 %v2619_v19, %v2619_v19  ;;  %v3086_v57 = vpack.c.bf16 %v2774_v60, %v2774_v60  ;;  %4096 = vst.msk [vmem:[%s4975_s0 + $0x1a8] sm:$0xff] %vm1567_vm9, %v2619_v19  ;;  %v6324_v19 = vunpack.c.l.b16 %v3103_v0  ;;  %vm7140_vm14 = vmmov %vm7134_vm1 }
 0xa2a   : > { %4112 = vst.msk [vmem:[%s5268_s7 + $0x128] sm:$0xff] %vm1567_vm9, %v2774_v60  ;;  %vm7146_vm7 = vmmov %vm7134_vm1 }
 0xa2b   : > { %v6306_v32 = vunpack.c.l.b16 %v2890_v22  ;;  %v6308_v39 = vunpack.c.l.b16 %v3086_v57 }
 0xa2c   : > { %v2495_v41 = vpop.f32.mrf.mxu1  ;;  %v2713_v17 = vpop.f32.mrf.mxu0 }
 0xa2d   : > { %7133 = vst [vmem:[#allocation36_spill] sm:$0xff] %v6306_v32  ;;  %v2607_v16 = vsel %vm7134_vm1, %v2495_v41, %v5961_v1  ;;  %v2792_v62 = vsel %vm1356_vm3, %v2713_v17, %v6060_v23  ;;  %v7166_v17 = vld [vmem:[#allocation17_spill] sm:$0xff]  ;;  %v7184_v32 = vld [vmem:[#allocation63_spill] sm:$0xff] }
 0xa2e   : > { %v2878_v57 = vpack.c.bf16 %v2607_v16, %v2607_v16  ;;  %v3104_v61 = vpack.c.bf16 %v2792_v62, %v2792_v62  ;;  %4084 = vst.msk [vmem:[%s4975_s0 + $0x148] sm:$0xff] %vm1567_vm9, %v2607_v16 }
 0xa2f   : > { %v2540_v1 = vpop.f32.mrf.mxu2  ;;  %v2659_v60 = vpop.f32.mrf.mxu3  ;;  %4130 = vst.msk [vmem:[%s5268_s7 + $0x1b8] sm:$0xff] %vm1567_vm9, %v2792_v62 }
 0xa30   : > { %v6328_v23 = vunpack.c.l.b16 %v2878_v57  ;;  %v6330_v22 = vunpack.c.l.b16 %v3104_v61  ;;  %v2620_v41 = vsel %vm7135_vm13, %v2540_v1, %v5964_v15  ;;  %v2775_v52 = vsel %vm7136_vm15, %v2659_v60, %v6063_v20  ;;  %v7137_v15 = vld [vmem:[#allocation18_spill] sm:$0xff] }
 0xa31   : > { %4097 = vst.msk [vmem:[%s4975_s0 + $0x1b0] sm:$0xff] %vm1567_vm9, %v2620_v41  ;;  %vm7138_vm2 = vcmp.eq.s32.totalorder %v7137_v15, 1  ;;  %v2891_v20 = vpack.c.bf16 %v2620_v41, %v2620_v41  ;;  %v3087_v61 = vpack.c.bf16 %v2775_v52, %v2775_v52 }
 0xa32   : > { %4113 = vst.msk [vmem:[%s5268_s7 + $0x130] sm:$0xff] %vm1567_vm9, %v2775_v52  ;;  %vm7142_vm6 = vmmov %vm7138_vm2 }
 0xa33   : > { %v6372_v41 = vunpack.c.l.b16 %v2891_v20  ;;  %v6374_v52 = vunpack.c.l.b16 %v3087_v61  ;;  %vm7153_vm11 = vmmov %vm7138_vm2  ;;  %v7157_v61 = vld [vmem:[#allocation16_spill] sm:$0xff] }
 0xa34   : > { %v2498_v16 = vpop.f32.mrf.mxu1  ;;  %v2716_v62 = vpop.f32.mrf.mxu0  ;;  %vm7155_vm12 = vmmov %vm7138_vm2  ;;  %vm7158_vm0 = vcmp.eq.s32.totalorder %v7157_v61, 1 }
 0xa35   : > { %v6349_v57 = vsel %vm7138_vm2, %v2498_v16, %v5967_v54  ;;  %v6354_v51 = vsel %vm1357_vm4, %v2716_v62, %v6066_v14  ;;  %vm7167_vm2 = vcmp.eq.s32.totalorder %v7166_v17, 1 }
 0xa36   : > { %4085 = vst.msk [vmem:[%s4975_s0 + $0x150] sm:$0xff] %vm1567_vm9, %v6349_v57 }
 0xa37   : > { %v2542_v1 = vpop.f32.mrf.mxu2  ;;  %v2661_v60 = vpop.f32.mrf.mxu3  ;;  %4131 = vst.msk [vmem:[%s5268_s7 + $0x1c0] sm:$0xff] %vm1567_vm9, %v6354_v51 }
 0xa38   : > { %v2621_v54 = vsel %vm1356_vm3, %v2542_v1, %v5970_v6  ;;  %v2776_v14 = vsel %vm1356_vm3, %v2661_v60, %v6069_v44  ;;  %vm7139_vm3 = vcmp.eq.s32.totalorder %v4864_v56, 1 }
 0xa39   : > { %v2892_v16 = vpack.c.bf16 %v2621_v54, %v2621_v54  ;;  %v3088_v62 = vpack.c.bf16 %v2776_v14, %v2776_v14  ;;  %4098 = vst.msk [vmem:[%s4975_s0 + $0x1b8] sm:$0xff] %vm1567_vm9, %v2621_v54  ;;  %vm7151_vm10 = vmmov %vm7139_vm3 }
 0xa3a   : > { %4114 = vst.msk [vmem:[%s5268_s7 + $0x138] sm:$0xff] %vm1567_vm9, %v2776_v14  ;;  %vm7162_vm13 = vmmov %vm7139_vm3 }
 0xa3b   : > { %v6376_v55 = vunpack.c.l.b16 %v2892_v16  ;;  %v6378_v6 = vunpack.c.l.b16 %v3088_v62  ;;  %vm7164_vm15 = vmmov %vm7139_vm3 }
 0xa3c   : > { %v2500_v30 = vpop.f32.mrf.mxu1  ;;  %v2718_v1 = vpop.f32.mrf.mxu0 }
 0xa3d   : > { %v6383_v44 = vsel %vm7139_vm3, %v2500_v30, %v5973_v40  ;;  %v6388_v20 = vsel %vm7140_vm14, %v2718_v1, %v6072_v7 }
 0xa3e   : > { %4086 = vst.msk [vmem:[%s4975_s0 + $0x158] sm:$0xff] %vm1567_vm9, %v6383_v44 }
 0xa3f   : > { %v2545_v54 = vpop.f32.mrf.mxu2  ;;  %v2664_v14 = vpop.f32.mrf.mxu3  ;;  %4132 = vst.msk [vmem:[%s5268_s7 + $0x1c8] sm:$0xff] %vm1567_vm9, %v6388_v20 }
 0xa40   : > { %v2622_v40 = vsel %vm1357_vm4, %v2545_v54, %v5976_v11  ;;  %v6406_v7 = vsel %vm1357_vm4, %v2664_v14, %v6075_v26  ;;  %v7143_v54 = vld [vmem:[#allocation56_spill] sm:$0xff]  ;;  %vm7144_vm4 = vmmov %vm7134_vm1 }
 0xa41   : > { %4099 = vst.msk [vmem:[%s4975_s0 + $0x1c0] sm:$0xff] %vm1567_vm9, %v2622_v40  ;;  %v2893_v11 = vpack.c.bf16 %v2622_v40, %v2622_v40  ;;  %v7145_v14 = vld [vmem:[#allocation60_spill] sm:$0xff]  ;;  %vm7160_vm1 = vmmov %vm7141_vm5 }
 0xa42   : > { %4115 = vst.msk [vmem:[%s5268_s7 + $0x140] sm:$0xff] %vm1567_vm9, %v6406_v7  ;;  %vm7171_vm14 = vmmov %vm7160_vm1 }
 0xa43   : > { %v6442_v40 = vunpack.c.l.b16 %v2893_v11 }
 0xa44   : > { %v2503_v16 = vpop.f32.mrf.mxu1  ;;  %v2721_v62 = vpop.f32.mrf.mxu0 }
 0xa45   : > { %v6416_v30 = vsel %vm7141_vm5, %v2503_v16, %v5979_v5  ;;  %v6421_v49 = vsel %vm7142_vm6, %v2721_v62, %v6078_v4  ;;  %vm7173_vm5 = vmmov %vm7160_vm1 }
 0xa46   : > { %4087 = vst.msk [vmem:[%s4975_s0 + $0x160] sm:$0xff] %vm1567_vm9, %v6416_v30  ;;  %vm7175_vm6 = vmmov %vm7158_vm0 }
 0xa47   : > { %v2547_v26 = vpop.f32.mrf.mxu2  ;;  %v2666_v1 = vpop.f32.mrf.mxu3  ;;  %4133 = vst.msk [vmem:[%s5268_s7 + $0x1d0] sm:$0xff] %vm1567_vm9, %v6421_v49 }
 0xa48   : > { %v2623_v5 = vsel %vm7144_vm4, %v2547_v26, %v7143_v54  ;;  %v6435_v4 = vsel %vm7146_vm7, %v2666_v1, %v7145_v14  ;;  %v7147_v26 = vld [vmem:[#allocation41_spill] sm:$0xff]  ;;  %v7148_v54 = vld [vmem:[#allocation15_spill] sm:$0xff]  ;;  %v7150_v1 = vld [vmem:[#allocation54_spill] sm:$0xff] }
 0xa49   : > { %v2894_v16 = vpack.c.bf16 %v2623_v5, %v2623_v5  ;;  %4100 = vst.msk [vmem:[%s4975_s0 + $0x1c8] sm:$0xff] %vm1567_vm9, %v2623_v5  ;;  %vm7149_vm8 = vcmp.eq.s32.totalorder %v7148_v54, 1  ;;  %v7180_v54 = vld [vmem:[#allocation25_spill] sm:$0xff] }
 0xa4a   : > { %4116 = vst.msk [vmem:[%s5268_s7 + $0x148] sm:$0xff] %vm1567_vm9, %v6435_v4  ;;  %vm7169_vm3 = vmmov %vm7149_vm8 }
 0xa4b   : > { %v6444_v62 = vunpack.c.l.b16 %v2894_v16  ;;  %vm7177_vm4 = vmmov %vm7169_vm3 }
 0xa4c   : > { %v2505_v60 = vpop.f32.mrf.mxu1  ;;  %v2723_v29 = vpop.f32.mrf.mxu0  ;;  %vm7179_vm7 = vmmov %vm7169_vm3 }
 0xa4d   : > { %v2611_v59 = vsel %vm7149_vm8, %v2505_v60, %v7147_v26  ;;  %v6452_v14 = vsel %vm7151_vm10, %v2723_v29, %v7150_v1  ;;  %v7154_v29 = vld [vmem:[#allocation49_spill] sm:$0xff]  ;;  %vm7181_vm8 = vmmov %vm7167_vm2 }
 0xa4e   : > { %4088 = vst.msk [vmem:[%s4975_s0 + $0x168] sm:$0xff] %vm1567_vm9, %v2611_v59  ;;  %vm7183_vm10 = vmmov %vm7158_vm0 }
 0xa4f   : > { %v2550_v11 = vpop.f32.mrf.mxu2  ;;  %v2669_v16 = vpop.f32.mrf.mxu3  ;;  %4134 = vst.msk [vmem:[%s5268_s7 + $0x1d8] sm:$0xff] %vm1567_vm9, %v6452_v14 }
 0xa50   : > { %v6464_v60 = vsel %vm7153_vm11, %v2550_v11, %v7152_v63  ;;  %v6469_v26 = vsel %vm7155_vm12, %v2669_v16, %v7154_v29  ;;  %v7161_v16 = vld [vmem:[#allocation61_spill] sm:$0xff]  ;;  %vm7185_vm11 = vmmov %vm7158_vm0 }
 0xa51   : > { %4101 = vst.msk [vmem:[%s4975_s0 + $0x1d0] sm:$0xff] %vm1567_vm9, %v6464_v60  ;;  %vm7187_vm12 = vmmov %vm7167_vm2 }
 0xa52   : > { %4117 = vst.msk [vmem:[%s5268_s7 + $0x150] sm:$0xff] %vm1567_vm9, %v6469_v26 }
 0xa54   : > { %v2508_v1 = vpop.f32.mrf.mxu1  ;;  %v2726_v5 = vpop.f32.mrf.mxu0 }
 0xa55   : > { %v2612_v12 = vsel %vm7158_vm0, %v2508_v1, %v7156_v2  ;;  %v6483_v63 = vsel %vm7160_vm1, %v2726_v5, %v7159_v43  ;;  %v7163_v2 = vld [vmem:[#allocation21_spill] sm:$0xff]  ;;  %vm7189_vm0 = vmmov %vm7167_vm2  ;;  %vm7218_vm1 = vcmask 261120  }
 0xa56   : > { %4089 = vst.msk [vmem:[%s4975_s0 + $0x170] sm:$0xff] %vm1567_vm9, %v2612_v12  ;;  %v2883_v43 = vpack.c.bf16 %v2612_v12, %v2612_v12 }
 0xa57   : > { %v2552_v15 = vpop.f32.mrf.mxu2  ;;  %v2671_v11 = vpop.f32.mrf.mxu3  ;;  %4135 = vst.msk [vmem:[%s5268_s7 + $0x1e0] sm:$0xff] %vm1567_vm9, %v6483_v63 }
 0xa58   : > { %v6493_v29 = vsel %vm7162_vm13, %v2552_v15, %v7161_v16  ;;  %v6498_v1 = vsel %vm7164_vm15, %v2671_v11, %v7163_v2  ;;  %v7168_v16 = vld [vmem:[#allocation51_spill] sm:$0xff]  ;;  %v2882_v2 = vpack.c.bf16 %v2611_v59, %v2611_v59  ;;  %v2931_v12 = vunpack.c.l.b16 %v2883_v43  ;;  %vm7219_vm13 = vmmov %vm7218_vm1 }
 0xa59   : > { %4102 = vst.msk [vmem:[%s4975_s0 + $0x1d8] sm:$0xff] %vm1567_vm9, %v6493_v29  ;;  %v2881_v59 = vpack.c.bf16 %v6416_v30, %v6416_v30  ;;  %vm7223_vm15 = vmmov %vm7218_vm1 }
 0xa5a   : > { %4118 = vst.msk [vmem:[%s5268_s7 + $0x158] sm:$0xff] %vm1567_vm9, %v6498_v1  ;;  %v2930_v43 = vunpack.c.l.b16 %v2882_v2 }
 0xa5c   : > { %v2510_v5 = vpop.f32.mrf.mxu1  ;;  %v2728_v3 = vpop.f32.mrf.mxu0 }
 0xa5d   : > { %v2613_v15 = vsel %vm7167_vm2, %v2510_v5, %v7165_v8  ;;  %v2798_v56 = vsel %vm7169_vm3, %v2728_v3, %v7168_v16  ;;  %v7172_v8 = vld [vmem:[#allocation22_spill] sm:$0xff] }
 0xa5e   : > { %v2884_v11 = vpack.c.bf16 %v2613_v15, %v2613_v15  ;;  %4090 = vst.msk [vmem:[%s4975_s0 + $0x178] sm:$0xff] %vm1567_vm9, %v2613_v15  ;;  %v7174_v15 = vld [vmem:[#allocation24_spill] sm:$0xff] }
 0xa5f   : > { %v2555_v0 = vpop.f32.mrf.mxu2  ;;  %v2674_v18 = vpop.f32.mrf.mxu3  ;;  %4136 = vst.msk [vmem:[%s5268_s7 + $0x1e8] sm:$0xff] %vm1567_vm9, %v2798_v56 }
 0xa60   : > { %v2932_v34 = vunpack.c.l.b16 %v2884_v11  ;;  %v6519_v36 = vsel %vm7171_vm14, %v2555_v0, %v7170_v28  ;;  %v6524_v3 = vsel %vm7173_vm5, %v2674_v18, %v7172_v8  ;;  %v2929_v18 = vunpack.c.l.b16 %v2881_v59  ;;  %v7176_v11 = vld [vmem:[#allocation47_spill] sm:$0xff]  ;;  %vm7224_vm5 = vmmov %vm7218_vm1 }
 0xa61   : > { %4103 = vst.msk [vmem:[%s4975_s0 + $0x1e0] sm:$0xff] %vm1567_vm9, %v6519_v36  ;;  %v2879_v59 = vpack.c.bf16 %v6349_v57, %v6349_v57  ;;  %v3110_v57 = vpack.c.bf16 %v2798_v56, %v2798_v56  ;;  %v3108_v56 = vpack.c.bf16 %v6452_v14, %v6452_v14 }
 0xa62   : > { %v2940_v5 = vpack.c.b16 %v2932_v34, %v2931_v12  ;;  %4119 = vst.msk [vmem:[%s5268_s7 + $0x160] sm:$0xff] %vm1567_vm9, %v6524_v3  ;;  %v2880_v34 = vpack.c.bf16 %v6383_v44, %v6383_v44  ;;  %v7178_v12 = vld [vmem:[#allocation64_spill] sm:$0xff] }
 0xa63   : > { %v3201_v61 = vunpack.c.l.b16 %v3108_v56 }
 0xa64   : > { %v2731_v28 = vpop.f32.mrf.mxu0  ;;  %v2966_v0 = vsel %vm1567_vm9, %v2940_v5, 0  ;;  %v2939_v5 = vpack.c.b16 %v2930_v43, %v2929_v18  ;;  %v2928_v44 = vunpack.c.l.b16 %v2880_v34 }
 0xa65   : > { %v2799_v45 = vsel %vm7175_vm6, %v2731_v28, %v7174_v15  ;;  %2968 = vmatpush.bf16.xpose.msra.mxu1 %v2966_v0  ;;  %vm7225_vm6 = vmmov %vm7218_vm1 }
 0xa66   : > { %4137 = vst.msk [vmem:[%s5268_s7 + $0x1f0] sm:$0xff] %vm1567_vm9, %v2799_v45  ;;  %v3111_v28 = vpack.c.bf16 %v2799_v45, %v2799_v45  ;;  %v2963_v15 = vsel %vm1567_vm9, %v2939_v5, 0  ;;  %v7182_v5 = vld [vmem:[#allocation20_spill] sm:$0xff] }
 0xa67   : > { %v2557_v30 = vpop.f32.mrf.mxu2  ;;  %v2676_v16 = vpop.f32.mrf.mxu3 }
 0xa68   : > { %v6545_v2 = vsel %vm7177_vm4, %v2557_v30, %v7176_v11  ;;  %v6550_v8 = vsel %vm7179_vm7, %v2676_v16, %v7178_v12  ;;  %v2927_v30 = vunpack.c.l.b16 %v2879_v59  ;;  %v3109_v16 = vpack.c.bf16 %v6483_v63, %v6483_v63  ;;  %vm7226_vm4 = vmmov %vm7218_vm1 }
 0xa69   : > { %4104 = vst.msk [vmem:[%s4975_s0 + $0x1e8] sm:$0xff] %vm1567_vm9, %v6545_v2  ;;  %v3204_v12 = vunpack.c.l.b16 %v3111_v28 }
 0xa6a   : > { %4120 = vst.msk [vmem:[%s5268_s7 + $0x168] sm:$0xff] %vm1567_vm9, %v6550_v8  ;;  %v2938_v11 = vpack.c.b16 %v2928_v44, %v2927_v30  ;;  %v3107_v44 = vpack.c.bf16 %v6421_v49, %v6421_v49  ;;  %v3202_v28 = vunpack.c.l.b16 %v3109_v16  ;;  %v7186_v16 = vld [vmem:[#allocation23_spill] sm:$0xff] }
 0xa6c   : > { %v2733_v0 = vpop.f32.mrf.mxu0  ;;  %v2960_v30 = vsel %vm1567_vm9, %v2938_v11, 0  ;;  %v3200_v49 = vunpack.c.l.b16 %v3107_v44 }
 0xa6d   : > { %v2800_v43 = vsel %vm7181_vm8, %v2733_v0, %v7180_v54  ;;  %2969 = vmatpush.bf16.xpose.msra.mxu1 %v2963_v15  ;;  %v3203_v15 = vunpack.c.l.b16 %v3110_v57 }
 0xa6e   : > { %v3112_v18 = vpack.c.bf16 %v2800_v43, %v2800_v43  ;;  %4138 = vst.msk [vmem:[%s5268_s7 + $0x1f8] sm:$0xff] %vm1567_vm9, %v2800_v43  ;;  %v3211_v56 = vpack.c.b16 %v3201_v61, %v3200_v49  ;;  %v3089_v49 = vpack.c.bf16 %v6406_v7, %v6406_v7 }
 0xa6f   : > { %v2560_v34 = vpop.f32.mrf.mxu2  ;;  %v2679_v45 = vpop.f32.mrf.mxu3  ;;  %v3212_v54 = vpack.c.b16 %v3203_v15, %v3202_v28 }
 0xa70   : > { %v3205_v46 = vunpack.c.l.b16 %v3112_v18  ;;  %v2628_v59 = vsel %vm7183_vm10, %v2560_v34, %v7182_v5  ;;  %v2783_v0 = vsel %vm7185_vm11, %v2679_v45, %v7184_v32  ;;  %v3106_v32 = vpack.c.bf16 %v6388_v20, %v6388_v20  ;;  %v7188_v45 = vld [vmem:[#allocation48_spill] sm:$0xff]  ;;  %vm7229_vm11 = vmmov %vm7218_vm1 }
 0xa71   : > { %4105 = vst.msk [vmem:[%s4975_s0 + $0x1f0] sm:$0xff] %vm1567_vm9, %v2628_v59  ;;  %v2899_v43 = vpack.c.bf16 %v2628_v59, %v2628_v59  ;;  %v3095_v14 = vpack.c.bf16 %v2783_v0, %v2783_v0  ;;  %v3105_v18 = vpack.c.bf16 %v6354_v51, %v6354_v51  ;;  %v3094_v20 = vpack.c.bf16 %v6550_v8, %v6550_v8 }
 0xa72   : > { %v3213_v63 = vpack.c.b16 %v3205_v46, %v3204_v12  ;;  %4121 = vst.msk [vmem:[%s5268_s7 + $0x170] sm:$0xff] %vm1567_vm9, %v2783_v0  ;;  %v3199_v59 = vunpack.c.l.b16 %v3106_v32  ;;  %v3093_v51 = vpack.c.bf16 %v6524_v3, %v6524_v3  ;;  %v2898_v0 = vpack.c.bf16 %v6545_v2, %v6545_v2 }
 0xa73   : > { %v3011_v17 = vunpack.c.l.b16 %v2899_v43  ;;  %v3143_v15 = vunpack.c.l.b16 %v3095_v14  ;;  %v3198_v28 = vunpack.c.l.b16 %v3105_v18  ;;  %v3092_v8 = vpack.c.bf16 %v6498_v1, %v6498_v1 }
 0xa74   : > { %3222 = vmatpush.bf16.msrb.mxu0 %v3213_v63  ;;  %v2897_v2 = vpack.c.bf16 %v6519_v36, %v6519_v36  ;;  %v3142_v32 = vunpack.c.l.b16 %v3094_v20  ;;  %v3091_v14 = vpack.c.bf16 %v6469_v26, %v6469_v26  ;;  %v2896_v26 = vpack.c.bf16 %v6493_v29, %v6493_v29 }
 0xa75   : > { %2970 = vmatpush.bf16.xpose.msra.mxu1 %v2960_v30  ;;  %v7190_v30 = vpack.c.b16 %v6328_v23, %v6322_v9  ;;  %v3210_v43 = vpack.c.b16 %v3199_v59, %v3198_v28  ;;  %v3090_v9 = vpack.c.bf16 %v6435_v4, %v6435_v4  ;;  %v3140_v23 = vunpack.c.l.b16 %v3092_v8  ;;  %v7212_v28 = vld [vmem:[#allocation38_spill] sm:$0xff] }
 0xa76   : > { %v3009_v36 = vunpack.c.l.b16 %v2897_v2  ;;  %v3008_v59 = vunpack.c.l.b16 %v2896_v26 }
 0xa77   : > { %v2562_v46 = vpop.f32.mrf.mxu2  ;;  %v2681_v57 = vpop.f32.mrf.mxu3  ;;  %v2957_v3 = vsel %vm1567_vm9, %v7190_v30, 0  ;;  %v3138_v20 = vunpack.c.l.b16 %v3090_v9 }
 0xa78   : > { %v2629_v34 = vsel %vm7187_vm12, %v2562_v46, %v7186_v16  ;;  %v2784_v11 = vsel %vm7189_vm0, %v2681_v57, %v7188_v45  ;;  %3223 = vmatpush.bf16.msrb.mxu0 %v3212_v54  ;;  %v3141_v46 = vunpack.c.l.b16 %v3093_v51  ;;  %v3010_v57 = vunpack.c.l.b16 %v2898_v0 }
 0xa79   : > { %4106 = vst.msk [vmem:[%s4975_s0 + $0x1f8] sm:$0xff] %vm1567_vm9, %v2629_v34  ;;  %v2900_v12 = vpack.c.bf16 %v2629_v34, %v2629_v34  ;;  %v3096_v5 = vpack.c.bf16 %v2784_v11, %v2784_v11  ;;  %v3139_v16 = vunpack.c.l.b16 %v3091_v14  ;;  %v7191_v45 = vpack.c.b16 %v6330_v22, %v6324_v19  ;;  %s4426_s0 = scalar_lea.hbm %s4425_s27, 8 }
 0xa7a   : > { %4122 = vst.msk [vmem:[%s5268_s7 + $0x178] sm:$0xff] %vm1567_vm9, %v2784_v11  ;;  %v3151_v18 = vpack.c.b16 %v3142_v32, %v3141_v46  ;;  %v3019_v34 = vpack.c.b16 %v3010_v57, %v3009_v36  ;;  %v7192_v11 = vpack.c.b16 %v6264_v21, %v6258_v31  ;;  %v7193_v19 = vpack.c.b16 %v6266_v13, %v6260_v58  ;;  %v4409_v46 = vld [vmem:[%s5721_s23] sm:$0xff]  ;;  %s743_s7 = sand.u32 1, %s4464_s30   ;;  %p4427_p11 = scmp.ne.s32.totalorder %s4425_s27, %s4426_s0 }
 0xa7b   : > { %v3012_v63 = vunpack.c.l.b16 %v2900_v12  ;;  %v3144_v44 = vunpack.c.l.b16 %v3096_v5  ;;  %v2895_v12 = vpack.c.bf16 %v6464_v60, %v6464_v60  ;;  %v3150_v7 = vpack.c.b16 %v3140_v23, %v3139_v16  ;;  %s3711_s29 = sshll.u32 %s743_s7, 3  ;;  %p4432_p1 = scmp.lt.s32.totalorder %s4430_s3, %s4426_s0 }
 0xa7c   : > { %3224 = vmatpush.bf16.msrb.mxu0 %v3211_v56  ;;  %v2954_v4 = vsel %vm1567_vm9, %v7192_v11, 0  ;;  %v3137_v5 = vunpack.c.l.b16 %v3089_v49  ;;  %v3043_v29 = vsel %vm1567_vm9, %v3019_v34, 0  ;;  %v7194_v51 = vpack.c.b16 %v6202_v48, %v6196_v47  ;;  %s745_s18 = scalar_lea.vmem [#allocation2], %s3711_s29  ;;  %p4428_p12 = pnand %p4427_p11, %p4634_p5 }
 0xa7d   : > { %v3020_v54 = vpack.c.b16 %v3012_v63, %v3011_v17  ;;  %v3152_v61 = vpack.c.b16 %v3144_v44, %v3143_v15  ;;  %2971 = vmatpush.bf16.xpose.msra.mxu1 %v2957_v3  ;;  %v3007_v22 = vunpack.c.l.b16 %v2895_v12  ;;  %v7195_v60 = vpack.c.b16 %v6200_v27, %v6194_v10  ;;  %v7211_v44 = vld [vmem:[#allocation53_spill] sm:$0xff]  ;;  %v7215_v3 = vld [vmem:[#allocation44_spill] sm:$0xff]  ;;  %s3553_s19 = sshll.u32 %s745_s18, 4  ;;  %p4433_p2 = por %p4432_p1, %p4431_p0  ;;  %s3554_s19 = int_to_ptr.vmem [resolvable:$true] %s3553_s19 }
 0xa7e   : > { %v3149_v31 = vpack.c.b16 %v3138_v20, %v3137_v5  ;;  %v7196_v56 = vpack.c.b16 %v6378_v6, %v6374_v52  ;;  %v7197_v13 = vpack.c.b16 %v6140_v35, %v6134_v33  ;;  %v7198_v47 = vpack.c.b16 %v6308_v39, %v6302_v42  ;;  %v4356_v33 = vld [vmem:[%s6819_s9 + $0x6] ss:$0 sm:$0xff]  ;;  %v7204_v42 = vld [vmem:[#allocation59_spill] sm:$0xff]  ;;  %p4429_p13 = pneg %p4428_p12 }
 0xa7f   : > { %3161 = vmatpush.bf16.msrb.mxu3 %v3152_v61  ;;  %v3046_v1 = vsel %vm1567_vm9, %v3020_v54, 0  ;;  %v3018_v21 = vpack.c.b16 %v3008_v59, %v3007_v22  ;;  %v2951_v0 = vsel %vm1567_vm9, %v7195_v60, 0  ;;  %v7199_v10 = vpack.c.b16 %v6138_v50, %v6132_v24  ;;  %v7203_v24 = vld [vmem:[#allocation50_spill] sm:$0xff]  ;;  %v7217_v54 = vld [vmem:[#allocation37_spill] sm:$0xff] }
 0xa80   : > { %3225 = vmatpush.bf16.msrb.mxu0 %v3210_v43  ;;  %3048 = vmatpush.bf16.xpose.msra.mxu2 %v3046_v1  ;;  %v7200_v48 = vpack.c.b16 %v6244_v38, %v6238_v37  ;;  %v7201_v52 = vpack.c.b16 %v6444_v62, %v6442_v40  ;;  %v7202_v50 = vpack.c.b16 %v6180_v53, %v6174_v25  ;;  %v7206_v38 = vld [vmem:[#allocation55_spill] sm:$0xff]  ;;  %v7208_v25 = vld [vmem:[#allocation36_spill] sm:$0xff]  ;;  %p4434_p3 = pnand %p4433_p2, %p4429_p13 }
 0xa81   : > { %v3040_v58 = vsel %vm1567_vm9, %v3018_v21, 0  ;;  %v2948_v27 = vsel %vm1567_vm9, %v7199_v10, 0  ;;  %v7205_v39 = vpack.c.b16 %v7203_v24, %v7204_v42  ;;  %v2331_v6 = vadd.f32 %v4356_v33, %v7206_v38  ;;  %v7209_v53 = vld [vmem:[#allocation52_spill] sm:$0xff]  ;;  %v4283_v21 = vld [vmem:[%s6820_s10 + $0x18] sm:$0xff]  ;;  %v4361_v33 = vld [vmem:[%s6821_s11 + $0x1] ss:$0 sm:$0xff] }
 0xa82   : > { %v3037_v35 = vsel %vm1567_vm9, %v7201_v52, 0  ;;  %v7207_v40 = vpack.c.b16 %v6376_v55, %v6372_v41  ;;  %v7210_v15 = vpack.c.b16 %v7208_v25, %v7209_v53  ;;  %v7213_v8 = vpack.c.b16 %v7211_v44, %v7212_v28  ;;  %v4357_v55 = vld [vmem:[%s6819_s9 + $0x7] ss:$0 sm:$0xff]  ;;  %v4285_v53 = vld [vmem:[%s6824_s14 + $0x18] sm:$0xff] }
 0xa83   : > { %3162 = vmatpush.bf16.msrb.mxu3 %v3151_v18  ;;  %v2945_v37 = vsel %vm1567_vm9, %v7205_v39, 0  ;;  %v2867_v17 = vpack.c.bf16 %v2331_v6, %v2331_v6  ;;  %v7214_v41 = vld [vmem:[#allocation42_spill] sm:$0xff]  ;;  %v2356_v61 = vadd.f32 %v4357_v55, %v7217_v54  ;;  %v7222_v6 = vld [vmem:[#allocation12_spill] sm:$0xff] }
 0xa84   : > { %3226 = vmatpush.bf16.msrb.mxu0 %v7191_v45  ;;  %v3034_v62 = vsel %vm1567_vm9, %v7207_v40, 0  ;;  %v3031_v63 = vsel %vm1567_vm9, %v7210_v15, 0  ;;  %v3028_v30 = vsel %vm1567_vm9, %v7213_v8, 0  ;;  %v7216_v2 = vpack.c.b16 %v7214_v41, %v7215_v3  ;;  %v4284_v15 = vld [vmem:[%s6824_s14 + $0x10] sm:$0xff] }
 0xa85   : > { %2972 = vmatpush.bf16.xpose.msra.mxu1 %v2954_v4  ;;  %v2868_v43 = vpack.c.bf16 %v2356_v61, %v2356_v61  ;;  %v4292_v8 = vld [vmem:[%s6826_s16 + $0x70] sm:$0xff]  ;;  %v4362_v61 = vld [vmem:[%s6822_s12 + $0x1] ss:$0 sm:$0xff] }
 0xa86   : > { %v3025_v32 = vsel %vm1567_vm9, %v7216_v2, 0 }
 0xa87   : > { %3163 = vmatpush.bf16.msrb.mxu3 %v3150_v7 }
 0xa88   : > { %3227 = vmatpush.bf16.msrb.mxu0 %v7193_v19  ;;  %3049 = vmatpush.bf16.xpose.msra.mxu2 %v3043_v29 }
 0xa8b   : > { %3164 = vmatpush.bf16.msrb.mxu3 %v3149_v31  ;;  %v4282_v31 = vld [vmem:[%s6820_s10 + $0x10] sm:$0xff] }
 0xa8c   : > { %3228 = vmatpush.bf16.msrb.mxu0 %v7194_v51 }
 0xa8d   : > { %2973 = vmatpush.bf16.xpose.msra.mxu1 %v2951_v0 }
 0xa8f   : > { %3165 = vmatpush.bf16.msrb.mxu3 %v7196_v56 }
 0xa90   : > { %3229 = vmatpush.bf16.msrb.mxu0 %v7197_v13  ;;  %3050 = vmatpush.bf16.xpose.msra.mxu2 %v3040_v58 }
 0xa93   : > { %3166 = vmatpush.bf16.msrb.mxu3 %v7198_v47 }
 0xa95   : > { %2974 = vmatpush.bf16.xpose.msra.mxu1 %v2948_v27 }
 0xa97   : > { %3167 = vmatpush.bf16.msrb.mxu3 %v7200_v48 }
 0xa98   : > { %3051 = vmatpush.bf16.xpose.msra.mxu2 %v3037_v35 }
 0xa9b   : > { %3168 = vmatpush.bf16.msrb.mxu3 %v7202_v50  ;;  %v7220_v50 = vld [vmem:[#allocation35_spill] sm:$0xff] }
 0xa9d   : > { %2975 = vmatpush.bf16.xpose.msra.mxu1 %v2945_v37 }
 0xa9f   : > { %3362 = vmatpush.bf16.msra.mxu3 %v4285_v53 }
 0xaa0   : > { %3052 = vmatpush.bf16.xpose.msra.mxu2 %v3034_v62 }
 0xaa3   : > { %3363 = vmatpush.bf16.msra.mxu3 %v4284_v15 }
 0xaa4   : > { %4139 = vmatmul.msk.bf16.vlgmr.msra.gmra.mxu1 %vm1567_vm9, %v2867_v17 }
 0xaa5   : > { %3258 = vmatpush.bf16.msrb.mxu1 %v4282_v31 }
 0xaa8   : > { %3053 = vmatpush.bf16.xpose.msra.mxu2 %v3031_v63  ;;  %v4293_v63 = vld [vmem:[%s6826_s16 + $0x78] sm:$0xff] }
 0xaa9   : > { %3444 = vmatpush.bf16.msra.mxu0 %v4293_v63 }
 0xaad   : > { %3445 = vmatpush.bf16.msra.mxu0 %v4292_v8 }
 0xab0   : > { %3054 = vmatpush.bf16.xpose.msra.mxu2 %v3028_v30 }
 0xab8   : > { %3055 = vmatpush.bf16.xpose.msra.mxu2 %v3025_v32 }
 0xabf   : > { %4140 = vmatmul.msk.bf16.vlgmr.msra.gmra.mxu2 %vm1567_vm9, %v2868_v43 }
 0xac0   : > { %3280 = vmatpush.bf16.msrb.mxu2 %v4283_v21 }
 0xb21   : > { %v2977_v14 = vpop.f32.mrf.mxu1 }
 0xb22   : > { %v2978_v57 = vadd.f32 %v4409_v46, %v2977_v14  ;;  %v4363_v14 = vld [vmem:[%s6823_s13 + $0x1] ss:$0 sm:$0xff] }
 0xb24   : > { %3061 = vmax.xlane.f32.xlu2 %v2978_v57 }
 0xb29   : > { %v2979_v1 = vpop.f32.mrf.mxu1 }
 0xb42   : > { %v3057_v9 = vpop.f32.mrf.mxu2 }
 0xb43   : > { %v3058_v23 = vadd.f32 %v4409_v46, %v3057_v9 }
 0xb45   : > { %3063 = vmax.xlane.f32.xlu0 %v3058_v23 }
 0xb4a   : > { %v3059_v36 = vpop.f32.mrf.mxu2 }
 0xb4b   : > { %v4290_v36 = vld [vmem:[%s6826_s16 + $0x60] sm:$0xff] }
 0xb97   : > { %v3062_v18 = vpop.xlane.xlu2 %3061 }
 0xb98   : > { %v3065_v49 = vsub.f32 %v2978_v57, %v3062_v18  ;;  %v4289_v18 = vld [vmem:[%s6826_s16 + $0x58] sm:$0xff] }
 0xb9a   : > { %v3067_v16 = vmul.f32 1.442695, %v3065_v49  ;;  %v4288_v49 = vld [vmem:[%s6826_s16 + $0x50] sm:$0xff] }
 0xb9c   : > { %4386 = vpow2.f32 %v3067_v16  ;;  %v4287_v16 = vld [vmem:[%s6826_s16 + $0x48] sm:$0xff] }
 0xba2   : > { %v4387_v26 = vpop.eup %4386 }
 0xba3   : > { %3071 = vadd.xlane.f32.xlu1 %v4387_v26 }
 0xbb8   : > { %v3064_v34 = vpop.xlane.xlu0 %3063 }
 0xbb9   : > { %v3066_v45 = vsub.f32 %v3058_v23, %v3064_v34  ;;  %v4291_v23 = vld [vmem:[%s6826_s16 + $0x68] sm:$0xff]  ;;  %v4286_v34 = vld [vmem:[%s6826_s16 + $0x40] sm:$0xff] }
 0xbba   : > { %3446 = vmatpush.bf16.msra.mxu0 %v4291_v23 }
 0xbbb   : > { %v3069_v11 = vmul.f32 1.442695, %v3066_v45 }
 0xbbd   : > { %4388 = vpow2.f32 %v3069_v11 }
 0xbbe   : > { %3447 = vmatpush.bf16.msra.mxu0 %v4290_v36 }
 0xbc2   : > { %3448 = vmatpush.bf16.msra.mxu0 %v4289_v18 }
 0xbc3   : > { %v4389_v4 = vpop.eup %4388 }
 0xbc4   : > { %3073 = vadd.xlane.f32.xlu2 %v4389_v4 }
 0xbc6   : > { %3449 = vmatpush.bf16.msra.mxu0 %v4288_v49 }
 0xbca   : > { %3450 = vmatpush.bf16.msra.mxu0 %v4287_v16 }
 0xbce   : > { %3451 = vmatpush.bf16.msra.mxu0 %v4286_v34 }
 0xc16   : > { %v3072_v20 = vpop.xlane.xlu1 %3071 }
 0xc17   : > { %4390 = vrcp.f32 %v3072_v20 }
 0xc1d   : > { %v4391_v12 = vpop.eup %4390 }
 0xc1e   : > { %v3077_v7 = vmul.f32 %v4391_v12, %v4387_v26  ;;  %v4364_v26 = vld [vmem:[%s6825_s15 + $0x1] ss:$0 sm:$0xff] }
 0xc20   : > { %v3079_v5 = vpack.c.bf16 %v3077_v7, %v3077_v7 }
 0xc22   : > { %3169 = vmatmul.bf16.vlgmr.msrb.gmra.mxu3 %v3079_v5 }
 0xc37   : > { %v3074_v59 = vpop.xlane.xlu2 %3073 }
 0xc38   : > { %4392 = vrcp.f32 %v3074_v59 }
 0xc3e   : > { %v4393_v29 = vpop.eup %4392 }
 0xc3f   : > { %v3078_v19 = vmul.f32 %v4393_v29, %v4389_v4 }
 0xc41   : > { %v3080_v22 = vpack.c.bf16 %v3078_v19, %v3078_v19 }
 0xc43   : > { %3230 = vmatmul.bf16.vlgmr.msrb.gmra.mxu0 %v3080_v22 }
 0xca5   : > { %v3170_v51 = vpop.f32.mrf.mxu3 }
 0xca6   : > { %v3235_v60 = vpack.c.bf16 %v3170_v51, %v3170_v51  ;;  %v4365_v51 = vld [vmem:[%s6827_s17 + $0x1] ss:$0 sm:$0xff] }
 0xca8   : > { %4149 = vmatmul.msk.bf16.vlgmr.msrb.gmra.mxu1 %vm1567_vm9, %v3235_v60 }
 0xcad   : > { %v3172_v0 = vpop.f32.mrf.mxu3 }
 0xcc0   : > { %v3231_v56 = vpop.f32.mrf.mxu0 }
 0xcc1   : > { %v3236_v58 = vpack.c.bf16 %v3231_v56, %v3231_v56 }
 0xcc3   : > { %4154 = vmatmul.msk.bf16.vlgmr.msrb.gmra.mxu2 %vm1567_vm9, %v3236_v58  ;;  %vm7221_vm9 = vmmov %vm7218_vm1 }
 0xcc8   : > { %v3233_v13 = vpop.f32.mrf.mxu0 }
 0xd25   : > { %v3260_v47 = vpop.f32.mrf.mxu1 }
 0xd26   : > { %v3286_v48 = vsel %vm7218_vm1, %v3260_v47, 0.0 }
 0xd2d   : > { %v3262_v10 = vpop.f32.mrf.mxu1 }
 0xd46   : > { %v3282_v27 = vpop.f32.mrf.mxu2 }
 0xd47   : > { %v3287_v52 = vsel %vm7219_vm13, %v3282_v27, 0.0 }
 0xd48   : > { %v3288_v35 = vadd.f32 %v3287_v52, %v3286_v48 }
 0xd4a   : > { %v3289_v24 = vadd.f32 %v3288_v35, %v7220_v50  ;;  %v4295_v35 = vld [vmem:[%s6830_s20 + $0x8] sm:$0xff] }
 0xd4b   : > { %3522 = vmatpush.bf16.msra.mxu1 %v4295_v35 }
 0xd4c   : > { %v6709_v42 = vadd.f32 %v4361_v33, %v3289_v24  ;;  %v4294_v33 = vld [vmem:[%s6830_s20] sm:$0xff] }
 0xd4e   : > { %v3284_v39 = vpop.f32.mrf.mxu2  ;;  %v3300_v37 = vsel %vm7221_vm9, %v6709_v42, 0.0 }
 0xd4f   : > { %3301 = vadd.xlane.f32.xlu0 %v3300_v37  ;;  %3523 = vmatpush.bf16.msra.mxu1 %v4294_v33 }
 0xdc2   : > { %v3302_v38 = vpop.xlane.xlu0 %3301 }
 0xdc3   : > { %v3303_v40 = vmul.f32 %v3302_v38, %v7222_v6 }
 0xdc5   : > { %v3304_v62 = vsub.f32 %v6709_v42, %v3303_v40 }
 0xdc7   : > { %v3305_v17 = vmul.f32 %v3304_v62, %v3304_v62 }
 0xdc9   : > { %v3306_v25 = vsel %vm7223_vm15, %v3305_v17, 0.0 }
 0xdca   : > { %3307 = vadd.xlane.f32.xlu1 %v3306_v25  ;;  %v4366_v25 = vld [vmem:[%s7227_s22] ss:$0 sm:$0xff]  ;;  %s3531_s22 = scalar_lea.sflag [#allocation3], %s743_s7 }
 0xe3d   : > { %v3308_v44 = vpop.xlane.xlu1 %3307 }
 0xe3e   : > { %v3309_v28 = vmul.f32 %v3308_v44, %v7222_v6 }
 0xe40   : > { %v3310_v30 = vadd.f32 1e-05, %v3309_v28 }
 0xe42   : > { %4394 = vrsqrt.f32 %v3310_v30  ;;  %vm3317_vm3 = vweird.f32 %v3310_v30 }
 0xe48   : > { %v4395_v55 = vpop.eup %4394 }
 0xe49   : > { %v3312_v41 = vmul.f32 %v4395_v55, %v3310_v30  ;;  %vm3318_vm2 = vweird.f32 %v4395_v55 }
 0xe4a   : > { %vm3319_vm14 = vmor %vm3317_vm3, %vm3318_vm2 }
 0xe4b   : > { %v3313_v3 = vmul.f32 %v4395_v55, %v3312_v41 }
 0xe4d   : > { %v3314_v2 = vmul.f32 0.5, %v3313_v3 }
 0xe4f   : > { %v3315_v32 = vsub.f32 1.5, %v3314_v2 }
 0xe51   : > { %v3316_v54 = vmul.f32 %v4395_v55, %v3315_v32 }
 0xe53   : > { %v3320_v43 = vsel %vm3319_vm14, %v4395_v55, %v3316_v54 }
 0xe54   : > { %v3321_v46 = vmul.f32 %v3320_v43, %v3304_v62 }
 0xe56   : > { %v3325_v57 = vmul.f32 %v4362_v61, %v3321_v46 }
 0xe58   : > { %v3329_v1 = vadd.f32 %v4363_v14, %v3325_v57 }
 0xe5a   : > { %v3330_v9 = vpack.c.bf16 %v3329_v1, %v3329_v1 }
 0xe5c   : > { %4171 = vmatmul.msk.bf16.vlgmr.msra.gmra.mxu3 %vm7224_vm5, %v3330_v9 }
 0xedf   : > { %v3365_v45 = vpop.f32.mrf.mxu3 }
 0xee0   : > { %v3366_v11 = vadd.f32 %v4364_v26, %v3365_v45 }
 0xee2   : > { %v3370_v4 = vmul.f32 0.044715, %v3366_v11  ;;  %v3369_v19 = vmul.f32 0.5, %v3366_v11 }
 0xee4   : > { %v3371_v20 = vmul.f32 %v3370_v4, %v3366_v11 }
 0xee6   : > { %v3372_v12 = vmul.f32 %v3371_v20, %v3366_v11 }
 0xee7   : > { %v3367_v7 = vpop.f32.mrf.mxu3 }
 0xee8   : > { %v3373_v5 = vadd.f32 %v3372_v12, %v3366_v11 }
 0xeea   : > { %v3374_v59 = vmul.f32 0.7978846, %v3373_v5 }
 0xeec   : > { %4396 = vtanh.f32 %v3374_v59 }
 0xef2   : > { %v4397_v29 = vpop.eup %4396 }
 0xef3   : > { %v3376_v22 = vadd.f32 1.0, %v4397_v29 }
 0xef5   : > { %v3377_v31 = vmul.f32 %v3376_v22, %v3369_v19 }
 0xef7   : > { %v3378_v21 = vpack.c.bf16 %v3377_v31, %v3377_v31 }
 0xef9   : > { %3452 = vmatmul.bf16.vlgmr.msra.gmra.mxu0 %v3378_v21 }
 0xf76   : > { %v3453_v60 = vpop.f32.mrf.mxu0 }
 0xf77   : > { %v3457_v0 = vadd.f32 %v3453_v60, %v6709_v42 }
 0xf79   : > { %v3463_v56 = vadd.f32 %v4365_v51, %v3457_v0 }
 0xf7b   : > { %v3466_v58 = vsel %vm7225_vm6, %v3463_v56, 0.0 }
 0xf7c   : > { %3467 = vadd.xlane.f32.xlu2 %v3466_v58 }
 0xf7e   : > { %v3455_v13 = vpop.f32.mrf.mxu0 }
 0xfef   : > { %v3468_v47 = vpop.xlane.xlu2 %3467 }
 0xff0   : > { %v3469_v10 = vmul.f32 %v3468_v47, %v7222_v6 }
 0xff2   : > { %v3470_v27 = vsub.f32 %v3463_v56, %v3469_v10 }
 0xff4   : > { %v3471_v48 = vmul.f32 %v3470_v27, %v3470_v27 }
 0xff6   : > { %v3472_v52 = vsel %vm7226_vm4, %v3471_v48, 0.0 }
 0xff7   : > { %3473 = vadd.xlane.f32.xlu0 %v3472_v52 }
0x106a   : > { %v3474_v50 = vpop.xlane.xlu0 %3473 }
0x106b   : > { %v3475_v24 = vmul.f32 %v3474_v50, %v7222_v6  ;;  %v4367_v6 = vld [vmem:[%s7228_s4] ss:$0 sm:$0xff] }
0x106d   : > { %v3476_v42 = vadd.f32 1e-05, %v3475_v24 }
0x106f   : > { %4398 = vrsqrt.f32 %v3476_v42  ;;  %vm3483_vm8 = vweird.f32 %v3476_v42 }
0x1075   : > { %v4399_v39 = vpop.eup %4398 }
0x1076   : > { %v3478_v37 = vmul.f32 %v4399_v39, %v3476_v42  ;;  %vm3484_vm7 = vweird.f32 %v4399_v39 }
0x1077   : > { %vm3485_vm10 = vmor %vm3483_vm8, %vm3484_vm7 }
0x1078   : > { %v3479_v38 = vmul.f32 %v4399_v39, %v3478_v37 }
0x107a   : > { %v3480_v40 = vmul.f32 0.5, %v3479_v38 }
0x107c   : > { %v3481_v62 = vsub.f32 1.5, %v3480_v40 }
0x107e   : > { %v3482_v17 = vmul.f32 %v4399_v39, %v3481_v62 }
0x1080   : > { %v3486_v53 = vsel %vm3485_vm10, %v4399_v39, %v3482_v17 }
0x1081   : > { %v3487_v15 = vmul.f32 %v3486_v53, %v3470_v27 }
0x1083   : > { %v3491_v63 = vmul.f32 %v4366_v25, %v3487_v15 }
0x1085   : > { %v3495_v44 = vadd.f32 %v4367_v6, %v3491_v63 }
0x1087   : > { %v3496_v28 = vpack.c.bf16 %v3495_v44, %v3495_v44 }
0x1089   : > { %4229 = vmatmul.msk.bf16.vlgmr.msra.gmra.mxu1 %vm7229_vm11, %v3496_v28 }
0x1106   : > { %v3525_v8 = vpop.f32.mrf.mxu1 }
0x1107   : > { %3529 = vst [vmem:[%s745_s18] sm:$0xff] %v3525_v8 }
0x1108   : > { %4437 = shalt.err (!%p4434_p3)
}
0x1109   : > { %4296 = dma.vmem_to_hbm [thread:$0]  (%p4634_p5), %s3554_s19, 128, %s3556_s24, %s3531_s22  }
0x110e   : > { %v3527_v30 = vpop.f32.mrf.mxu1 }
0x110f PF: > { %s7232_s7 = sld [smem:[#allocation7_spill]] }
0x1110   : > { %s7233_s25 = sld [smem:[#allocation5_spill]] }
0x1115   : > { %p4302_p4 = scmp.ge.s32.totalorder %s7232_s7, 2 }
0x1116   : > { %s3573_s18 = sand.u32 1, %s7233_s25  }
0x1117   : > { %p4299_p7 = pnand %p4302_p4, %p4638_p6  ;;  %s3574_s5 = scalar_lea.sflag [#allocation3], %s3573_s18 }
0x1119   : > { %p4300_p8 = pneg %p4299_p7 }
0x111b   : > { %4455 = dma.done.wait (%p4300_p8), %s3574_s5, 128  }
0x111c   : > { %4457 = vsyncadd (%p4300_p8), %s3574_s5, 4294967168  ;;  %s7235_s25 = sld [smem:[#allocation8_spill]]  ;;  %s7238_s4 = smov %s4464_s30 }
0x111d   : > { %s7236_s27 = sld [smem:[#allocation6_spill]] }
0x111e   : > { %s7237_s24 = sld [smem:[#allocation9_spill]] }
0x1122   : > { %p34_p9 = scmp.ge.s32.totalorder %s7235_s25, 4  }
0x1123   : > { %s7239_s30 = smov %s7236_s27 }
0x1124   :  { %36 = sbr.rel (!%p34_p9) target bundleno = 17 (0x11), region = 188 }
0x1129   :  { %3596 = vsyncpa [#allocation3], 1 }
0x112a   :  { %3598 = vsyncpa [#allocation3 + $0x1], 1 }

</bundles_post_ra>
